<compile_context>
chip_gen: v5e
topology: v5e:2x2
jax: 0.10.0
libtpu: 0.0.40
codegen_flags: <defaults>
</compile_context>

<pallas_src>
import functools
import math

import numpy as np
import jax
import jax.numpy as jnp
from jax import lax
from jax.experimental import pallas as pl
from jax.experimental.pallas import tpu as pltpu

_LANE = 128
_HALO_BLK = 128   # right halo delivered as one extra 128-lane block (K-1 <= 128)


# --------------------------------------------------------------------------- #
# Generic "sum of shifted matmul taps" conv kernel (time on the lane axis).    #
# --------------------------------------------------------------------------- #
def _make_taps_kernel(c_out, t_tile, offsets, apply_lrelu):
    def kernel(x_ref, xh_ref, w_ref, b_ref, o_ref):
        # x_ref : (C_in, t_tile)   current time tile          (f32)
        # xh_ref: (C_in, 128)      right halo (next block)    (f32)
        # w_ref : (n_taps, C_out, C_in)                       (bf16)
        # b_ref : (C_out, 1)                                  (f32)
        # o_ref : (C_out, t_tile)                             (f32)
        xw = jnp.concatenate([x_ref[...], xh_ref[...]], axis=-1)
        xw = xw.astype(jnp.bfloat16)                    # MXU-native operands
        acc = jnp.zeros((c_out, t_tile), jnp.float32)
        for j, off in enumerate(offsets):               # static, unrolled taps
            xs = xw[:, off:off + t_tile]                # static lane shift
            acc = acc + jnp.dot(w_ref[j], xs,
                                preferred_element_type=jnp.float32)
        y = acc + b_ref[...]
        if apply_lrelu:
            y = jnp.where(y >= 0.0, y, 0.1 * y)         # F.leaky_relu(., 0.1)
        o_ref[...] = y                                   # lane-dense store
    return kernel


def _choose_t_tile(t_out, c_in, c_out, vmem_budget=8 * 1024 * 1024):
    """Largest lane-aligned time tile that (double-buffered, f32) fits budget."""
    cap = 2048
    # TODO(synk): halve `cap` on v7x (64 MiB VMEM) via pltpu.get_tpu_info().
    while cap > _LANE and 8 * (c_in * (cap + _HALO_BLK) + c_out * cap) > vmem_budget:
        cap //= 2
    t = -(-t_out // _LANE) * _LANE
    return max(_LANE, min(t, cap))


@functools.lru_cache(maxsize=None)
def _build_conv_taps_call(batch, c_in, c_out, t_tile, n_blk, offsets, apply_lrelu):
    n_taps = len(offsets)
    t_mult = t_tile // _HALO_BLK
    kernel = _make_taps_kernel(c_out, t_tile, offsets, apply_lrelu)
    flops = 2 * batch * n_blk * t_tile * n_taps * c_in * c_out
    bytes_accessed = (4 * batch * n_blk * (c_in * (t_tile + _HALO_BLK) + c_out * t_tile)
                      + 2 * n_taps * c_out * c_in + 4 * c_out)
    return pl.pallas_call(
        kernel,
        out_shape=jax.ShapeDtypeStruct((batch, c_out, n_blk * t_tile), jnp.float32),
        grid=(batch, n_blk),
        in_specs=[
            # main time tile
            pl.BlockSpec((None, c_in, t_tile), lambda b, i: (b, 0, i)),
            # 128-lane right halo: first 128 lanes of the *next* tile
            pl.BlockSpec((None, c_in, _HALO_BLK),
                         lambda b, i: (b, 0, (i + 1) * t_mult)),
            pl.BlockSpec((n_taps, c_out, c_in), lambda b, i: (0, 0, 0)),
            pl.BlockSpec((c_out, 1), lambda b, i: (0, 0)),
        ],
        out_specs=pl.BlockSpec((None, c_out, t_tile), lambda b, i: (b, 0, i)),
        compiler_params=pltpu.CompilerParams(
            dimension_semantics=("parallel", "parallel"),
            vmem_limit_bytes=32 * 1024 * 1024,
        ),
        cost_estimate=pl.CostEstimate(flops=int(flops), transcendentals=0,
                                      bytes_accessed=int(bytes_accessed)),
    )


def _conv_taps(x, w_taps, bias, offsets, t_out, apply_lrelu, t_tile=None):
    """y[:, :, t] = sum_j w_taps[j] @ x[:, :, t + offsets[j]] + bias, t < t_out."""
    batch, c_in, length = x.shape
    n_taps, c_out, c_in_w = w_taps.shape
    assert c_in_w == c_in and n_taps == len(offsets)
    offsets = tuple(int(o) for o in offsets)
    assert max(offsets) <= _HALO_BLK, offsets
    if t_tile is None:
        t_tile = _choose_t_tile(t_out, c_in, c_out)
    n_blk = -(-t_out // t_tile)
    l_need = n_blk * t_tile + _HALO_BLK
    if length < l_need:
        x = jnp.pad(x, ((0, 0), (0, 0), (0, l_need - length)))
    elif length > l_need:
        x = x[:, :, :l_need]
    call = _build_conv_taps_call(batch, c_in, c_out, t_tile, n_blk, offsets,
                                 bool(apply_lrelu))
    y = call(x, x,
             w_taps.astype(jnp.bfloat16),
             bias.reshape(c_out, 1).astype(jnp.float32))
    return y[:, :, :t_out]


# --------------------------------------------------------------------------- #
# Conv wrappers built on the taps kernel.                                      #
# --------------------------------------------------------------------------- #
def conv1d_pallas(x, w, b, *, stride=1, padding=0, apply_lrelu=False):
    """Conv1d(C_in->C_out, K, stride, padding) + bias (+ leaky_relu 0.1).

    x: (B, C_in, T) f32, w: (C_out, C_in, K) f32 (torch layout), b: (C_out,).
    Strides are removed by a polyphase split in the wrapper so the Pallas
    kernel only ever does dense, stride-1 lane-aligned work.
    """
    batch, c_in, t_in = x.shape
    c_out, _, k = w.shape
    s = int(stride)
    t_out = (t_in + 2 * padding - k) // s + 1
    kq = -(-k // s)
    xp = jnp.pad(x, ((0, 0), (0, 0), (padding, (-(t_in + padding)) % s)))
    lp = xp.shape[-1] // s
    # phase split: x_poly[:, c*s + r, tau] = xp[:, c, s*tau + r]
    x_poly = xp.reshape(batch, c_in, lp, s).transpose(0, 1, 3, 2)
    x_poly = x_poly.reshape(batch, c_in * s, lp)
    # weight split: w_poly[o, c*s + r, q] = w[o, c, s*q + r]  (zero-padded taps)
    wp = jnp.pad(w, ((0, 0), (0, 0), (0, s * kq - k)))
    w_poly = wp.reshape(c_out, c_in, kq, s).transpose(0, 1, 3, 2)
    w_poly = w_poly.reshape(c_out, c_in * s, kq)
    w_taps = jnp.transpose(w_poly, (2, 0, 1))         # (kq, C_out, C_in*s)
    return _conv_taps(x_poly, w_taps, b, tuple(range(kq)), t_out, apply_lrelu)


def mdc_dilated_branches_pallas(x, w_list, b_list, dilations):
    """Fused  (sum_d Conv1d_d(x)) / n_d  of an MDC block (stride 1, 'same' pad).

    Every (dilation, tap) pair becomes one shifted-matmul tap of a single
    kernel call; 1/num_dilations is folded into the weights, biases averaged.
    """
    _, _, t_in = x.shape
    c_out, _, k = w_list[0].shape
    n_d = len(dilations)
    pads = [d * (k - 1) // 2 for d in dilations]
    p_max = max(pads)
    xp = jnp.pad(x, ((0, 0), (0, 0), (p_max, 0)))
    offsets, taps = [], []
    for w_d, d, p_d in zip(w_list, dilations, pads):
        for kk in range(k):
            offsets.append((p_max - p_d) + kk * d)
            taps.append(w_d[:, :, kk] / n_d)
    w_taps = jnp.stack(taps, axis=0)                   # (n_d*k, C_out, C_in)
    b_eff = sum(b_list) / n_d
    return _conv_taps(xp, w_taps, b_eff, tuple(offsets), t_in, apply_lrelu=False)


# --------------------------------------------------------------------------- #
# Module forward (Pallas path).                                                #
# --------------------------------------------------------------------------- #
def pqmf_analysis_pallas(pq, x):
    """PQMF analysis: 257-tap analysis filter bank + downsample by `subbands`."""
    sub, taps = pq["subbands"], pq["taps"]
    w = pq["h"][:, None, :]                            # (subbands, 1, taps+1)
    b = jnp.zeros((sub,), jnp.float32)
    return conv1d_pallas(x, w, b, stride=sub, padding=taps // 2)


def sbd_forward(p, x):
    """SubBandDiscriminator forward: MDC stack -> conv_post -> flatten."""
    fmap = []
    for mdc in p["mdcs"]:
        h = mdc_dilated_branches_pallas(x, mdc["ws"], mdc["bs"], mdc["dilations"])
        x = conv1d_pallas(h, mdc["w_out"], mdc["b_out"],
                          stride=mdc["stride"], padding=1, apply_lrelu=True)
        fmap.append(x)
    z = conv1d_pallas(x, p["w_post"], p["b_post"], stride=1, padding=1)
    return z.reshape(z.shape[0], -1), fmap


def msbd_forward(params, x, x_hat):
    cfg = params["config"]
    logits, logits_hat, fmap, fmap_hat = [], [], [], []
    xn = pqmf_analysis_pallas(params["pqmf_t"], x)
    xn_hat = pqmf_analysis_pallas(params["pqmf_t"], x_hat)
    for name, nband in (("tsbd3", cfg["tsubband"][2]),
                        ("tsbd2", cfg["tsubband"][1]),
                        ("tsbd1", cfg["tsubband"][0])):
        q, f = sbd_forward(params[name], xn[:, :nband, :])
        qh, fh = sbd_forward(params[name], xn_hat[:, :nband, :])
        logits.append(q); logits_hat.append(qh)
        fmap.append(f);   fmap_hat.append(fh)
    xm = jnp.transpose(pqmf_analysis_pallas(params["pqmf_f"], x), (0, 2, 1))
    xm_hat = jnp.transpose(pqmf_analysis_pallas(params["pqmf_f"], x_hat), (0, 2, 1))
    q4, f4 = sbd_forward(params["fsbd"], xm)
    q4h, f4h = sbd_forward(params["fsbd"], xm_hat)
    logits.append(q4); logits_hat.append(q4h)
    fmap.append(f4);   fmap_hat.append(f4h)
    return logits, logits_hat, fmap, fmap_hat


# --------------------------------------------------------------------------- #
# Pure-JAX (lax.conv) reference with identical bf16 operand rounding.          #
# --------------------------------------------------------------------------- #
def _conv_ref(x, w, b, *, stride=1, padding=0, dilation=1, lrelu=False):
    y = lax.conv_general_dilated(
        x.astype(jnp.bfloat16), w.astype(jnp.bfloat16),
        window_strides=(stride,), padding=[(padding, padding)],
        rhs_dilation=(dilation,),
        dimension_numbers=("NCH", "OIH", "NCH"),
        preferred_element_type=jnp.float32)
    if b is not None:
        y = y + b.reshape(1, -1, 1)
    if lrelu:
        y = jnp.where(y >= 0.0, y, 0.1 * y)
    return y


def sbd_reference(p, x):
    fmap = []
    for mdc in p["mdcs"]:
        n_d = len(mdc["dilations"])
        acc = None
        for w_d, d in zip(mdc["ws"], mdc["dilations"]):
            pad = d * (w_d.shape[-1] - 1) // 2
            y = _conv_ref(x, w_d / n_d, None, padding=pad, dilation=d)
            acc = y if acc is None else acc + y
        acc = acc + (sum(mdc["bs"]) / n_d).reshape(1, -1, 1)
        x = _conv_ref(acc, mdc["w_out"], mdc["b_out"],
                      stride=mdc["stride"], padding=1, lrelu=True)
        fmap.append(x)
    z = _conv_ref(x, p["w_post"], p["b_post"], stride=1, padding=1)
    return z.reshape(z.shape[0], -1), fmap


def pqmf_reference(pq, x):
    return _conv_ref(x, pq["h"][:, None, :], None,
                     stride=pq["subbands"], padding=pq["taps"] // 2)


def msbd_reference(params, x, x_hat):
    cfg = params["config"]
    logits, logits_hat, fmap, fmap_hat = [], [], [], []
    xn = pqmf_reference(params["pqmf_t"], x)
    xn_hat = pqmf_reference(params["pqmf_t"], x_hat)
    for name, nband in (("tsbd3", cfg["tsubband"][2]),
                        ("tsbd2", cfg["tsubband"][1]),
                        ("tsbd1", cfg["tsubband"][0])):
        q, f = sbd_reference(params[name], xn[:, :nband, :])
        qh, fh = sbd_reference(params[name], xn_hat[:, :nband, :])
        logits.append(q); logits_hat.append(qh)
        fmap.append(f);   fmap_hat.append(fh)
    xm = jnp.transpose(pqmf_reference(params["pqmf_f"], x), (0, 2, 1))
    xm_hat = jnp.transpose(pqmf_reference(params["pqmf_f"], x_hat), (0, 2, 1))
    q4, f4 = sbd_reference(params["fsbd"], xm)
    q4h, f4h = sbd_reference(params["fsbd"], xm_hat)
    logits.append(q4); logits_hat.append(q4h)
    fmap.append(f4);   fmap_hat.append(f4h)
    return logits, logits_hat, fmap, fmap_hat


# --------------------------------------------------------------------------- #
# Synthetic parameters.                                                        #
# --------------------------------------------------------------------------- #
def make_pqmf_filters(subbands, taps=256, cutoff_ratio=0.1, beta=9.0):
    """Cosine-modulated kaiser-windowed analysis filter bank (PQMF analysis)."""
    n = np.arange(taps + 1, dtype=np.float64)
    m = n - taps / 2.0
    h_proto = cutoff_ratio * np.sinc(cutoff_ratio * m) * np.kaiser(taps + 1, beta)
    h_proto = h_proto / np.sum(h_proto)
    h = np.zeros((subbands, taps + 1), np.float64)
    for k in range(subbands):
        h[k] = (2.0 * h_proto *
                np.cos((2 * k + 1) * (np.pi / (2.0 * subbands)) * m
                       + ((-1) ** k) * np.pi / 4.0))
    return jnp.asarray(h, jnp.float32)


def init_sbd_params(key, init_channel, channels, kernel, strides, dilations):
    mdcs = []
    c_in = init_channel
    for ch, s, dils in zip(channels, strides, dilations):
        ws, bs = [], []
        for _ in dils:
            key, k1, k2 = jax.random.split(key, 3)
            ws.append(jax.random.normal(k1, (ch, c_in, kernel), jnp.float32)
                      * (1.5 / math.sqrt(c_in * kernel)))
            bs.append(0.1 * jax.random.normal(k2, (ch,), jnp.float32))
        key, k1, k2 = jax.random.split(key, 3)
        w_out = jax.random.normal(k1, (ch, ch, 3), jnp.float32) * (1.5 / math.sqrt(ch * 3))
        b_out = 0.1 * jax.random.normal(k2, (ch,), jnp.float32)
        mdcs.append(dict(ws=ws, bs=bs, dilations=tuple(int(d) for d in dils),
                         w_out=w_out, b_out=b_out, stride=int(s)))
        c_in = ch
    key, k1, k2 = jax.random.split(key, 3)
    w_post = jax.random.normal(k1, (1, c_in, 3), jnp.float32) * (1.5 / math.sqrt(c_in * 3))
    b_post = 0.1 * jax.random.normal(k2, (1,), jnp.float32)
    return dict(mdcs=mdcs, w_post=w_post, b_post=b_post)


def init_msbd_params(key, cfg, seq_len):
    assert cfg["freq_init_ch"] == seq_len // cfg["num_fsbd_bands"], \
        "fsbd init channel must equal T // num_fsbd_bands"
    k1, k2, k3, k4 = jax.random.split(key, 4)
    params = {"config": cfg}
    params["pqmf_t"] = dict(h=make_pqmf_filters(cfg["num_tsbd_bands"], 256, 0.03, 10.0),
                            subbands=cfg["num_tsbd_bands"], taps=256)
    params["pqmf_f"] = dict(h=make_pqmf_filters(cfg["num_fsbd_bands"], 256, 0.1, 9.0),
                            subbands=cfg["num_fsbd_bands"], taps=256)
    params["tsbd1"] = init_sbd_params(k1, cfg["tsubband"][0], cfg["tchannels"],
                                      cfg["tkernels"][0], cfg["tstrides"][0],
                                      cfg["tdilations"][0])
    params["tsbd2"] = init_sbd_params(k2, cfg["tsubband"][1], cfg["tchannels"],
                                      cfg["tkernels"][1], cfg["tstrides"][1],
                                      cfg["tdilations"][1])
    params["tsbd3"] = init_sbd_params(k3, cfg["tsubband"][2], cfg["tchannels"],
                                      cfg["tkernels"][2], cfg["tstrides"][2],
                                      cfg["tdilations"][2])
    params["fsbd"] = init_sbd_params(k4, cfg["freq_init_ch"], cfg["fchannels"],
                                     cfg["fkernel"], cfg["fstride"],
                                     cfg["fdilations"])
    return params


if __name__ == "__main__":
    config = dict(
        tkernels=[5, 5, 3],
        fkernel=5,
        tchannels=[8, 16],
        fchannels=[8, 16],
        tstrides=[[1, 2], [2, 1], [1, 2]],
        fstride=[1, 1],
        tdilations=[[[1, 2], [1, 2]], [[1, 2, 3], [1, 2]], [[1, 2], [2, 3]]],
        fdilations=[[1, 2], [1, 2]],
        tsubband=[4, 3, 2],
        num_tsbd_bands=4,
        num_fsbd_bands=8,
        freq_init_ch=128,      # = seq_len // num_fsbd_bands
    )
    batch, seq_len = 2, 1024

    key = jax.random.PRNGKey(0)
    k_par, k_x, k_xh = jax.random.split(key, 3)
    params = init_msbd_params(k_par, config, seq_len)
    x = jax.random.normal(k_x, (batch, 1, seq_len), jnp.float32)
    x_hat = jax.random.normal(k_xh, (batch, 1, seq_len), jnp.float32)

    outs = msbd_forward(params, x, x_hat)
    outs = jax.block_until_ready(outs)
    refs = msbd_reference(params, x, x_hat)
    refs = jax.block_until_ready(refs)

    logits, logits_hat, fmap, fmap_hat = outs
    r_logits, r_logits_hat, r_fmap, r_fmap_hat = refs

    for a, b in zip(logits + logits_hat, r_logits + r_logits_hat):
        assert a.shape == b.shape, (a.shape, b.shape)
        assert jnp.allclose(a, b, rtol=2e-2, atol=5e-3), \
            ("logits mismatch", float(jnp.max(jnp.abs(a - b))))
    for fl, rfl in zip(fmap + fmap_hat, r_fmap + r_fmap_hat):
        for a, b in zip(fl, rfl):
            assert a.shape == b.shape, (a.shape, b.shape)
            assert jnp.allclose(a, b, rtol=2e-2, atol=5e-3), \
                ("fmap mismatch", float(jnp.max(jnp.abs(a - b))))

    print("KERNEL_OK")
</pallas_src>

<mosaic_0001>
module attributes {stable_mosaic.version = 11 : i64} {
  func.func @kernel(%arg0: i32, %arg1: i32, %arg2: memref<1x4x256xf32, #tpu.memory_space<vmem>>, %arg3: memref<1x4x128xf32, #tpu.memory_space<vmem>>, %arg4: memref<65x4x4xbf16, #tpu.memory_space<vmem>>, %arg5: memref<4x1xf32, #tpu.memory_space<vmem>>, %arg6: memref<1x4x256xf32, #tpu.memory_space<vmem>>) attributes {dimension_semantics = [#tpu.dimension_semantics<parallel>, #tpu.dimension_semantics<parallel>], iteration_bounds = array<i64: 2, 1>, scalar_prefetch = 0 : i64, scratch_operands = 0 : i64, tpu.core_type = #tpu.core_type<tc>, window_params = [{transform_indices = @transform_0, window_bounds = array<i64: 1, 4, 256>}, {transform_indices = @transform_1, window_bounds = array<i64: 1, 4, 128>}, {pipeline_mode = #tpu.pipeline_mode<synchronous>, transform_indices = @transform_2, window_bounds = array<i64: 65, 4, 4>}, {pipeline_mode = #tpu.pipeline_mode<synchronous>, transform_indices = @transform_3, window_bounds = array<i64: 4, 1>}, {transform_indices = @transform_4, window_bounds = array<i64: 1, 4, 256>}]} {
    %c0 = arith.constant 0 : index
    %c0_0 = arith.constant 0 : index
    %c0_1 = arith.constant 0 : index
    %0 = vector.load %arg2[%c0, %c0_0, %c0_1] : memref<1x4x256xf32, #tpu.memory_space<vmem>>, vector<1x4x256xf32>
    %1 = vector.shape_cast %0 : vector<1x4x256xf32> to vector<4x256xf32>
    %c0_2 = arith.constant 0 : index
    %c0_3 = arith.constant 0 : index
    %c0_4 = arith.constant 0 : index
    %2 = vector.load %arg3[%c0_2, %c0_3, %c0_4] : memref<1x4x128xf32, #tpu.memory_space<vmem>>, vector<1x4x128xf32>
    %3 = vector.shape_cast %2 : vector<1x4x128xf32> to vector<4x128xf32>
    %4 = tpu.concatenate %1, %3 in 1 : vector<4x256xf32>, vector<4x128xf32> -> vector<4x384xf32>
    %5 = arith.truncf %4 : vector<4x384xf32> to vector<4x384xbf16>
    %cst = arith.constant 0.000000e+00 : f32
    %6 = vector.broadcast %cst : f32 to vector<4x256xf32>
    %7 = vector.extract_strided_slice %5 {offsets = [0, 0], sizes = [4, 256], strides = [1, 1]} : vector<4x384xbf16> to vector<4x256xbf16>
    %c0_5 = arith.constant 0 : index
    %c0_6 = arith.constant 0 : index
    %c0_7 = arith.constant 0 : index
    %8 = vector.load %arg4[%c0_5, %c0_6, %c0_7] : memref<65x4x4xbf16, #tpu.memory_space<vmem>>, vector<1x4x4xbf16>
    %9 = vector.shape_cast %8 : vector<1x4x4xbf16> to vector<4x4xbf16>
    %cst_8 = arith.constant dense<0.000000e+00> : vector<4x256xf32>
    %10 = tpu.matmul %9, %7, %cst_8 {dimension_numbers = #tpu.dot_dimension_numbers<[1], [0], [0], [1], [0, 0, 1, 1], [], []>} : vector<4x4xbf16>, vector<4x256xbf16>, vector<4x256xf32> -> vector<4x256xf32>
    %11 = arith.addf %6, %10 : vector<4x256xf32>
    %12 = vector.extract_strided_slice %5 {offsets = [0, 1], sizes = [4, 256], strides = [1, 1]} : vector<4x384xbf16> to vector<4x256xbf16>
    %c1 = arith.constant 1 : index
    %c0_9 = arith.constant 0 : index
    %c0_10 = arith.constant 0 : index
    %13 = vector.load %arg4[%c1, %c0_9, %c0_10] : memref<65x4x4xbf16, #tpu.memory_space<vmem>>, vector<1x4x4xbf16>
    %14 = vector.shape_cast %13 : vector<1x4x4xbf16> to vector<4x4xbf16>
    %cst_11 = arith.constant dense<0.000000e+00> : vector<4x256xf32>
    %15 = tpu.matmul %14, %12, %cst_11 {dimension_numbers = #tpu.dot_dimension_numbers<[1], [0], [0], [1], [0, 0, 1, 1], [], []>} : vector<4x4xbf16>, vector<4x256xbf16>, vector<4x256xf32> -> vector<4x256xf32>
    %16 = arith.addf %11, %15 : vector<4x256xf32>
    %17 = vector.extract_strided_slice %5 {offsets = [0, 2], sizes = [4, 256], strides = [1, 1]} : vector<4x384xbf16> to vector<4x256xbf16>
    %c2 = arith.constant 2 : index
    %c0_12 = arith.constant 0 : index
    %c0_13 = arith.constant 0 : index
    %18 = vector.load %arg4[%c2, %c0_12, %c0_13] : memref<65x4x4xbf16, #tpu.memory_space<vmem>>, vector<1x4x4xbf16>
    %19 = vector.shape_cast %18 : vector<1x4x4xbf16> to vector<4x4xbf16>
    %cst_14 = arith.constant dense<0.000000e+00> : vector<4x256xf32>
    %20 = tpu.matmul %19, %17, %cst_14 {dimension_numbers = #tpu.dot_dimension_numbers<[1], [0], [0], [1], [0, 0, 1, 1], [], []>} : vector<4x4xbf16>, vector<4x256xbf16>, vector<4x256xf32> -> vector<4x256xf32>
    %21 = arith.addf %16, %20 : vector<4x256xf32>
    %22 = vector.extract_strided_slice %5 {offsets = [0, 3], sizes = [4, 256], strides = [1, 1]} : vector<4x384xbf16> to vector<4x256xbf16>
    %c3 = arith.constant 3 : index
    %c0_15 = arith.constant 0 : index
    %c0_16 = arith.constant 0 : index
    %23 = vector.load %arg4[%c3, %c0_15, %c0_16] : memref<65x4x4xbf16, #tpu.memory_space<vmem>>, vector<1x4x4xbf16>
    %24 = vector.shape_cast %23 : vector<1x4x4xbf16> to vector<4x4xbf16>
    %cst_17 = arith.constant dense<0.000000e+00> : vector<4x256xf32>
    %25 = tpu.matmul %24, %22, %cst_17 {dimension_numbers = #tpu.dot_dimension_numbers<[1], [0], [0], [1], [0, 0, 1, 1], [], []>} : vector<4x4xbf16>, vector<4x256xbf16>, vector<4x256xf32> -> vector<4x256xf32>
    %26 = arith.addf %21, %25 : vector<4x256xf32>
    %27 = vector.extract_strided_slice %5 {offsets = [0, 4], sizes = [4, 256], strides = [1, 1]} : vector<4x384xbf16> to vector<4x256xbf16>
    %c4 = arith.constant 4 : index
    %c0_18 = arith.constant 0 : index
    %c0_19 = arith.constant 0 : index
    %28 = vector.load %arg4[%c4, %c0_18, %c0_19] : memref<65x4x4xbf16, #tpu.memory_space<vmem>>, vector<1x4x4xbf16>
    %29 = vector.shape_cast %28 : vector<1x4x4xbf16> to vector<4x4xbf16>
    %cst_20 = arith.constant dense<0.000000e+00> : vector<4x256xf32>
    %30 = tpu.matmul %29, %27, %cst_20 {dimension_numbers = #tpu.dot_dimension_numbers<[1], [0], [0], [1], [0, 0, 1, 1], [], []>} : vector<4x4xbf16>, vector<4x256xbf16>, vector<4x256xf32> -> vector<4x256xf32>
    %31 = arith.addf %26, %30 : vector<4x256xf32>
    %32 = vector.extract_strided_slice %5 {offsets = [0, 5], sizes = [4, 256], strides = [1, 1]} : vector<4x384xbf16> to vector<4x256xbf16>
    %c5 = arith.constant 5 : index
    %c0_21 = arith.constant 0 : index
    %c0_22 = arith.constant 0 : index
    %33 = vector.load %arg4[%c5, %c0_21, %c0_22] : memref<65x4x4xbf16, #tpu.memory_space<vmem>>, vector<1x4x4xbf16>
    %34 = vector.shape_cast %33 : vector<1x4x4xbf16> to vector<4x4xbf16>
    %cst_23 = arith.constant dense<0.000000e+00> : vector<4x256xf32>
    %35 = tpu.matmul %34, %32, %cst_23 {dimension_numbers = #tpu.dot_dimension_numbers<[1], [0], [0], [1], [0, 0, 1, 1], [], []>} : vector<4x4xbf16>, vector<4x256xbf16>, vector<4x256xf32> -> vector<4x256xf32>
    %36 = arith.addf %31, %35 : vector<4x256xf32>
    %37 = vector.extract_strided_slice %5 {offsets = [0, 6], sizes = [4, 256], strides = [1, 1]} : vector<4x384xbf16> to vector<4x256xbf16>
    %c6 = arith.constant 6 : index
    %c0_24 = arith.constant 0 : index
    %c0_25 = arith.constant 0 : index
    %38 = vector.load %arg4[%c6, %c0_24, %c0_25] : memref<65x4x4xbf16, #tpu.memory_space<vmem>>, vector<1x4x4xbf16>
    %39 = vector.shape_cast %38 : vector<1x4x4xbf16> to vector<4x4xbf16>
    %cst_26 = arith.constant dense<0.000000e+00> : vector<4x256xf32>
    %40 = tpu.matmul %39, %37, %cst_26 {dimension_numbers = #tpu.dot_dimension_numbers<[1], [0], [0], [1], [0, 0, 1, 1], [], []>} : vector<4x4xbf16>, vector<4x256xbf16>, vector<4x256xf32> -> vector<4x256xf32>
    %41 = arith.addf %36, %40 : vector<4x256xf32>
    %42 = vector.extract_strided_slice %5 {offsets = [0, 7], sizes = [4, 256], strides = [1, 1]} : vector<4x384xbf16> to vector<4x256xbf16>
    %c7 = arith.constant 7 : index
    %c0_27 = arith.constant 0 : index
    %c0_28 = arith.constant 0 : index
    %43 = vector.load %arg4[%c7, %c0_27, %c0_28] : memref<65x4x4xbf16, #tpu.memory_space<vmem>>, vector<1x4x4xbf16>
    %44 = vector.shape_cast %43 : vector<1x4x4xbf16> to vector<4x4xbf16>
    %cst_29 = arith.constant dense<0.000000e+00> : vector<4x256xf32>
    %45 = tpu.matmul %44, %42, %cst_29 {dimension_numbers = #tpu.dot_dimension_numbers<[1], [0], [0], [1], [0, 0, 1, 1], [], []>} : vector<4x4xbf16>, vector<4x256xbf16>, vector<4x256xf32> -> vector<4x256xf32>
    %46 = arith.addf %41, %45 : vector<4x256xf32>
    %47 = vector.extract_strided_slice %5 {offsets = [0, 8], sizes = [4, 256], strides = [1, 1]} : vector<4x384xbf16> to vector<4x256xbf16>
    %c8 = arith.constant 8 : index
    %c0_30 = arith.constant 0 : index
    %c0_31 = arith.constant 0 : index
    %48 = vector.load %arg4[%c8, %c0_30, %c0_31] : memref<65x4x4xbf16, #tpu.memory_space<vmem>>, vector<1x4x4xbf16>
    %49 = vector.shape_cast %48 : vector<1x4x4xbf16> to vector<4x4xbf16>
    %cst_32 = arith.constant dense<0.000000e+00> : vector<4x256xf32>
    %50 = tpu.matmul %49, %47, %cst_32 {dimension_numbers = #tpu.dot_dimension_numbers<[1], [0], [0], [1], [0, 0, 1, 1], [], []>} : vector<4x4xbf16>, vector<4x256xbf16>, vector<4x256xf32> -> vector<4x256xf32>
    %51 = arith.addf %46, %50 : vector<4x256xf32>
    %52 = vector.extract_strided_slice %5 {offsets = [0, 9], sizes = [4, 256], strides = [1, 1]} : vector<4x384xbf16> to vector<4x256xbf16>
    %c9 = arith.constant 9 : index
    %c0_33 = arith.constant 0 : index
    %c0_34 = arith.constant 0 : index
    %53 = vector.load %arg4[%c9, %c0_33, %c0_34] : memref<65x4x4xbf16, #tpu.memory_space<vmem>>, vector<1x4x4xbf16>
    %54 = vector.shape_cast %53 : vector<1x4x4xbf16> to vector<4x4xbf16>
    %cst_35 = arith.constant dense<0.000000e+00> : vector<4x256xf32>
    %55 = tpu.matmul %54, %52, %cst_35 {dimension_numbers = #tpu.dot_dimension_numbers<[1], [0], [0], [1], [0, 0, 1, 1], [], []>} : vector<4x4xbf16>, vector<4x256xbf16>, vector<4x256xf32> -> vector<4x256xf32>
    %56 = arith.addf %51, %55 : vector<4x256xf32>
    %57 = vector.extract_strided_slice %5 {offsets = [0, 10], sizes = [4, 256], strides = [1, 1]} : vector<4x384xbf16> to vector<4x256xbf16>
    %c10 = arith.constant 10 : index
    %c0_36 = arith.constant 0 : index
    %c0_37 = arith.constant 0 : index
    %58 = vector.load %arg4[%c10, %c0_36, %c0_37] : memref<65x4x4xbf16, #tpu.memory_space<vmem>>, vector<1x4x4xbf16>
    %59 = vector.shape_cast %58 : vector<1x4x4xbf16> to vector<4x4xbf16>
    %cst_38 = arith.constant dense<0.000000e+00> : vector<4x256xf32>
    %60 = tpu.matmul %59, %57, %cst_38 {dimension_numbers = #tpu.dot_dimension_numbers<[1], [0], [0], [1], [0, 0, 1, 1], [], []>} : vector<4x4xbf16>, vector<4x256xbf16>, vector<4x256xf32> -> vector<4x256xf32>
    %61 = arith.addf %56, %60 : vector<4x256xf32>
    %62 = vector.extract_strided_slice %5 {offsets = [0, 11], sizes = [4, 256], strides = [1, 1]} : vector<4x384xbf16> to vector<4x256xbf16>
    %c11 = arith.constant 11 : index
    %c0_39 = arith.constant 0 : index
    %c0_40 = arith.constant 0 : index
    %63 = vector.load %arg4[%c11, %c0_39, %c0_40] : memref<65x4x4xbf16, #tpu.memory_space<vmem>>, vector<1x4x4xbf16>
    %64 = vector.shape_cast %63 : vector<1x4x4xbf16> to vector<4x4xbf16>
    %cst_41 = arith.constant dense<0.000000e+00> : vector<4x256xf32>
    %65 = tpu.matmul %64, %62, %cst_41 {dimension_numbers = #tpu.dot_dimension_numbers<[1], [0], [0], [1], [0, 0, 1, 1], [], []>} : vector<4x4xbf16>, vector<4x256xbf16>, vector<4x256xf32> -> vector<4x256xf32>
    %66 = arith.addf %61, %65 : vector<4x256xf32>
    %67 = vector.extract_strided_slice %5 {offsets = [0, 12], sizes = [4, 256], strides = [1, 1]} : vector<4x384xbf16> to vector<4x256xbf16>
    %c12 = arith.constant 12 : index
    %c0_42 = arith.constant 0 : index
    %c0_43 = arith.constant 0 : index
    %68 = vector.load %arg4[%c12, %c0_42, %c0_43] : memref<65x4x4xbf16, #tpu.memory_space<vmem>>, vector<1x4x4xbf16>
    %69 = vector.shape_cast %68 : vector<1x4x4xbf16> to vector<4x4xbf16>
    %cst_44 = arith.constant dense<0.000000e+00> : vector<4x256xf32>
    %70 = tpu.matmul %69, %67, %cst_44 {dimension_numbers = #tpu.dot_dimension_numbers<[1], [0], [0], [1], [0, 0, 1, 1], [], []>} : vector<4x4xbf16>, vector<4x256xbf16>, vector<4x256xf32> -> vector<4x256xf32>
    %71 = arith.addf %66, %70 : vector<4x256xf32>
    %72 = vector.extract_strided_slice %5 {offsets = [0, 13], sizes = [4, 256], strides = [1, 1]} : vector<4x384xbf16> to vector<4x256xbf16>
    %c13 = arith.constant 13 : index
    %c0_45 = arith.constant 0 : index
    %c0_46 = arith.constant 0 : index
    %73 = vector.load %arg4[%c13, %c0_45, %c0_46] : memref<65x4x4xbf16, #tpu.memory_space<vmem>>, vector<1x4x4xbf16>
    %74 = vector.shape_cast %73 : vector<1x4x4xbf16> to vector<4x4xbf16>
    %cst_47 = arith.constant dense<0.000000e+00> : vector<4x256xf32>
    %75 = tpu.matmul %74, %72, %cst_47 {dimension_numbers = #tpu.dot_dimension_numbers<[1], [0], [0], [1], [0, 0, 1, 1], [], []>} : vector<4x4xbf16>, vector<4x256xbf16>, vector<4x256xf32> -> vector<4x256xf32>
    %76 = arith.addf %71, %75 : vector<4x256xf32>
    %77 = vector.extract_strided_slice %5 {offsets = [0, 14], sizes = [4, 256], strides = [1, 1]} : vector<4x384xbf16> to vector<4x256xbf16>
    %c14 = arith.constant 14 : index
    %c0_48 = arith.constant 0 : index
    %c0_49 = arith.constant 0 : index
    %78 = vector.load %arg4[%c14, %c0_48, %c0_49] : memref<65x4x4xbf16, #tpu.memory_space<vmem>>, vector<1x4x4xbf16>
    %79 = vector.shape_cast %78 : vector<1x4x4xbf16> to vector<4x4xbf16>
    %cst_50 = arith.constant dense<0.000000e+00> : vector<4x256xf32>
    %80 = tpu.matmul %79, %77, %cst_50 {dimension_numbers = #tpu.dot_dimension_numbers<[1], [0], [0], [1], [0, 0, 1, 1], [], []>} : vector<4x4xbf16>, vector<4x256xbf16>, vector<4x256xf32> -> vector<4x256xf32>
    %81 = arith.addf %76, %80 : vector<4x256xf32>
    %82 = vector.extract_strided_slice %5 {offsets = [0, 15], sizes = [4, 256], strides = [1, 1]} : vector<4x384xbf16> to vector<4x256xbf16>
    %c15 = arith.constant 15 : index
    %c0_51 = arith.constant 0 : index
    %c0_52 = arith.constant 0 : index
    %83 = vector.load %arg4[%c15, %c0_51, %c0_52] : memref<65x4x4xbf16, #tpu.memory_space<vmem>>, vector<1x4x4xbf16>
    %84 = vector.shape_cast %83 : vector<1x4x4xbf16> to vector<4x4xbf16>
    %cst_53 = arith.constant dense<0.000000e+00> : vector<4x256xf32>
    %85 = tpu.matmul %84, %82, %cst_53 {dimension_numbers = #tpu.dot_dimension_numbers<[1], [0], [0], [1], [0, 0, 1, 1], [], []>} : vector<4x4xbf16>, vector<4x256xbf16>, vector<4x256xf32> -> vector<4x256xf32>
    %86 = arith.addf %81, %85 : vector<4x256xf32>
    %87 = vector.extract_strided_slice %5 {offsets = [0, 16], sizes = [4, 256], strides = [1, 1]} : vector<4x384xbf16> to vector<4x256xbf16>
    %c16 = arith.constant 16 : index
    %c0_54 = arith.constant 0 : index
    %c0_55 = arith.constant 0 : index
    %88 = vector.load %arg4[%c16, %c0_54, %c0_55] : memref<65x4x4xbf16, #tpu.memory_space<vmem>>, vector<1x4x4xbf16>
    %89 = vector.shape_cast %88 : vector<1x4x4xbf16> to vector<4x4xbf16>
    %cst_56 = arith.constant dense<0.000000e+00> : vector<4x256xf32>
    %90 = tpu.matmul %89, %87, %cst_56 {dimension_numbers = #tpu.dot_dimension_numbers<[1], [0], [0], [1], [0, 0, 1, 1], [], []>} : vector<4x4xbf16>, vector<4x256xbf16>, vector<4x256xf32> -> vector<4x256xf32>
    %91 = arith.addf %86, %90 : vector<4x256xf32>
    %92 = vector.extract_strided_slice %5 {offsets = [0, 17], sizes = [4, 256], strides = [1, 1]} : vector<4x384xbf16> to vector<4x256xbf16>
    %c17 = arith.constant 17 : index
    %c0_57 = arith.constant 0 : index
    %c0_58 = arith.constant 0 : index
    %93 = vector.load %arg4[%c17, %c0_57, %c0_58] : memref<65x4x4xbf16, #tpu.memory_space<vmem>>, vector<1x4x4xbf16>
    %94 = vector.shape_cast %93 : vector<1x4x4xbf16> to vector<4x4xbf16>
    %cst_59 = arith.constant dense<0.000000e+00> : vector<4x256xf32>
    %95 = tpu.matmul %94, %92, %cst_59 {dimension_numbers = #tpu.dot_dimension_numbers<[1], [0], [0], [1], [0, 0, 1, 1], [], []>} : vector<4x4xbf16>, vector<4x256xbf16>, vector<4x256xf32> -> vector<4x256xf32>
    %96 = arith.addf %91, %95 : vector<4x256xf32>
    %97 = vector.extract_strided_slice %5 {offsets = [0, 18], sizes = [4, 256], strides = [1, 1]} : vector<4x384xbf16> to vector<4x256xbf16>
    %c18 = arith.constant 18 : index
    %c0_60 = arith.constant 0 : index
    %c0_61 = arith.constant 0 : index
    %98 = vector.load %arg4[%c18, %c0_60, %c0_61] : memref<65x4x4xbf16, #tpu.memory_space<vmem>>, vector<1x4x4xbf16>
    %99 = vector.shape_cast %98 : vector<1x4x4xbf16> to vector<4x4xbf16>
    %cst_62 = arith.constant dense<0.000000e+00> : vector<4x256xf32>
    %100 = tpu.matmul %99, %97, %cst_62 {dimension_numbers = #tpu.dot_dimension_numbers<[1], [0], [0], [1], [0, 0, 1, 1], [], []>} : vector<4x4xbf16>, vector<4x256xbf16>, vector<4x256xf32> -> vector<4x256xf32>
    %101 = arith.addf %96, %100 : vector<4x256xf32>
    %102 = vector.extract_strided_slice %5 {offsets = [0, 19], sizes = [4, 256], strides = [1, 1]} : vector<4x384xbf16> to vector<4x256xbf16>
    %c19 = arith.constant 19 : index
    %c0_63 = arith.constant 0 : index
    %c0_64 = arith.constant 0 : index
    %103 = vector.load %arg4[%c19, %c0_63, %c0_64] : memref<65x4x4xbf16, #tpu.memory_space<vmem>>, vector<1x4x4xbf16>
    %104 = vector.shape_cast %103 : vector<1x4x4xbf16> to vector<4x4xbf16>
    %cst_65 = arith.constant dense<0.000000e+00> : vector<4x256xf32>
    %105 = tpu.matmul %104, %102, %cst_65 {dimension_numbers = #tpu.dot_dimension_numbers<[1], [0], [0], [1], [0, 0, 1, 1], [], []>} : vector<4x4xbf16>, vector<4x256xbf16>, vector<4x256xf32> -> vector<4x256xf32>
    %106 = arith.addf %101, %105 : vector<4x256xf32>
    %107 = vector.extract_strided_slice %5 {offsets = [0, 20], sizes = [4, 256], strides = [1, 1]} : vector<4x384xbf16> to vector<4x256xbf16>
    %c20 = arith.constant 20 : index
    %c0_66 = arith.constant 0 : index
    %c0_67 = arith.constant 0 : index
    %108 = vector.load %arg4[%c20, %c0_66, %c0_67] : memref<65x4x4xbf16, #tpu.memory_space<vmem>>, vector<1x4x4xbf16>
    %109 = vector.shape_cast %108 : vector<1x4x4xbf16> to vector<4x4xbf16>
    %cst_68 = arith.constant dense<0.000000e+00> : vector<4x256xf32>
    %110 = tpu.matmul %109, %107, %cst_68 {dimension_numbers = #tpu.dot_dimension_numbers<[1], [0], [0], [1], [0, 0, 1, 1], [], []>} : vector<4x4xbf16>, vector<4x256xbf16>, vector<4x256xf32> -> vector<4x256xf32>
    %111 = arith.addf %106, %110 : vector<4x256xf32>
    %112 = vector.extract_strided_slice %5 {offsets = [0, 21], sizes = [4, 256], strides = [1, 1]} : vector<4x384xbf16> to vector<4x256xbf16>
    %c21 = arith.constant 21 : index
    %c0_69 = arith.constant 0 : index
    %c0_70 = arith.constant 0 : index
    %113 = vector.load %arg4[%c21, %c0_69, %c0_70] : memref<65x4x4xbf16, #tpu.memory_space<vmem>>, vector<1x4x4xbf16>
    %114 = vector.shape_cast %113 : vector<1x4x4xbf16> to vector<4x4xbf16>
    %cst_71 = arith.constant dense<0.000000e+00> : vector<4x256xf32>
    %115 = tpu.matmul %114, %112, %cst_71 {dimension_numbers = #tpu.dot_dimension_numbers<[1], [0], [0], [1], [0, 0, 1, 1], [], []>} : vector<4x4xbf16>, vector<4x256xbf16>, vector<4x256xf32> -> vector<4x256xf32>
    %116 = arith.addf %111, %115 : vector<4x256xf32>
    %117 = vector.extract_strided_slice %5 {offsets = [0, 22], sizes = [4, 256], strides = [1, 1]} : vector<4x384xbf16> to vector<4x256xbf16>
    %c22 = arith.constant 22 : index
    %c0_72 = arith.constant 0 : index
    %c0_73 = arith.constant 0 : index
    %118 = vector.load %arg4[%c22, %c0_72, %c0_73] : memref<65x4x4xbf16, #tpu.memory_space<vmem>>, vector<1x4x4xbf16>
    %119 = vector.shape_cast %118 : vector<1x4x4xbf16> to vector<4x4xbf16>
    %cst_74 = arith.constant dense<0.000000e+00> : vector<4x256xf32>
    %120 = tpu.matmul %119, %117, %cst_74 {dimension_numbers = #tpu.dot_dimension_numbers<[1], [0], [0], [1], [0, 0, 1, 1], [], []>} : vector<4x4xbf16>, vector<4x256xbf16>, vector<4x256xf32> -> vector<4x256xf32>
    %121 = arith.addf %116, %120 : vector<4x256xf32>
    %122 = vector.extract_strided_slice %5 {offsets = [0, 23], sizes = [4, 256], strides = [1, 1]} : vector<4x384xbf16> to vector<4x256xbf16>
    %c23 = arith.constant 23 : index
    %c0_75 = arith.constant 0 : index
    %c0_76 = arith.constant 0 : index
    %123 = vector.load %arg4[%c23, %c0_75, %c0_76] : memref<65x4x4xbf16, #tpu.memory_space<vmem>>, vector<1x4x4xbf16>
    %124 = vector.shape_cast %123 : vector<1x4x4xbf16> to vector<4x4xbf16>
    %cst_77 = arith.constant dense<0.000000e+00> : vector<4x256xf32>
    %125 = tpu.matmul %124, %122, %cst_77 {dimension_numbers = #tpu.dot_dimension_numbers<[1], [0], [0], [1], [0, 0, 1, 1], [], []>} : vector<4x4xbf16>, vector<4x256xbf16>, vector<4x256xf32> -> vector<4x256xf32>
    %126 = arith.addf %121, %125 : vector<4x256xf32>
    %127 = vector.extract_strided_slice %5 {offsets = [0, 24], sizes = [4, 256], strides = [1, 1]} : vector<4x384xbf16> to vector<4x256xbf16>
    %c24 = arith.constant 24 : index
    %c0_78 = arith.constant 0 : index
    %c0_79 = arith.constant 0 : index
    %128 = vector.load %arg4[%c24, %c0_78, %c0_79] : memref<65x4x4xbf16, #tpu.memory_space<vmem>>, vector<1x4x4xbf16>
    %129 = vector.shape_cast %128 : vector<1x4x4xbf16> to vector<4x4xbf16>
    %cst_80 = arith.constant dense<0.000000e+00> : vector<4x256xf32>
    %130 = tpu.matmul %129, %127, %cst_80 {dimension_numbers = #tpu.dot_dimension_numbers<[1], [0], [0], [1], [0, 0, 1, 1], [], []>} : vector<4x4xbf16>, vector<4x256xbf16>, vector<4x256xf32> -> vector<4x256xf32>
    %131 = arith.addf %126, %130 : vector<4x256xf32>
    %132 = vector.extract_strided_slice %5 {offsets = [0, 25], sizes = [4, 256], strides = [1, 1]} : vector<4x384xbf16> to vector<4x256xbf16>
    %c25 = arith.constant 25 : index
    %c0_81 = arith.constant 0 : index
    %c0_82 = arith.constant 0 : index
    %133 = vector.load %arg4[%c25, %c0_81, %c0_82] : memref<65x4x4xbf16, #tpu.memory_space<vmem>>, vector<1x4x4xbf16>
    %134 = vector.shape_cast %133 : vector<1x4x4xbf16> to vector<4x4xbf16>
    %cst_83 = arith.constant dense<0.000000e+00> : vector<4x256xf32>
    %135 = tpu.matmul %134, %132, %cst_83 {dimension_numbers = #tpu.dot_dimension_numbers<[1], [0], [0], [1], [0, 0, 1, 1], [], []>} : vector<4x4xbf16>, vector<4x256xbf16>, vector<4x256xf32> -> vector<4x256xf32>
    %136 = arith.addf %131, %135 : vector<4x256xf32>
    %137 = vector.extract_strided_slice %5 {offsets = [0, 26], sizes = [4, 256], strides = [1, 1]} : vector<4x384xbf16> to vector<4x256xbf16>
    %c26 = arith.constant 26 : index
    %c0_84 = arith.constant 0 : index
    %c0_85 = arith.constant 0 : index
    %138 = vector.load %arg4[%c26, %c0_84, %c0_85] : memref<65x4x4xbf16, #tpu.memory_space<vmem>>, vector<1x4x4xbf16>
    %139 = vector.shape_cast %138 : vector<1x4x4xbf16> to vector<4x4xbf16>
    %cst_86 = arith.constant dense<0.000000e+00> : vector<4x256xf32>
    %140 = tpu.matmul %139, %137, %cst_86 {dimension_numbers = #tpu.dot_dimension_numbers<[1], [0], [0], [1], [0, 0, 1, 1], [], []>} : vector<4x4xbf16>, vector<4x256xbf16>, vector<4x256xf32> -> vector<4x256xf32>
    %141 = arith.addf %136, %140 : vector<4x256xf32>
    %142 = vector.extract_strided_slice %5 {offsets = [0, 27], sizes = [4, 256], strides = [1, 1]} : vector<4x384xbf16> to vector<4x256xbf16>
    %c27 = arith.constant 27 : index
    %c0_87 = arith.constant 0 : index
    %c0_88 = arith.constant 0 : index
    %143 = vector.load %arg4[%c27, %c0_87, %c0_88] : memref<65x4x4xbf16, #tpu.memory_space<vmem>>, vector<1x4x4xbf16>
    %144 = vector.shape_cast %143 : vector<1x4x4xbf16> to vector<4x4xbf16>
    %cst_89 = arith.constant dense<0.000000e+00> : vector<4x256xf32>
    %145 = tpu.matmul %144, %142, %cst_89 {dimension_numbers = #tpu.dot_dimension_numbers<[1], [0], [0], [1], [0, 0, 1, 1], [], []>} : vector<4x4xbf16>, vector<4x256xbf16>, vector<4x256xf32> -> vector<4x256xf32>
    %146 = arith.addf %141, %145 : vector<4x256xf32>
    %147 = vector.extract_strided_slice %5 {offsets = [0, 28], sizes = [4, 256], strides = [1, 1]} : vector<4x384xbf16> to vector<4x256xbf16>
    %c28 = arith.constant 28 : index
    %c0_90 = arith.constant 0 : index
    %c0_91 = arith.constant 0 : index
    %148 = vector.load %arg4[%c28, %c0_90, %c0_91] : memref<65x4x4xbf16, #tpu.memory_space<vmem>>, vector<1x4x4xbf16>
    %149 = vector.shape_cast %148 : vector<1x4x4xbf16> to vector<4x4xbf16>
    %cst_92 = arith.constant dense<0.000000e+00> : vector<4x256xf32>
    %150 = tpu.matmul %149, %147, %cst_92 {dimension_numbers = #tpu.dot_dimension_numbers<[1], [0], [0], [1], [0, 0, 1, 1], [], []>} : vector<4x4xbf16>, vector<4x256xbf16>, vector<4x256xf32> -> vector<4x256xf32>
    %151 = arith.addf %146, %150 : vector<4x256xf32>
    %152 = vector.extract_strided_slice %5 {offsets = [0, 29], sizes = [4, 256], strides = [1, 1]} : vector<4x384xbf16> to vector<4x256xbf16>
    %c29 = arith.constant 29 : index
    %c0_93 = arith.constant 0 : index
    %c0_94 = arith.constant 0 : index
    %153 = vector.load %arg4[%c29, %c0_93, %c0_94] : memref<65x4x4xbf16, #tpu.memory_space<vmem>>, vector<1x4x4xbf16>
    %154 = vector.shape_cast %153 : vector<1x4x4xbf16> to vector<4x4xbf16>
    %cst_95 = arith.constant dense<0.000000e+00> : vector<4x256xf32>
    %155 = tpu.matmul %154, %152, %cst_95 {dimension_numbers = #tpu.dot_dimension_numbers<[1], [0], [0], [1], [0, 0, 1, 1], [], []>} : vector<4x4xbf16>, vector<4x256xbf16>, vector<4x256xf32> -> vector<4x256xf32>
    %156 = arith.addf %151, %155 : vector<4x256xf32>
    %157 = vector.extract_strided_slice %5 {offsets = [0, 30], sizes = [4, 256], strides = [1, 1]} : vector<4x384xbf16> to vector<4x256xbf16>
    %c30 = arith.constant 30 : index
    %c0_96 = arith.constant 0 : index
    %c0_97 = arith.constant 0 : index
    %158 = vector.load %arg4[%c30, %c0_96, %c0_97] : memref<65x4x4xbf16, #tpu.memory_space<vmem>>, vector<1x4x4xbf16>
    %159 = vector.shape_cast %158 : vector<1x4x4xbf16> to vector<4x4xbf16>
    %cst_98 = arith.constant dense<0.000000e+00> : vector<4x256xf32>
    %160 = tpu.matmul %159, %157, %cst_98 {dimension_numbers = #tpu.dot_dimension_numbers<[1], [0], [0], [1], [0, 0, 1, 1], [], []>} : vector<4x4xbf16>, vector<4x256xbf16>, vector<4x256xf32> -> vector<4x256xf32>
    %161 = arith.addf %156, %160 : vector<4x256xf32>
    %162 = vector.extract_strided_slice %5 {offsets = [0, 31], sizes = [4, 256], strides = [1, 1]} : vector<4x384xbf16> to vector<4x256xbf16>
    %c31 = arith.constant 31 : index
    %c0_99 = arith.constant 0 : index
    %c0_100 = arith.constant 0 : index
    %163 = vector.load %arg4[%c31, %c0_99, %c0_100] : memref<65x4x4xbf16, #tpu.memory_space<vmem>>, vector<1x4x4xbf16>
    %164 = vector.shape_cast %163 : vector<1x4x4xbf16> to vector<4x4xbf16>
    %cst_101 = arith.constant dense<0.000000e+00> : vector<4x256xf32>
    %165 = tpu.matmul %164, %162, %cst_101 {dimension_numbers = #tpu.dot_dimension_numbers<[1], [0], [0], [1], [0, 0, 1, 1], [], []>} : vector<4x4xbf16>, vector<4x256xbf16>, vector<4x256xf32> -> vector<4x256xf32>
    %166 = arith.addf %161, %165 : vector<4x256xf32>
    %167 = vector.extract_strided_slice %5 {offsets = [0, 32], sizes = [4, 256], strides = [1, 1]} : vector<4x384xbf16> to vector<4x256xbf16>
    %c32 = arith.constant 32 : index
    %c0_102 = arith.constant 0 : index
    %c0_103 = arith.constant 0 : index
    %168 = vector.load %arg4[%c32, %c0_102, %c0_103] : memref<65x4x4xbf16, #tpu.memory_space<vmem>>, vector<1x4x4xbf16>
    %169 = vector.shape_cast %168 : vector<1x4x4xbf16> to vector<4x4xbf16>
    %cst_104 = arith.constant dense<0.000000e+00> : vector<4x256xf32>
    %170 = tpu.matmul %169, %167, %cst_104 {dimension_numbers = #tpu.dot_dimension_numbers<[1], [0], [0], [1], [0, 0, 1, 1], [], []>} : vector<4x4xbf16>, vector<4x256xbf16>, vector<4x256xf32> -> vector<4x256xf32>
    %171 = arith.addf %166, %170 : vector<4x256xf32>
    %172 = vector.extract_strided_slice %5 {offsets = [0, 33], sizes = [4, 256], strides = [1, 1]} : vector<4x384xbf16> to vector<4x256xbf16>
    %c33 = arith.constant 33 : index
    %c0_105 = arith.constant 0 : index
    %c0_106 = arith.constant 0 : index
    %173 = vector.load %arg4[%c33, %c0_105, %c0_106] : memref<65x4x4xbf16, #tpu.memory_space<vmem>>, vector<1x4x4xbf16>
    %174 = vector.shape_cast %173 : vector<1x4x4xbf16> to vector<4x4xbf16>
    %cst_107 = arith.constant dense<0.000000e+00> : vector<4x256xf32>
    %175 = tpu.matmul %174, %172, %cst_107 {dimension_numbers = #tpu.dot_dimension_numbers<[1], [0], [0], [1], [0, 0, 1, 1], [], []>} : vector<4x4xbf16>, vector<4x256xbf16>, vector<4x256xf32> -> vector<4x256xf32>
    %176 = arith.addf %171, %175 : vector<4x256xf32>
    %177 = vector.extract_strided_slice %5 {offsets = [0, 34], sizes = [4, 256], strides = [1, 1]} : vector<4x384xbf16> to vector<4x256xbf16>
    %c34 = arith.constant 34 : index
    %c0_108 = arith.constant 0 : index
    %c0_109 = arith.constant 0 : index
    %178 = vector.load %arg4[%c34, %c0_108, %c0_109] : memref<65x4x4xbf16, #tpu.memory_space<vmem>>, vector<1x4x4xbf16>
    %179 = vector.shape_cast %178 : vector<1x4x4xbf16> to vector<4x4xbf16>
    %cst_110 = arith.constant dense<0.000000e+00> : vector<4x256xf32>
    %180 = tpu.matmul %179, %177, %cst_110 {dimension_numbers = #tpu.dot_dimension_numbers<[1], [0], [0], [1], [0, 0, 1, 1], [], []>} : vector<4x4xbf16>, vector<4x256xbf16>, vector<4x256xf32> -> vector<4x256xf32>
    %181 = arith.addf %176, %180 : vector<4x256xf32>
    %182 = vector.extract_strided_slice %5 {offsets = [0, 35], sizes = [4, 256], strides = [1, 1]} : vector<4x384xbf16> to vector<4x256xbf16>
    %c35 = arith.constant 35 : index
    %c0_111 = arith.constant 0 : index
    %c0_112 = arith.constant 0 : index
    %183 = vector.load %arg4[%c35, %c0_111, %c0_112] : memref<65x4x4xbf16, #tpu.memory_space<vmem>>, vector<1x4x4xbf16>
    %184 = vector.shape_cast %183 : vector<1x4x4xbf16> to vector<4x4xbf16>
    %cst_113 = arith.constant dense<0.000000e+00> : vector<4x256xf32>
    %185 = tpu.matmul %184, %182, %cst_113 {dimension_numbers = #tpu.dot_dimension_numbers<[1], [0], [0], [1], [0, 0, 1, 1], [], []>} : vector<4x4xbf16>, vector<4x256xbf16>, vector<4x256xf32> -> vector<4x256xf32>
    %186 = arith.addf %181, %185 : vector<4x256xf32>
    %187 = vector.extract_strided_slice %5 {offsets = [0, 36], sizes = [4, 256], strides = [1, 1]} : vector<4x384xbf16> to vector<4x256xbf16>
    %c36 = arith.constant 36 : index
    %c0_114 = arith.constant 0 : index
    %c0_115 = arith.constant 0 : index
    %188 = vector.load %arg4[%c36, %c0_114, %c0_115] : memref<65x4x4xbf16, #tpu.memory_space<vmem>>, vector<1x4x4xbf16>
    %189 = vector.shape_cast %188 : vector<1x4x4xbf16> to vector<4x4xbf16>
    %cst_116 = arith.constant dense<0.000000e+00> : vector<4x256xf32>
    %190 = tpu.matmul %189, %187, %cst_116 {dimension_numbers = #tpu.dot_dimension_numbers<[1], [0], [0], [1], [0, 0, 1, 1], [], []>} : vector<4x4xbf16>, vector<4x256xbf16>, vector<4x256xf32> -> vector<4x256xf32>
    %191 = arith.addf %186, %190 : vector<4x256xf32>
    %192 = vector.extract_strided_slice %5 {offsets = [0, 37], sizes = [4, 256], strides = [1, 1]} : vector<4x384xbf16> to vector<4x256xbf16>
    %c37 = arith.constant 37 : index
    %c0_117 = arith.constant 0 : index
    %c0_118 = arith.constant 0 : index
    %193 = vector.load %arg4[%c37, %c0_117, %c0_118] : memref<65x4x4xbf16, #tpu.memory_space<vmem>>, vector<1x4x4xbf16>
    %194 = vector.shape_cast %193 : vector<1x4x4xbf16> to vector<4x4xbf16>
    %cst_119 = arith.constant dense<0.000000e+00> : vector<4x256xf32>
    %195 = tpu.matmul %194, %192, %cst_119 {dimension_numbers = #tpu.dot_dimension_numbers<[1], [0], [0], [1], [0, 0, 1, 1], [], []>} : vector<4x4xbf16>, vector<4x256xbf16>, vector<4x256xf32> -> vector<4x256xf32>
    %196 = arith.addf %191, %195 : vector<4x256xf32>
    %197 = vector.extract_strided_slice %5 {offsets = [0, 38], sizes = [4, 256], strides = [1, 1]} : vector<4x384xbf16> to vector<4x256xbf16>
    %c38 = arith.constant 38 : index
    %c0_120 = arith.constant 0 : index
    %c0_121 = arith.constant 0 : index
    %198 = vector.load %arg4[%c38, %c0_120, %c0_121] : memref<65x4x4xbf16, #tpu.memory_space<vmem>>, vector<1x4x4xbf16>
    %199 = vector.shape_cast %198 : vector<1x4x4xbf16> to vector<4x4xbf16>
    %cst_122 = arith.constant dense<0.000000e+00> : vector<4x256xf32>
    %200 = tpu.matmul %199, %197, %cst_122 {dimension_numbers = #tpu.dot_dimension_numbers<[1], [0], [0], [1], [0, 0, 1, 1], [], []>} : vector<4x4xbf16>, vector<4x256xbf16>, vector<4x256xf32> -> vector<4x256xf32>
    %201 = arith.addf %196, %200 : vector<4x256xf32>
    %202 = vector.extract_strided_slice %5 {offsets = [0, 39], sizes = [4, 256], strides = [1, 1]} : vector<4x384xbf16> to vector<4x256xbf16>
    %c39 = arith.constant 39 : index
    %c0_123 = arith.constant 0 : index
    %c0_124 = arith.constant 0 : index
    %203 = vector.load %arg4[%c39, %c0_123, %c0_124] : memref<65x4x4xbf16, #tpu.memory_space<vmem>>, vector<1x4x4xbf16>
    %204 = vector.shape_cast %203 : vector<1x4x4xbf16> to vector<4x4xbf16>
    %cst_125 = arith.constant dense<0.000000e+00> : vector<4x256xf32>
    %205 = tpu.matmul %204, %202, %cst_125 {dimension_numbers = #tpu.dot_dimension_numbers<[1], [0], [0], [1], [0, 0, 1, 1], [], []>} : vector<4x4xbf16>, vector<4x256xbf16>, vector<4x256xf32> -> vector<4x256xf32>
    %206 = arith.addf %201, %205 : vector<4x256xf32>
    %207 = vector.extract_strided_slice %5 {offsets = [0, 40], sizes = [4, 256], strides = [1, 1]} : vector<4x384xbf16> to vector<4x256xbf16>
    %c40 = arith.constant 40 : index
    %c0_126 = arith.constant 0 : index
    %c0_127 = arith.constant 0 : index
    %208 = vector.load %arg4[%c40, %c0_126, %c0_127] : memref<65x4x4xbf16, #tpu.memory_space<vmem>>, vector<1x4x4xbf16>
    %209 = vector.shape_cast %208 : vector<1x4x4xbf16> to vector<4x4xbf16>
    %cst_128 = arith.constant dense<0.000000e+00> : vector<4x256xf32>
    %210 = tpu.matmul %209, %207, %cst_128 {dimension_numbers = #tpu.dot_dimension_numbers<[1], [0], [0], [1], [0, 0, 1, 1], [], []>} : vector<4x4xbf16>, vector<4x256xbf16>, vector<4x256xf32> -> vector<4x256xf32>
    %211 = arith.addf %206, %210 : vector<4x256xf32>
    %212 = vector.extract_strided_slice %5 {offsets = [0, 41], sizes = [4, 256], strides = [1, 1]} : vector<4x384xbf16> to vector<4x256xbf16>
    %c41 = arith.constant 41 : index
    %c0_129 = arith.constant 0 : index
    %c0_130 = arith.constant 0 : index
    %213 = vector.load %arg4[%c41, %c0_129, %c0_130] : memref<65x4x4xbf16, #tpu.memory_space<vmem>>, vector<1x4x4xbf16>
    %214 = vector.shape_cast %213 : vector<1x4x4xbf16> to vector<4x4xbf16>
    %cst_131 = arith.constant dense<0.000000e+00> : vector<4x256xf32>
    %215 = tpu.matmul %214, %212, %cst_131 {dimension_numbers = #tpu.dot_dimension_numbers<[1], [0], [0], [1], [0, 0, 1, 1], [], []>} : vector<4x4xbf16>, vector<4x256xbf16>, vector<4x256xf32> -> vector<4x256xf32>
    %216 = arith.addf %211, %215 : vector<4x256xf32>
    %217 = vector.extract_strided_slice %5 {offsets = [0, 42], sizes = [4, 256], strides = [1, 1]} : vector<4x384xbf16> to vector<4x256xbf16>
    %c42 = arith.constant 42 : index
    %c0_132 = arith.constant 0 : index
    %c0_133 = arith.constant 0 : index
    %218 = vector.load %arg4[%c42, %c0_132, %c0_133] : memref<65x4x4xbf16, #tpu.memory_space<vmem>>, vector<1x4x4xbf16>
    %219 = vector.shape_cast %218 : vector<1x4x4xbf16> to vector<4x4xbf16>
    %cst_134 = arith.constant dense<0.000000e+00> : vector<4x256xf32>
    %220 = tpu.matmul %219, %217, %cst_134 {dimension_numbers = #tpu.dot_dimension_numbers<[1], [0], [0], [1], [0, 0, 1, 1], [], []>} : vector<4x4xbf16>, vector<4x256xbf16>, vector<4x256xf32> -> vector<4x256xf32>
    %221 = arith.addf %216, %220 : vector<4x256xf32>
    %222 = vector.extract_strided_slice %5 {offsets = [0, 43], sizes = [4, 256], strides = [1, 1]} : vector<4x384xbf16> to vector<4x256xbf16>
    %c43 = arith.constant 43 : index
    %c0_135 = arith.constant 0 : index
    %c0_136 = arith.constant 0 : index
    %223 = vector.load %arg4[%c43, %c0_135, %c0_136] : memref<65x4x4xbf16, #tpu.memory_space<vmem>>, vector<1x4x4xbf16>
    %224 = vector.shape_cast %223 : vector<1x4x4xbf16> to vector<4x4xbf16>
    %cst_137 = arith.constant dense<0.000000e+00> : vector<4x256xf32>
    %225 = tpu.matmul %224, %222, %cst_137 {dimension_numbers = #tpu.dot_dimension_numbers<[1], [0], [0], [1], [0, 0, 1, 1], [], []>} : vector<4x4xbf16>, vector<4x256xbf16>, vector<4x256xf32> -> vector<4x256xf32>
    %226 = arith.addf %221, %225 : vector<4x256xf32>
    %227 = vector.extract_strided_slice %5 {offsets = [0, 44], sizes = [4, 256], strides = [1, 1]} : vector<4x384xbf16> to vector<4x256xbf16>
    %c44 = arith.constant 44 : index
    %c0_138 = arith.constant 0 : index
    %c0_139 = arith.constant 0 : index
    %228 = vector.load %arg4[%c44, %c0_138, %c0_139] : memref<65x4x4xbf16, #tpu.memory_space<vmem>>, vector<1x4x4xbf16>
    %229 = vector.shape_cast %228 : vector<1x4x4xbf16> to vector<4x4xbf16>
    %cst_140 = arith.constant dense<0.000000e+00> : vector<4x256xf32>
    %230 = tpu.matmul %229, %227, %cst_140 {dimension_numbers = #tpu.dot_dimension_numbers<[1], [0], [0], [1], [0, 0, 1, 1], [], []>} : vector<4x4xbf16>, vector<4x256xbf16>, vector<4x256xf32> -> vector<4x256xf32>
    %231 = arith.addf %226, %230 : vector<4x256xf32>
    %232 = vector.extract_strided_slice %5 {offsets = [0, 45], sizes = [4, 256], strides = [1, 1]} : vector<4x384xbf16> to vector<4x256xbf16>
    %c45 = arith.constant 45 : index
    %c0_141 = arith.constant 0 : index
    %c0_142 = arith.constant 0 : index
    %233 = vector.load %arg4[%c45, %c0_141, %c0_142] : memref<65x4x4xbf16, #tpu.memory_space<vmem>>, vector<1x4x4xbf16>
    %234 = vector.shape_cast %233 : vector<1x4x4xbf16> to vector<4x4xbf16>
    %cst_143 = arith.constant dense<0.000000e+00> : vector<4x256xf32>
    %235 = tpu.matmul %234, %232, %cst_143 {dimension_numbers = #tpu.dot_dimension_numbers<[1], [0], [0], [1], [0, 0, 1, 1], [], []>} : vector<4x4xbf16>, vector<4x256xbf16>, vector<4x256xf32> -> vector<4x256xf32>
    %236 = arith.addf %231, %235 : vector<4x256xf32>
    %237 = vector.extract_strided_slice %5 {offsets = [0, 46], sizes = [4, 256], strides = [1, 1]} : vector<4x384xbf16> to vector<4x256xbf16>
    %c46 = arith.constant 46 : index
    %c0_144 = arith.constant 0 : index
    %c0_145 = arith.constant 0 : index
    %238 = vector.load %arg4[%c46, %c0_144, %c0_145] : memref<65x4x4xbf16, #tpu.memory_space<vmem>>, vector<1x4x4xbf16>
    %239 = vector.shape_cast %238 : vector<1x4x4xbf16> to vector<4x4xbf16>
    %cst_146 = arith.constant dense<0.000000e+00> : vector<4x256xf32>
    %240 = tpu.matmul %239, %237, %cst_146 {dimension_numbers = #tpu.dot_dimension_numbers<[1], [0], [0], [1], [0, 0, 1, 1], [], []>} : vector<4x4xbf16>, vector<4x256xbf16>, vector<4x256xf32> -> vector<4x256xf32>
    %241 = arith.addf %236, %240 : vector<4x256xf32>
    %242 = vector.extract_strided_slice %5 {offsets = [0, 47], sizes = [4, 256], strides = [1, 1]} : vector<4x384xbf16> to vector<4x256xbf16>
    %c47 = arith.constant 47 : index
    %c0_147 = arith.constant 0 : index
    %c0_148 = arith.constant 0 : index
    %243 = vector.load %arg4[%c47, %c0_147, %c0_148] : memref<65x4x4xbf16, #tpu.memory_space<vmem>>, vector<1x4x4xbf16>
    %244 = vector.shape_cast %243 : vector<1x4x4xbf16> to vector<4x4xbf16>
    %cst_149 = arith.constant dense<0.000000e+00> : vector<4x256xf32>
    %245 = tpu.matmul %244, %242, %cst_149 {dimension_numbers = #tpu.dot_dimension_numbers<[1], [0], [0], [1], [0, 0, 1, 1], [], []>} : vector<4x4xbf16>, vector<4x256xbf16>, vector<4x256xf32> -> vector<4x256xf32>
    %246 = arith.addf %241, %245 : vector<4x256xf32>
    %247 = vector.extract_strided_slice %5 {offsets = [0, 48], sizes = [4, 256], strides = [1, 1]} : vector<4x384xbf16> to vector<4x256xbf16>
    %c48 = arith.constant 48 : index
    %c0_150 = arith.constant 0 : index
    %c0_151 = arith.constant 0 : index
    %248 = vector.load %arg4[%c48, %c0_150, %c0_151] : memref<65x4x4xbf16, #tpu.memory_space<vmem>>, vector<1x4x4xbf16>
    %249 = vector.shape_cast %248 : vector<1x4x4xbf16> to vector<4x4xbf16>
    %cst_152 = arith.constant dense<0.000000e+00> : vector<4x256xf32>
    %250 = tpu.matmul %249, %247, %cst_152 {dimension_numbers = #tpu.dot_dimension_numbers<[1], [0], [0], [1], [0, 0, 1, 1], [], []>} : vector<4x4xbf16>, vector<4x256xbf16>, vector<4x256xf32> -> vector<4x256xf32>
    %251 = arith.addf %246, %250 : vector<4x256xf32>
    %252 = vector.extract_strided_slice %5 {offsets = [0, 49], sizes = [4, 256], strides = [1, 1]} : vector<4x384xbf16> to vector<4x256xbf16>
    %c49 = arith.constant 49 : index
    %c0_153 = arith.constant 0 : index
    %c0_154 = arith.constant 0 : index
    %253 = vector.load %arg4[%c49, %c0_153, %c0_154] : memref<65x4x4xbf16, #tpu.memory_space<vmem>>, vector<1x4x4xbf16>
    %254 = vector.shape_cast %253 : vector<1x4x4xbf16> to vector<4x4xbf16>
    %cst_155 = arith.constant dense<0.000000e+00> : vector<4x256xf32>
    %255 = tpu.matmul %254, %252, %cst_155 {dimension_numbers = #tpu.dot_dimension_numbers<[1], [0], [0], [1], [0, 0, 1, 1], [], []>} : vector<4x4xbf16>, vector<4x256xbf16>, vector<4x256xf32> -> vector<4x256xf32>
    %256 = arith.addf %251, %255 : vector<4x256xf32>
    %257 = vector.extract_strided_slice %5 {offsets = [0, 50], sizes = [4, 256], strides = [1, 1]} : vector<4x384xbf16> to vector<4x256xbf16>
    %c50 = arith.constant 50 : index
    %c0_156 = arith.constant 0 : index
    %c0_157 = arith.constant 0 : index
    %258 = vector.load %arg4[%c50, %c0_156, %c0_157] : memref<65x4x4xbf16, #tpu.memory_space<vmem>>, vector<1x4x4xbf16>
    %259 = vector.shape_cast %258 : vector<1x4x4xbf16> to vector<4x4xbf16>
    %cst_158 = arith.constant dense<0.000000e+00> : vector<4x256xf32>
    %260 = tpu.matmul %259, %257, %cst_158 {dimension_numbers = #tpu.dot_dimension_numbers<[1], [0], [0], [1], [0, 0, 1, 1], [], []>} : vector<4x4xbf16>, vector<4x256xbf16>, vector<4x256xf32> -> vector<4x256xf32>
    %261 = arith.addf %256, %260 : vector<4x256xf32>
    %262 = vector.extract_strided_slice %5 {offsets = [0, 51], sizes = [4, 256], strides = [1, 1]} : vector<4x384xbf16> to vector<4x256xbf16>
    %c51 = arith.constant 51 : index
    %c0_159 = arith.constant 0 : index
    %c0_160 = arith.constant 0 : index
    %263 = vector.load %arg4[%c51, %c0_159, %c0_160] : memref<65x4x4xbf16, #tpu.memory_space<vmem>>, vector<1x4x4xbf16>
    %264 = vector.shape_cast %263 : vector<1x4x4xbf16> to vector<4x4xbf16>
    %cst_161 = arith.constant dense<0.000000e+00> : vector<4x256xf32>
    %265 = tpu.matmul %264, %262, %cst_161 {dimension_numbers = #tpu.dot_dimension_numbers<[1], [0], [0], [1], [0, 0, 1, 1], [], []>} : vector<4x4xbf16>, vector<4x256xbf16>, vector<4x256xf32> -> vector<4x256xf32>
    %266 = arith.addf %261, %265 : vector<4x256xf32>
    %267 = vector.extract_strided_slice %5 {offsets = [0, 52], sizes = [4, 256], strides = [1, 1]} : vector<4x384xbf16> to vector<4x256xbf16>
    %c52 = arith.constant 52 : index
    %c0_162 = arith.constant 0 : index
    %c0_163 = arith.constant 0 : index
    %268 = vector.load %arg4[%c52, %c0_162, %c0_163] : memref<65x4x4xbf16, #tpu.memory_space<vmem>>, vector<1x4x4xbf16>
    %269 = vector.shape_cast %268 : vector<1x4x4xbf16> to vector<4x4xbf16>
    %cst_164 = arith.constant dense<0.000000e+00> : vector<4x256xf32>
    %270 = tpu.matmul %269, %267, %cst_164 {dimension_numbers = #tpu.dot_dimension_numbers<[1], [0], [0], [1], [0, 0, 1, 1], [], []>} : vector<4x4xbf16>, vector<4x256xbf16>, vector<4x256xf32> -> vector<4x256xf32>
    %271 = arith.addf %266, %270 : vector<4x256xf32>
    %272 = vector.extract_strided_slice %5 {offsets = [0, 53], sizes = [4, 256], strides = [1, 1]} : vector<4x384xbf16> to vector<4x256xbf16>
    %c53 = arith.constant 53 : index
    %c0_165 = arith.constant 0 : index
    %c0_166 = arith.constant 0 : index
    %273 = vector.load %arg4[%c53, %c0_165, %c0_166] : memref<65x4x4xbf16, #tpu.memory_space<vmem>>, vector<1x4x4xbf16>
    %274 = vector.shape_cast %273 : vector<1x4x4xbf16> to vector<4x4xbf16>
    %cst_167 = arith.constant dense<0.000000e+00> : vector<4x256xf32>
    %275 = tpu.matmul %274, %272, %cst_167 {dimension_numbers = #tpu.dot_dimension_numbers<[1], [0], [0], [1], [0, 0, 1, 1], [], []>} : vector<4x4xbf16>, vector<4x256xbf16>, vector<4x256xf32> -> vector<4x256xf32>
    %276 = arith.addf %271, %275 : vector<4x256xf32>
    %277 = vector.extract_strided_slice %5 {offsets = [0, 54], sizes = [4, 256], strides = [1, 1]} : vector<4x384xbf16> to vector<4x256xbf16>
    %c54 = arith.constant 54 : index
    %c0_168 = arith.constant 0 : index
    %c0_169 = arith.constant 0 : index
    %278 = vector.load %arg4[%c54, %c0_168, %c0_169] : memref<65x4x4xbf16, #tpu.memory_space<vmem>>, vector<1x4x4xbf16>
    %279 = vector.shape_cast %278 : vector<1x4x4xbf16> to vector<4x4xbf16>
    %cst_170 = arith.constant dense<0.000000e+00> : vector<4x256xf32>
    %280 = tpu.matmul %279, %277, %cst_170 {dimension_numbers = #tpu.dot_dimension_numbers<[1], [0], [0], [1], [0, 0, 1, 1], [], []>} : vector<4x4xbf16>, vector<4x256xbf16>, vector<4x256xf32> -> vector<4x256xf32>
    %281 = arith.addf %276, %280 : vector<4x256xf32>
    %282 = vector.extract_strided_slice %5 {offsets = [0, 55], sizes = [4, 256], strides = [1, 1]} : vector<4x384xbf16> to vector<4x256xbf16>
    %c55 = arith.constant 55 : index
    %c0_171 = arith.constant 0 : index
    %c0_172 = arith.constant 0 : index
    %283 = vector.load %arg4[%c55, %c0_171, %c0_172] : memref<65x4x4xbf16, #tpu.memory_space<vmem>>, vector<1x4x4xbf16>
    %284 = vector.shape_cast %283 : vector<1x4x4xbf16> to vector<4x4xbf16>
    %cst_173 = arith.constant dense<0.000000e+00> : vector<4x256xf32>
    %285 = tpu.matmul %284, %282, %cst_173 {dimension_numbers = #tpu.dot_dimension_numbers<[1], [0], [0], [1], [0, 0, 1, 1], [], []>} : vector<4x4xbf16>, vector<4x256xbf16>, vector<4x256xf32> -> vector<4x256xf32>
    %286 = arith.addf %281, %285 : vector<4x256xf32>
    %287 = vector.extract_strided_slice %5 {offsets = [0, 56], sizes = [4, 256], strides = [1, 1]} : vector<4x384xbf16> to vector<4x256xbf16>
    %c56 = arith.constant 56 : index
    %c0_174 = arith.constant 0 : index
    %c0_175 = arith.constant 0 : index
    %288 = vector.load %arg4[%c56, %c0_174, %c0_175] : memref<65x4x4xbf16, #tpu.memory_space<vmem>>, vector<1x4x4xbf16>
    %289 = vector.shape_cast %288 : vector<1x4x4xbf16> to vector<4x4xbf16>
    %cst_176 = arith.constant dense<0.000000e+00> : vector<4x256xf32>
    %290 = tpu.matmul %289, %287, %cst_176 {dimension_numbers = #tpu.dot_dimension_numbers<[1], [0], [0], [1], [0, 0, 1, 1], [], []>} : vector<4x4xbf16>, vector<4x256xbf16>, vector<4x256xf32> -> vector<4x256xf32>
    %291 = arith.addf %286, %290 : vector<4x256xf32>
    %292 = vector.extract_strided_slice %5 {offsets = [0, 57], sizes = [4, 256], strides = [1, 1]} : vector<4x384xbf16> to vector<4x256xbf16>
    %c57 = arith.constant 57 : index
    %c0_177 = arith.constant 0 : index
    %c0_178 = arith.constant 0 : index
    %293 = vector.load %arg4[%c57, %c0_177, %c0_178] : memref<65x4x4xbf16, #tpu.memory_space<vmem>>, vector<1x4x4xbf16>
    %294 = vector.shape_cast %293 : vector<1x4x4xbf16> to vector<4x4xbf16>
    %cst_179 = arith.constant dense<0.000000e+00> : vector<4x256xf32>
    %295 = tpu.matmul %294, %292, %cst_179 {dimension_numbers = #tpu.dot_dimension_numbers<[1], [0], [0], [1], [0, 0, 1, 1], [], []>} : vector<4x4xbf16>, vector<4x256xbf16>, vector<4x256xf32> -> vector<4x256xf32>
    %296 = arith.addf %291, %295 : vector<4x256xf32>
    %297 = vector.extract_strided_slice %5 {offsets = [0, 58], sizes = [4, 256], strides = [1, 1]} : vector<4x384xbf16> to vector<4x256xbf16>
    %c58 = arith.constant 58 : index
    %c0_180 = arith.constant 0 : index
    %c0_181 = arith.constant 0 : index
    %298 = vector.load %arg4[%c58, %c0_180, %c0_181] : memref<65x4x4xbf16, #tpu.memory_space<vmem>>, vector<1x4x4xbf16>
    %299 = vector.shape_cast %298 : vector<1x4x4xbf16> to vector<4x4xbf16>
    %cst_182 = arith.constant dense<0.000000e+00> : vector<4x256xf32>
    %300 = tpu.matmul %299, %297, %cst_182 {dimension_numbers = #tpu.dot_dimension_numbers<[1], [0], [0], [1], [0, 0, 1, 1], [], []>} : vector<4x4xbf16>, vector<4x256xbf16>, vector<4x256xf32> -> vector<4x256xf32>
    %301 = arith.addf %296, %300 : vector<4x256xf32>
    %302 = vector.extract_strided_slice %5 {offsets = [0, 59], sizes = [4, 256], strides = [1, 1]} : vector<4x384xbf16> to vector<4x256xbf16>
    %c59 = arith.constant 59 : index
    %c0_183 = arith.constant 0 : index
    %c0_184 = arith.constant 0 : index
    %303 = vector.load %arg4[%c59, %c0_183, %c0_184] : memref<65x4x4xbf16, #tpu.memory_space<vmem>>, vector<1x4x4xbf16>
    %304 = vector.shape_cast %303 : vector<1x4x4xbf16> to vector<4x4xbf16>
    %cst_185 = arith.constant dense<0.000000e+00> : vector<4x256xf32>
    %305 = tpu.matmul %304, %302, %cst_185 {dimension_numbers = #tpu.dot_dimension_numbers<[1], [0], [0], [1], [0, 0, 1, 1], [], []>} : vector<4x4xbf16>, vector<4x256xbf16>, vector<4x256xf32> -> vector<4x256xf32>
    %306 = arith.addf %301, %305 : vector<4x256xf32>
    %307 = vector.extract_strided_slice %5 {offsets = [0, 60], sizes = [4, 256], strides = [1, 1]} : vector<4x384xbf16> to vector<4x256xbf16>
    %c60 = arith.constant 60 : index
    %c0_186 = arith.constant 0 : index
    %c0_187 = arith.constant 0 : index
    %308 = vector.load %arg4[%c60, %c0_186, %c0_187] : memref<65x4x4xbf16, #tpu.memory_space<vmem>>, vector<1x4x4xbf16>
    %309 = vector.shape_cast %308 : vector<1x4x4xbf16> to vector<4x4xbf16>
    %cst_188 = arith.constant dense<0.000000e+00> : vector<4x256xf32>
    %310 = tpu.matmul %309, %307, %cst_188 {dimension_numbers = #tpu.dot_dimension_numbers<[1], [0], [0], [1], [0, 0, 1, 1], [], []>} : vector<4x4xbf16>, vector<4x256xbf16>, vector<4x256xf32> -> vector<4x256xf32>
    %311 = arith.addf %306, %310 : vector<4x256xf32>
    %312 = vector.extract_strided_slice %5 {offsets = [0, 61], sizes = [4, 256], strides = [1, 1]} : vector<4x384xbf16> to vector<4x256xbf16>
    %c61 = arith.constant 61 : index
    %c0_189 = arith.constant 0 : index
    %c0_190 = arith.constant 0 : index
    %313 = vector.load %arg4[%c61, %c0_189, %c0_190] : memref<65x4x4xbf16, #tpu.memory_space<vmem>>, vector<1x4x4xbf16>
    %314 = vector.shape_cast %313 : vector<1x4x4xbf16> to vector<4x4xbf16>
    %cst_191 = arith.constant dense<0.000000e+00> : vector<4x256xf32>
    %315 = tpu.matmul %314, %312, %cst_191 {dimension_numbers = #tpu.dot_dimension_numbers<[1], [0], [0], [1], [0, 0, 1, 1], [], []>} : vector<4x4xbf16>, vector<4x256xbf16>, vector<4x256xf32> -> vector<4x256xf32>
    %316 = arith.addf %311, %315 : vector<4x256xf32>
    %317 = vector.extract_strided_slice %5 {offsets = [0, 62], sizes = [4, 256], strides = [1, 1]} : vector<4x384xbf16> to vector<4x256xbf16>
    %c62 = arith.constant 62 : index
    %c0_192 = arith.constant 0 : index
    %c0_193 = arith.constant 0 : index
    %318 = vector.load %arg4[%c62, %c0_192, %c0_193] : memref<65x4x4xbf16, #tpu.memory_space<vmem>>, vector<1x4x4xbf16>
    %319 = vector.shape_cast %318 : vector<1x4x4xbf16> to vector<4x4xbf16>
    %cst_194 = arith.constant dense<0.000000e+00> : vector<4x256xf32>
    %320 = tpu.matmul %319, %317, %cst_194 {dimension_numbers = #tpu.dot_dimension_numbers<[1], [0], [0], [1], [0, 0, 1, 1], [], []>} : vector<4x4xbf16>, vector<4x256xbf16>, vector<4x256xf32> -> vector<4x256xf32>
    %321 = arith.addf %316, %320 : vector<4x256xf32>
    %322 = vector.extract_strided_slice %5 {offsets = [0, 63], sizes = [4, 256], strides = [1, 1]} : vector<4x384xbf16> to vector<4x256xbf16>
    %c63 = arith.constant 63 : index
    %c0_195 = arith.constant 0 : index
    %c0_196 = arith.constant 0 : index
    %323 = vector.load %arg4[%c63, %c0_195, %c0_196] : memref<65x4x4xbf16, #tpu.memory_space<vmem>>, vector<1x4x4xbf16>
    %324 = vector.shape_cast %323 : vector<1x4x4xbf16> to vector<4x4xbf16>
    %cst_197 = arith.constant dense<0.000000e+00> : vector<4x256xf32>
    %325 = tpu.matmul %324, %322, %cst_197 {dimension_numbers = #tpu.dot_dimension_numbers<[1], [0], [0], [1], [0, 0, 1, 1], [], []>} : vector<4x4xbf16>, vector<4x256xbf16>, vector<4x256xf32> -> vector<4x256xf32>
    %326 = arith.addf %321, %325 : vector<4x256xf32>
    %327 = vector.extract_strided_slice %5 {offsets = [0, 64], sizes = [4, 256], strides = [1, 1]} : vector<4x384xbf16> to vector<4x256xbf16>
    %c64 = arith.constant 64 : index
    %c0_198 = arith.constant 0 : index
    %c0_199 = arith.constant 0 : index
    %328 = vector.load %arg4[%c64, %c0_198, %c0_199] : memref<65x4x4xbf16, #tpu.memory_space<vmem>>, vector<1x4x4xbf16>
    %329 = vector.shape_cast %328 : vector<1x4x4xbf16> to vector<4x4xbf16>
    %cst_200 = arith.constant dense<0.000000e+00> : vector<4x256xf32>
    %330 = tpu.matmul %329, %327, %cst_200 {dimension_numbers = #tpu.dot_dimension_numbers<[1], [0], [0], [1], [0, 0, 1, 1], [], []>} : vector<4x4xbf16>, vector<4x256xbf16>, vector<4x256xf32> -> vector<4x256xf32>
    %331 = arith.addf %326, %330 : vector<4x256xf32>
    %c0_201 = arith.constant 0 : index
    %c0_202 = arith.constant 0 : index
    %332 = vector.load %arg5[%c0_201, %c0_202] : memref<4x1xf32, #tpu.memory_space<vmem>>, vector<4x1xf32>
    %333 = vector.broadcast %332 : vector<4x1xf32> to vector<4x256xf32>
    %334 = arith.addf %331, %333 : vector<4x256xf32>
    %c0_203 = arith.constant 0 : index
    %c0_204 = arith.constant 0 : index
    %c0_205 = arith.constant 0 : index
    %335 = vector.load %arg6[%c0_203, %c0_204, %c0_205] : memref<1x4x256xf32, #tpu.memory_space<vmem>>, vector<1x4x256xf32>
    %336 = vector.shape_cast %335 : vector<1x4x256xf32> to vector<4x256xf32>
    %337 = vector.shape_cast %334 : vector<4x256xf32> to vector<1x4x256xf32>
    tpu.vector_store %arg6[%c0_203, %c0_204, %c0_205], %337 {strides = array<i32>} : memref<1x4x256xf32, #tpu.memory_space<vmem>>, vector<1x4x256xf32>,
    return
  }
  func.func @transform_0(%arg0: i32, %arg1: i32) -> (i32, i32, i32) {
    %c0_i32 = arith.constant 0 : i32
    %c0_i32_0 = arith.constant 0 : i32
    return %arg0, %c0_i32, %arg1 : i32, i32, i32
  }
  func.func @transform_1(%arg0: i32, %arg1: i32) -> (i32, i32, i32) {
    %c1_i32 = arith.constant 1 : i32
    %0 = arith.addi %arg1, %c1_i32 : i32
    %c2_i32 = arith.constant 2 : i32
    %1 = arith.muli %0, %c2_i32 : i32
    %c0_i32 = arith.constant 0 : i32
    %c0_i32_0 = arith.constant 0 : i32
    return %arg0, %c0_i32, %1 : i32, i32, i32
  }
  func.func @transform_2(%arg0: i32, %arg1: i32) -> (i32, i32, i32) {
    %c0_i32 = arith.constant 0 : i32
    %c0_i32_0 = arith.constant 0 : i32
    %c0_i32_1 = arith.constant 0 : i32
    %c0_i32_2 = arith.constant 0 : i32
    return %c0_i32, %c0_i32_0, %c0_i32_1 : i32, i32, i32
  }
  func.func @transform_3(%arg0: i32, %arg1: i32) -> (i32, i32) {
    %c0_i32 = arith.constant 0 : i32
    %c0_i32_0 = arith.constant 0 : i32
    %c0_i32_1 = arith.constant 0 : i32
    return %c0_i32, %c0_i32_0 : i32, i32
  }
  func.func @transform_4(%arg0: i32, %arg1: i32) -> (i32, i32, i32) {
    %c0_i32 = arith.constant 0 : i32
    %c0_i32_0 = arith.constant 0 : i32
    return %arg0, %c0_i32, %arg1 : i32, i32, i32
  }
}

</mosaic_0001>

<bundles_post_ra>
// kernel: tpu_custom_call.1
= control target key start
LH: loop header
LB: loop body
LE: loop exit
PB: predicated region body
PF: predicated region fallthrough
CT: control target
= control target key end

     0   :  { %9 = vsyncpa [#allocation3], 0  ;;  %s4958_s0 = inlined_call_operand.vmem [shape: f32[2,4,384], index: 0, kind: input, shape index: {}]   ;;  %s4959_s1 = inlined_call_operand.vmem [shape: f32[2,4,384], index: 1, kind: input, shape index: {}]   ;;  %s4960_s2 = inlined_call_operand.vmem [shape: bf16[65,4,4], index: 2, kind: input, shape index: {}]   ;;  %s4961_s3 = inlined_call_operand.vmem [shape: f32[4,1], index: 3, kind: input, shape index: {}]   ;;  %s4962_s4 = inlined_call_operand.hbm [shape: f32[2,4,256], index: 4, kind: output, shape index: {}]  }
   0x1   :  { %11 = vsyncpa [#allocation3 + $0x1], 0  ;;  %s4051_s15 = smov 0   ;;  %s4053_s16 = smov 0  }
   0x2   :  { %s4055_s17 = smov 0   ;;  %s4057_s18 = smov 0  }
   0x3   :  { %s4059_s19 = smov 0   ;;  %s4061_s20 = smov 0  }
   0x4 LB: > { %s3547_s21 = sadd.s32 4294967295, %s3959_s20   ;;  %s3548_s22 = sadd.s32 4294967294, %s3959_s20   ;;  %s3959_s20 = sphi %s4061_s20, %s17_s20   ;;  %s3955_s19 = sphi %s4059_s19, %s4969_s19   ;;  %s3951_s18 = sphi %s4057_s18, %s4968_s18   ;;  %s3947_s17 = sphi %s4055_s17, %s4967_s17   ;;  %s3943_s16 = sphi %s4053_s16, %s4966_s16   ;;  %s3939_s15 = sphi %s4051_s15, %s4965_s15  }
   0x5   : > { %s29_s23 = sadd.s32 1, %s3955_s19  ;;  %s140_s24 = sadd.s32 1, %s3947_s17 }
   0x6   : > { %p31_p0 = scmp.ge.s32.totalorder %s29_s23, 2  ;;  %p150_p1 = scmp.ne.s32.totalorder %s3947_s17, %s3943_s16 }
   0x7   : > { %p151_p2 = scmp.eq.s32.totalorder %s3547_s21, 1  ;;  %p156_p3 = scmp.ne.s32.totalorder %s3943_s16, %s3939_s15 }
   0x8   : > { %s4971_s23 = smov (%p31_p0, %s29_s23), 0  ;;  %p157_p5 = scmp.eq.s32.totalorder %s3548_s22, 1 }
   0x9   : > { %p4091_p4 = por %p151_p2, %p150_p1  ;;  %s135_s26 = ssub.s32 %s3955_s19, %s4971_s23 }
   0xa   : > { %p3551_p6 = scmp.ge.s32.totalorder %s3959_s20, 1  ;;  %p138_p7 = scmp.eq.s32.totalorder %s135_s26, 0 }
   0xb   : > { %p4098_p8 = por %p157_p5, %p156_p3  ;;  %p217_p9 = scmp.lt.s32.totalorder %s3959_s20, 3 }
   0xc   : > { %s4104_s28 = scalar_select %p138_p7, %s3947_s17, %s140_s24  }
   0xd   : > { %p218_p10 = pnand %p3551_p6, %p217_p9 }
   0xe   : > { %p266_p11 = scmp.lt.s32.totalorder (!%p218_p10), %s3951_s18, 1  ;;  %s3961_s12 = smov (!%p218_p10), 126  }
   0xf   : > { %221 = sbr.rel (%p218_p10) target bundleno = 816 (0x330), region = 36  ;;  %s3962_s13 = smov (!%p218_p10), 127  }
  0x10   : > { %s3963_s14 = smov (!%p218_p10), 125   ;;  %s3964_s21 = smov (!%p218_p10), 124  }
  0x11   : > { %s3965_s22 = smov (!%p218_p10), 123   ;;  %s3966_s24 = smov (!%p218_p10), 122  }
  0x12   : > { %s3967_s26 = smov (!%p218_p10), 121   ;;  %s3970_s5 = smov (!%p218_p10), 118  }
  0x13   : > { %s3971_s6 = smov (!%p218_p10), 117   ;;  %s3973_s10 = smov (!%p218_p10), 115  }
  0x14   : > { %s267_s29 = scalar_select %p266_p11, %s3951_s18, 1  ;;  %vm327_vm0 = vcmask 1041408   ;;  %vm323_vm1 = vcmask 31744   ;;  %v303_v15 = vld [vmem:[%s4960_s2] sm:$0x3]  ;;  %vm320_vm2 = vcmask 1039360  }
  0x15   : > { %v3555_v24 = vld [vmem:[%s4960_s2 + $0x2] sm:$0x3]  ;;  %vm403_vm3 = vcmask 1031168   ;;  %vm451_vm4 = vcmask 1022976   ;;  %v3560_v41 = vld [vmem:[%s4960_s2 + $0x4] sm:$0x3] }
  0x16   : > { %s3757_s30 = smul.u32 12, %s267_s29  ;;  %s3968_s29 = smov 120   ;;  %v3563_v42 = vld [vmem:[%s4960_s2 + $0x6] sm:$0x3]  ;;  %vm499_vm5 = vcmask 1014784   ;;  %vm547_vm6 = vcmask 1006592  }
  0x17   : > { %v3566_v57 = vld [vmem:[%s4960_s2 + $0x8] sm:$0x3]  ;;  %v3569_v58 = vld [vmem:[%s4960_s2 + $0xa] sm:$0x3]  ;;  %vm595_vm7 = vcmask 998400   ;;  %vm643_vm8 = vcmask 990208  }
  0x18   : > { %s273_s7 = scalar_lea.vmem %s4958_s0, %s3757_s30  ;;  %s3755_s8 = sadd.s32 8, %s3757_s30  ;;  %vm691_vm9 = vcmask 982016   ;;  %vm739_vm10 = vcmask 973824   ;;  %vm787_vm11 = vcmask 965632   ;;  %vm835_vm12 = vcmask 957440  }
  0x19   : > { %v293_v0 = vld [vmem:[%s273_s7] sm:$0xff]  ;;  %s288_s11 = scalar_lea.vmem %s4959_s1, %s3755_s8  ;;  %s3969_s30 = smov 119   ;;  %vm883_vm13 = vcmask 949248   ;;  %vm931_vm14 = vcmask 941056   ;;  %vm979_vm15 = vcmask 932864  }
  0x1a   : > { %296 = vst [vmem:[#allocation1] ss:$2 sm:$0xff] %v293_v0  ;;  %v294_v1 = vld [vmem:[%s288_s11] sm:$0xf]  ;;  %s3972_s7 = smov 116   ;;  %s3974_s11 = smov 114  }
  0x1b   : > { %v302_v2 = vpack.c.bf16 %v294_v1, %v294_v1  ;;  %s3985_s8 = smov 103   ;;  %s3986_s9 = smov 102  }
  0x1d   : > { %v310_v3 = vunpack.c.l.b16 %v302_v2 }
  0x1f   : > { %v4114_v4 = vpack.c.b16 %v310_v3, %v310_v3 }
  0x21   : > { %v297_v5 = vld.sshfl [vmem:[#allocation1] sm:$0xff pattern:$0x75316420]  ;;  %v298_v6 = vld.sshfl [vmem:[#allocation1 + $0x8] sm:$0xff pattern:$0x75316420]  ;;  %401 = vrot.lane.b32.xlu2 %v4114_v4, %s3961_s12 }
  0x22   : > { %v301_v7 = vpack.c.bf16 %v298_v6, %v297_v5 }
  0x24   : > { %v309_v8 = vunpack.c.h.b16 %v301_v7  ;;  %v308_v9 = vunpack.c.l.b16 %v301_v7 }
  0x26   : > { %v4117_v10 = vpack.c.b16 %v309_v8, %v309_v8  ;;  %v4119_v11 = vpack.c.b16 %v308_v9, %v308_v9 }
  0x28   : > { %316 = vrot.lane.b32.xlu0 %v4117_v10, %s3962_s13  ;;  %314 = vrot.lane.b32.xlu1 %v4119_v11, %s3962_s13  ;;  %v364_v13 = vsel %vm327_vm0, %v4119_v11, 0  ;;  %v367_v14 = vsel %vm327_vm0, %v4117_v10, 0 }
  0x29   : > { %397 = vrot.lane.b32.xlu2 %v4119_v11, %s3961_s12  ;;  %376 = vmatpush.bf16.msra.mxu2 %v364_v13  ;;  %v3575_v13 = vld [vmem:[%s4960_s2 + $0xe] sm:$0x3] }
  0x2a   : > { %389 = vmatpush.bf16.msra.mxu3 %v367_v14 }
  0x2c   : > { %3558 = vmatmul.msk.bf16.vlgmr.msra.gmra.mxu2 %vm323_vm1, %v303_v15 }
  0x2d   : > { %3559 = vmatmul.msk.bf16.vlgmr.msra.gmra.mxu3 %vm323_vm1, %v303_v15 }
  0x30   : > { %318 = vrot.lane.b32.xlu0 %v4114_v4, %s3962_s13  ;;  %399 = vrot.lane.b32.xlu1 %v4117_v10, %s3961_s12  ;;  %s3975_s12 = smov 113   ;;  %s3976_s13 = smov 112  }
  0x31   : > { %445 = vrot.lane.b32.xlu2 %v4119_v11, %s3963_s14 }
  0x38   : > { %447 = vrot.lane.b32.xlu0 %v4117_v10, %s3963_s14  ;;  %449 = vrot.lane.b32.xlu1 %v4114_v4, %s3963_s14  ;;  %s3987_s14 = smov 101  }
  0x39   : > { %493 = vrot.lane.b32.xlu2 %v4119_v11, %s3964_s21 }
  0x40   : > { %495 = vrot.lane.b32.xlu0 %v4117_v10, %s3964_s21  ;;  %497 = vrot.lane.b32.xlu1 %v4114_v4, %s3964_s21  ;;  %s3988_s21 = smov 100  }
  0x41   : > { %541 = vrot.lane.b32.xlu2 %v4119_v11, %s3965_s22 }
  0x48   : > { %543 = vrot.lane.b32.xlu0 %v4117_v10, %s3965_s22  ;;  %545 = vrot.lane.b32.xlu1 %v4114_v4, %s3965_s22  ;;  %s3977_s22 = smov 111  }
  0x49   : > { %589 = vrot.lane.b32.xlu2 %v4119_v11, %s3966_s24 }
  0x50   : > { %591 = vrot.lane.b32.xlu0 %v4117_v10, %s3966_s24  ;;  %593 = vrot.lane.b32.xlu1 %v4114_v4, %s3966_s24  ;;  %s3978_s24 = smov 110  }
  0x51   : > { %637 = vrot.lane.b32.xlu2 %v4119_v11, %s3967_s26 }
  0x58   : > { %639 = vrot.lane.b32.xlu0 %v4117_v10, %s3967_s26  ;;  %641 = vrot.lane.b32.xlu1 %v4114_v4, %s3967_s26  ;;  %s3983_s26 = smov 105  }
  0x59   : > { %685 = vrot.lane.b32.xlu2 %v4119_v11, %s3968_s29 }
  0x60   : > { %687 = vrot.lane.b32.xlu0 %v4117_v10, %s3968_s29  ;;  %689 = vrot.lane.b32.xlu1 %v4114_v4, %s3968_s29  ;;  %s3984_s29 = smov 104  }
  0x61   : > { %733 = vrot.lane.b32.xlu2 %v4119_v11, %s3969_s30 }
  0x68   : > { %735 = vrot.lane.b32.xlu0 %v4117_v10, %s3969_s30  ;;  %737 = vrot.lane.b32.xlu1 %v4114_v4, %s3969_s30  ;;  %s3989_s30 = smov 99  }
  0x69   : > { %781 = vrot.lane.b32.xlu2 %v4119_v11, %s3970_s5 }
  0x70   : > { %783 = vrot.lane.b32.xlu0 %v4117_v10, %s3970_s5  ;;  %785 = vrot.lane.b32.xlu1 %v4114_v4, %s3970_s5  ;;  %s3990_s5 = smov 98  }
  0x71   : > { %829 = vrot.lane.b32.xlu2 %v4119_v11, %s3971_s6 }
  0x78   : > { %831 = vrot.lane.b32.xlu0 %v4117_v10, %s3971_s6  ;;  %833 = vrot.lane.b32.xlu1 %v4114_v4, %s3971_s6  ;;  %s3979_s6 = smov 109  }
  0x79   : > { %877 = vrot.lane.b32.xlu2 %v4119_v11, %s3972_s7 }
  0x7b   : > { %v402_v12 = vpop.permute.xlu2 %401 }
  0x80   : > { %879 = vrot.lane.b32.xlu0 %v4117_v10, %s3972_s7  ;;  %881 = vrot.lane.b32.xlu1 %v4114_v4, %s3972_s7  ;;  %s3980_s7 = smov 108  }
  0x81   : > { %925 = vrot.lane.b32.xlu2 %v4119_v11, %s3973_s10 }
  0x83   : > { %v398_v16 = vpop.permute.xlu2 %397 }
  0x88   : > { %927 = vrot.lane.b32.xlu0 %v4117_v10, %s3973_s10  ;;  %929 = vrot.lane.b32.xlu1 %v4114_v4, %s3973_s10  ;;  %s3991_s10 = smov 97  }
  0x89   : > { %973 = vrot.lane.b32.xlu2 %v4119_v11, %s3974_s11 }
  0x8b   : > { %v446_v17 = vpop.permute.xlu2 %445 }
  0x90   : > { %975 = vrot.lane.b32.xlu0 %v4117_v10, %s3974_s11  ;;  %977 = vrot.lane.b32.xlu1 %v4114_v4, %s3974_s11  ;;  %s3992_s11 = smov 96  }
  0x91   : > { %1021 = vrot.lane.b32.xlu2 %v4119_v11, %s3975_s12 }
  0x93   : > { %v494_v18 = vpop.permute.xlu2 %493 }
  0x98   : > { %1023 = vrot.lane.b32.xlu0 %v4117_v10, %s3975_s12  ;;  %1025 = vrot.lane.b32.xlu1 %v4114_v4, %s3975_s12  ;;  %s3981_s12 = smov 107  }
  0x99   : > { %1069 = vrot.lane.b32.xlu2 %v4119_v11, %s3976_s13 }
  0x9a   : > { %v317_v19 = vpop.permute.xlu0 %316  ;;  %v315_v20 = vpop.permute.xlu1 %314 }
  0x9b   : > { %v321_v21 = vsel %vm320_vm2, %v315_v20, %v317_v19  ;;  %v4176_v22 = vpop.permute.xlu2 %541 }
  0x9c   : > { %v329_v23 = vsel %vm327_vm0, %v321_v21, 0 }
  0x9d   : > { %341 = vmatpush.bf16.msra.mxu0 %v329_v23 }
  0xa0   : > { %1071 = vrot.lane.b32.xlu0 %v4117_v10, %s3976_s13  ;;  %3556 = vmatmul.msk.bf16.vlgmr.msra.gmra.mxu0 %vm323_vm1, %v3555_v24 }
  0xa1   : > { %1073 = vrot.lane.b32.xlu1 %v4114_v4, %s3976_s13  ;;  %1117 = vrot.lane.b32.xlu2 %v4119_v11, %s3977_s22  ;;  %s3982_s13 = smov 106  }
  0xa2   : > { %v319_v25 = vpop.permute.xlu0 %318  ;;  %v400_v26 = vpop.permute.xlu1 %399 }
  0xa3   : > { %v322_v27 = vsel %vm320_vm2, %v317_v19, %v319_v25  ;;  %v405_v28 = vsel %vm403_vm3, %v400_v26, %v402_v12  ;;  %v404_v29 = vsel %vm403_vm3, %v398_v16, %v400_v26  ;;  %v4187_v30 = vpop.permute.xlu2 %589  ;;  %v3572_v12 = vld [vmem:[%s4960_s2 + $0xc] sm:$0x3]  ;;  %vm1027_vm2 = vcmask 924672  }
  0xa4   : > { %v332_v31 = vsel %vm327_vm0, %v322_v27, 0  ;;  %v413_v32 = vsel %vm327_vm0, %v405_v28, 0  ;;  %v410_v33 = vsel %vm327_vm0, %v404_v29, 0  ;;  %v3578_v28 = vld [vmem:[%s4960_s2 + $0x10] sm:$0x3]  ;;  %vm1075_vm3 = vcmask 916480  }
  0xa5   : > { %354 = vmatpush.bf16.msra.mxu1 %v332_v31  ;;  %422 = vmatpush.bf16.msrb.mxu0 %v410_v33  ;;  %v3581_v29 = vld [vmem:[%s4960_s2 + $0x12] sm:$0x3] }
  0xa8   : > { %1119 = vrot.lane.b32.xlu0 %v4117_v10, %s3977_s22  ;;  %3557 = vmatmul.msk.bf16.vlgmr.msra.gmra.mxu1 %vm323_vm1, %v3555_v24 }
  0xa9   : > { %435 = vmatpush.bf16.msrb.mxu1 %v413_v32  ;;  %1121 = vrot.lane.b32.xlu1 %v4114_v4, %s3977_s22  ;;  %s3993_s22 = smov 95  }
  0xaa   : > { %1165 = vrot.lane.b32.xlu2 %v4119_v11, %s3978_s24  ;;  %v448_v34 = vpop.permute.xlu0 %447  ;;  %v450_v35 = vpop.permute.xlu1 %449 }
  0xab   : > { %v452_v36 = vsel %vm451_vm4, %v446_v17, %v448_v34  ;;  %v453_v37 = vsel %vm451_vm4, %v448_v34, %v450_v35  ;;  %v4196_v38 = vpop.permute.xlu2 %637  ;;  %vm1123_vm4 = vcmask 908288  }
  0xac   : > { %v458_v39 = vsel %vm327_vm0, %v452_v36, 0  ;;  %v461_v40 = vsel %vm327_vm0, %v453_v37, 0 }
  0xad   : > { %470 = vmatpush.bf16.msrb.mxu2 %v458_v39  ;;  %483 = vmatpush.bf16.msrb.mxu3 %v461_v40 }
  0xb0   : > { %1167 = vrot.lane.b32.xlu0 %v4117_v10, %s3978_s24  ;;  %3561 = vmatmul.msk.bf16.vlgmr.msrb.gmra.mxu0 %vm323_vm1, %v3560_v41 }
  0xb1   : > { %3564 = vmatmul.msk.bf16.vlgmr.msrb.gmra.mxu2 %vm323_vm1, %v3563_v42  ;;  %1169 = vrot.lane.b32.xlu1 %v4114_v4, %s3978_s24  ;;  %s3994_s24 = smov 94  }
  0xb2   : > { %v496_v43 = vpop.permute.xlu0 %495  ;;  %3565 = vmatmul.msk.bf16.vlgmr.msrb.gmra.mxu3 %vm323_vm1, %v3563_v42  ;;  %v498_v44 = vpop.permute.xlu1 %497  ;;  %1213 = vrot.lane.b32.xlu2 %v4119_v11, %s3979_s6 }
  0xb3   : > { %v500_v45 = vsel %vm499_vm5, %v494_v18, %v496_v43  ;;  %v501_v46 = vsel %vm499_vm5, %v496_v43, %v498_v44  ;;  %v4212_v47 = vpop.permute.xlu2 %685  ;;  %v3584_v44 = vld [vmem:[%s4960_s2 + $0x14] sm:$0x3]  ;;  %vm1171_vm5 = vcmask 900096  }
  0xb4   : > { %v506_v48 = vsel %vm327_vm0, %v500_v45, 0  ;;  %v509_v49 = vsel %vm327_vm0, %v501_v46, 0  ;;  %v3587_v45 = vld [vmem:[%s4960_s2 + $0x16] sm:$0x3] }
  0xb5   : > { %518 = vmatpush.bf16.msra.mxu0 %v506_v48  ;;  %531 = vmatpush.bf16.msra.mxu1 %v509_v49 }
  0xb8   : > { %1215 = vrot.lane.b32.xlu0 %v4117_v10, %s3979_s6  ;;  %3562 = vmatmul.msk.bf16.vlgmr.msrb.gmra.mxu1 %vm323_vm1, %v3560_v41 }
  0xb9   : > { %1217 = vrot.lane.b32.xlu1 %v4114_v4, %s3979_s6  ;;  %s3995_s6 = smov 93  }
  0xba   : > { %v544_v50 = vpop.permute.xlu0 %543  ;;  %v546_v51 = vpop.permute.xlu1 %545  ;;  %1261 = vrot.lane.b32.xlu2 %v4119_v11, %s3980_s7 }
  0xbb   : > { %v548_v52 = vsel %vm547_vm6, %v4176_v22, %v544_v50  ;;  %v549_v53 = vsel %vm547_vm6, %v544_v50, %v546_v51  ;;  %v4221_v54 = vpop.permute.xlu2 %733  ;;  %vm1219_vm6 = vcmask 891904  }
  0xbc   : > { %v554_v55 = vsel %vm327_vm0, %v548_v52, 0  ;;  %v557_v56 = vsel %vm327_vm0, %v549_v53, 0 }
  0xbd   : > { %566 = vmatpush.bf16.msra.mxu2 %v554_v55  ;;  %579 = vmatpush.bf16.msra.mxu3 %v557_v56 }
  0xc0   : > { %1263 = vrot.lane.b32.xlu0 %v4117_v10, %s3980_s7  ;;  %3567 = vmatmul.msk.bf16.vlgmr.msra.gmra.mxu0 %vm323_vm1, %v3566_v57 }
  0xc1   : > { %3570 = vmatmul.msk.bf16.vlgmr.msra.gmra.mxu2 %vm323_vm1, %v3569_v58  ;;  %1265 = vrot.lane.b32.xlu1 %v4114_v4, %s3980_s7  ;;  %s3996_s7 = smov 92  }
  0xc2   : > { %v592_v59 = vpop.permute.xlu0 %591  ;;  %3571 = vmatmul.msk.bf16.vlgmr.msra.gmra.mxu3 %vm323_vm1, %v3569_v58  ;;  %v594_v60 = vpop.permute.xlu1 %593  ;;  %1309 = vrot.lane.b32.xlu2 %v4119_v11, %s3981_s12 }
  0xc3   : > { %v596_v61 = vsel %vm595_vm7, %v4187_v30, %v592_v59  ;;  %v597_v62 = vsel %vm595_vm7, %v592_v59, %v594_v60  ;;  %v4238_v63 = vpop.permute.xlu2 %781  ;;  %v3590_v60 = vld [vmem:[%s4960_s2 + $0x18] sm:$0x3]  ;;  %vm1267_vm7 = vcmask 883712  }
  0xc4   : > { %v602_v0 = vsel %vm327_vm0, %v596_v61, 0  ;;  %v605_v1 = vsel %vm327_vm0, %v597_v62, 0  ;;  %v3593_v61 = vld [vmem:[%s4960_s2 + $0x1a] sm:$0x3] }
  0xc5   : > { %614 = vmatpush.bf16.msrb.mxu0 %v602_v0  ;;  %627 = vmatpush.bf16.msrb.mxu1 %v605_v1 }
  0xc8   : > { %1311 = vrot.lane.b32.xlu0 %v4117_v10, %s3981_s12  ;;  %3568 = vmatmul.msk.bf16.vlgmr.msra.gmra.mxu1 %vm323_vm1, %v3566_v57 }
  0xc9   : > { %1313 = vrot.lane.b32.xlu1 %v4114_v4, %s3981_s12  ;;  %s3997_s12 = smov 91  }
  0xca   : > { %v640_v2 = vpop.permute.xlu0 %639  ;;  %v642_v3 = vpop.permute.xlu1 %641  ;;  %1357 = vrot.lane.b32.xlu2 %v4119_v11, %s3982_s13 }
  0xcb   : > { %v644_v5 = vsel %vm643_vm8, %v4196_v38, %v640_v2  ;;  %v645_v6 = vsel %vm643_vm8, %v640_v2, %v642_v3  ;;  %v4247_v7 = vpop.permute.xlu2 %829  ;;  %vm1315_vm8 = vcmask 875520  }
  0xcc   : > { %v650_v8 = vsel %vm327_vm0, %v644_v5, 0  ;;  %v653_v9 = vsel %vm327_vm0, %v645_v6, 0  ;;  %v378_v6 = vpop.f32.mrf.mxu2 }
  0xcd   : > { %662 = vmatpush.bf16.msrb.mxu2 %v650_v8  ;;  %675 = vmatpush.bf16.msrb.mxu3 %v653_v9 }
  0xd0   : > { %1359 = vrot.lane.b32.xlu0 %v4117_v10, %s3982_s13  ;;  %3573 = vmatmul.msk.bf16.vlgmr.msrb.gmra.mxu0 %vm323_vm1, %v3572_v12 }
  0xd1   : > { %3576 = vmatmul.msk.bf16.vlgmr.msrb.gmra.mxu2 %vm323_vm1, %v3575_v13  ;;  %1361 = vrot.lane.b32.xlu1 %v4114_v4, %s3982_s13  ;;  %s3998_s13 = smov 90  }
  0xd2   : > { %v688_v14 = vpop.permute.xlu0 %687  ;;  %3577 = vmatmul.msk.bf16.vlgmr.msrb.gmra.mxu3 %vm323_vm1, %v3575_v13  ;;  %v690_v15 = vpop.permute.xlu1 %689  ;;  %1405 = vrot.lane.b32.xlu2 %v4119_v11, %s3983_s26 }
  0xd3   : > { %v692_v16 = vsel %vm691_vm9, %v4212_v47, %v688_v14  ;;  %v693_v17 = vsel %vm691_vm9, %v688_v14, %v690_v15  ;;  %v4264_v18 = vpop.permute.xlu2 %877  ;;  %vm1363_vm9 = vcmask 867328  }
  0xd4   : > { %v698_v19 = vsel %vm327_vm0, %v692_v16, 0  ;;  %v701_v20 = vsel %vm327_vm0, %v693_v17, 0  ;;  %v380_v17 = vpop.f32.mrf.mxu2 }
  0xd5   : > { %710 = vmatpush.bf16.msra.mxu0 %v698_v19  ;;  %723 = vmatpush.bf16.msra.mxu1 %v701_v20  ;;  %v3599_v20 = vld [vmem:[%s4960_s2 + $0x1e] sm:$0x3] }
  0xd8   : > { %1407 = vrot.lane.b32.xlu0 %v4117_v10, %s3983_s26  ;;  %3574 = vmatmul.msk.bf16.vlgmr.msrb.gmra.mxu1 %vm323_vm1, %v3572_v12 }
  0xd9   : > { %1409 = vrot.lane.b32.xlu1 %v4114_v4, %s3983_s26  ;;  %s3999_s26 = smov 89  }
  0xda   : > { %v736_v21 = vpop.permute.xlu0 %735  ;;  %v738_v22 = vpop.permute.xlu1 %737  ;;  %1453 = vrot.lane.b32.xlu2 %v4119_v11, %s3984_s29 }
  0xdb   : > { %v740_v23 = vsel %vm739_vm10, %v4221_v54, %v736_v21  ;;  %v741_v24 = vsel %vm739_vm10, %v736_v21, %v738_v22  ;;  %v4273_v25 = vpop.permute.xlu2 %925  ;;  %vm1411_vm10 = vcmask 859136  }
  0xdc   : > { %v746_v26 = vsel %vm327_vm0, %v740_v23, 0  ;;  %v749_v27 = vsel %vm327_vm0, %v741_v24, 0 }
  0xdd   : > { %758 = vmatpush.bf16.msra.mxu2 %v746_v26  ;;  %771 = vmatpush.bf16.msra.mxu3 %v749_v27 }
  0xe0   : > { %1455 = vrot.lane.b32.xlu0 %v4117_v10, %s3984_s29  ;;  %3579 = vmatmul.msk.bf16.vlgmr.msra.gmra.mxu0 %vm323_vm1, %v3578_v28 }
  0xe1   : > { %3582 = vmatmul.msk.bf16.vlgmr.msra.gmra.mxu2 %vm323_vm1, %v3581_v29  ;;  %1457 = vrot.lane.b32.xlu1 %v4114_v4, %s3984_s29  ;;  %s4000_s29 = smov 88  }
  0xe2   : > { %v784_v30 = vpop.permute.xlu0 %783  ;;  %3583 = vmatmul.msk.bf16.vlgmr.msra.gmra.mxu3 %vm323_vm1, %v3581_v29  ;;  %v786_v31 = vpop.permute.xlu1 %785  ;;  %1501 = vrot.lane.b32.xlu2 %v4119_v11, %s3985_s8 }
  0xe3   : > { %v788_v32 = vsel %vm787_vm11, %v4238_v63, %v784_v30  ;;  %v789_v33 = vsel %vm787_vm11, %v784_v30, %v786_v31  ;;  %v4290_v34 = vpop.permute.xlu2 %973  ;;  %vm1459_vm11 = vcmask 850944  }
  0xe4   : > { %v794_v35 = vsel %vm327_vm0, %v788_v32, 0  ;;  %v797_v36 = vsel %vm327_vm0, %v789_v33, 0 }
  0xe5   : > { %806 = vmatpush.bf16.msrb.mxu0 %v794_v35  ;;  %819 = vmatpush.bf16.msrb.mxu1 %v797_v36  ;;  %v3602_v36 = vld [vmem:[%s4960_s2 + $0x20] sm:$0x3] }
  0xe8   : > { %1503 = vrot.lane.b32.xlu0 %v4117_v10, %s3985_s8  ;;  %3580 = vmatmul.msk.bf16.vlgmr.msra.gmra.mxu1 %vm323_vm1, %v3578_v28 }
  0xe9   : > { %1505 = vrot.lane.b32.xlu1 %v4114_v4, %s3985_s8  ;;  %s4001_s8 = smov 87  }
  0xea   : > { %v832_v37 = vpop.permute.xlu0 %831  ;;  %v834_v38 = vpop.permute.xlu1 %833  ;;  %1549 = vrot.lane.b32.xlu2 %v4119_v11, %s3986_s9 }
  0xeb   : > { %v836_v39 = vsel %vm835_vm12, %v4247_v7, %v832_v37  ;;  %v837_v40 = vsel %vm835_vm12, %v832_v37, %v834_v38  ;;  %v4299_v41 = vpop.permute.xlu2 %1021  ;;  %v4346_v7 = vpop.f32.mrf.mxu3  ;;  %v3605_v37 = vld [vmem:[%s4960_s2 + $0x22] sm:$0x3]  ;;  %vm1507_vm12 = vcmask 842752  }
  0xec   : > { %v842_v42 = vsel %vm327_vm0, %v836_v39, 0  ;;  %v845_v43 = vsel %vm327_vm0, %v837_v40, 0 }
  0xed   : > { %854 = vmatpush.bf16.msrb.mxu2 %v842_v42  ;;  %867 = vmatpush.bf16.msrb.mxu3 %v845_v43 }
  0xf0   : > { %1551 = vrot.lane.b32.xlu0 %v4117_v10, %s3986_s9  ;;  %3585 = vmatmul.msk.bf16.vlgmr.msrb.gmra.mxu0 %vm323_vm1, %v3584_v44 }
  0xf1   : > { %3588 = vmatmul.msk.bf16.vlgmr.msrb.gmra.mxu2 %vm323_vm1, %v3587_v45  ;;  %1553 = vrot.lane.b32.xlu1 %v4114_v4, %s3986_s9  ;;  %s4002_s9 = smov 86  }
  0xf2   : > { %v880_v46 = vpop.permute.xlu0 %879  ;;  %3589 = vmatmul.msk.bf16.vlgmr.msrb.gmra.mxu3 %vm323_vm1, %v3587_v45  ;;  %v882_v47 = vpop.permute.xlu1 %881  ;;  %1597 = vrot.lane.b32.xlu2 %v4119_v11, %s3987_s14 }
  0xf3   : > { %v884_v48 = vsel %vm883_vm13, %v4264_v18, %v880_v46  ;;  %v885_v49 = vsel %vm883_vm13, %v880_v46, %v882_v47  ;;  %v4316_v50 = vpop.permute.xlu2 %1069  ;;  %v3596_v18 = vld [vmem:[%s4960_s2 + $0x1c] sm:$0x3]  ;;  %v393_v19 = vpop.f32.mrf.mxu3  ;;  %vm1555_vm13 = vcmask 834560  }
  0xf4   : > { %v890_v51 = vsel %vm327_vm0, %v884_v48, 0  ;;  %v893_v52 = vsel %vm327_vm0, %v885_v49, 0 }
  0xf5   : > { %902 = vmatpush.bf16.msra.mxu0 %v890_v51  ;;  %915 = vmatpush.bf16.msra.mxu1 %v893_v52 }
  0xf8   : > { %1599 = vrot.lane.b32.xlu0 %v4117_v10, %s3987_s14  ;;  %3586 = vmatmul.msk.bf16.vlgmr.msrb.gmra.mxu1 %vm323_vm1, %v3584_v44 }
  0xf9   : > { %1601 = vrot.lane.b32.xlu1 %v4114_v4, %s3987_s14  ;;  %s4003_s14 = smov 85  }
  0xfa   : > { %v928_v53 = vpop.permute.xlu0 %927  ;;  %v930_v54 = vpop.permute.xlu1 %929  ;;  %1645 = vrot.lane.b32.xlu2 %v4119_v11, %s3988_s21 }
  0xfb   : > { %v932_v55 = vsel %vm931_vm14, %v4273_v25, %v928_v53  ;;  %v933_v56 = vsel %vm931_vm14, %v928_v53, %v930_v54  ;;  %v4325_v57 = vpop.permute.xlu2 %1117  ;;  %vm1603_vm14 = vcmask 826368  }
  0xfc   : > { %v938_v58 = vsel %vm327_vm0, %v932_v55, 0  ;;  %v941_v59 = vsel %vm327_vm0, %v933_v56, 0 }
  0xfd   : > { %950 = vmatpush.bf16.msra.mxu2 %v938_v58  ;;  %963 = vmatpush.bf16.msra.mxu3 %v941_v59  ;;  %v3608_v58 = vld [vmem:[%s4960_s2 + $0x24] sm:$0x3] }
 0x100   : > { %1647 = vrot.lane.b32.xlu0 %v4117_v10, %s3988_s21  ;;  %3591 = vmatmul.msk.bf16.vlgmr.msra.gmra.mxu0 %vm323_vm1, %v3590_v60 }
 0x101   : > { %3594 = vmatmul.msk.bf16.vlgmr.msra.gmra.mxu2 %vm323_vm1, %v3593_v61  ;;  %1649 = vrot.lane.b32.xlu1 %v4114_v4, %s3988_s21  ;;  %s4004_s21 = smov 84  }
 0x102   : > { %v976_v62 = vpop.permute.xlu0 %975  ;;  %3595 = vmatmul.msk.bf16.vlgmr.msra.gmra.mxu3 %vm323_vm1, %v3593_v61  ;;  %v978_v63 = vpop.permute.xlu1 %977  ;;  %1693 = vrot.lane.b32.xlu2 %v4119_v11, %s3989_s30 }
 0x103   : > { %v980_v0 = vsel %vm979_vm15, %v4290_v34, %v976_v62  ;;  %v981_v1 = vsel %vm979_vm15, %v976_v62, %v978_v63  ;;  %vm1651_vm15 = vcmask 818176  }
 0x104   : > { %v4342_v2 = vpop.permute.xlu2 %1165  ;;  %v986_v3 = vsel %vm327_vm0, %v980_v0, 0  ;;  %v989_v5 = vsel %vm327_vm0, %v981_v1, 0 }
 0x105   : > { %998 = vmatpush.bf16.msrb.mxu0 %v986_v3  ;;  %1011 = vmatpush.bf16.msrb.mxu1 %v989_v5 }
 0x108   : > { %1695 = vrot.lane.b32.xlu0 %v4117_v10, %s3989_s30  ;;  %3592 = vmatmul.msk.bf16.vlgmr.msra.gmra.mxu1 %vm323_vm1, %v3590_v60  ;;  %v3611_v60 = vld [vmem:[%s4960_s2 + $0x26] sm:$0x3] }
 0x109   : > { %1697 = vrot.lane.b32.xlu1 %v4114_v4, %s3989_s30  ;;  %s4005_s30 = smov 83  }
 0x10a   : > { %v1024_v8 = vpop.permute.xlu0 %1023  ;;  %v1026_v9 = vpop.permute.xlu1 %1025  ;;  %1741 = vrot.lane.b32.xlu2 %v4119_v11, %s3990_s5 }
 0x10b   : > { %v1028_v12 = vsel %vm1027_vm2, %v4299_v41, %v1024_v8  ;;  %v1029_v13 = vsel %vm1027_vm2, %v1024_v8, %v1026_v9  ;;  %vm1699_vm2 = vcmask 809984  }
 0x10c   : > { %v1034_v14 = vsel %vm327_vm0, %v1028_v12, 0  ;;  %v1037_v15 = vsel %vm327_vm0, %v1029_v13, 0  ;;  %v4355_v16 = vpop.permute.xlu2 %1213 }
 0x10d   : > { %1046 = vmatpush.bf16.msrb.mxu2 %v1034_v14  ;;  %1059 = vmatpush.bf16.msrb.mxu3 %v1037_v15 }
 0x110   : > { %1743 = vrot.lane.b32.xlu0 %v4117_v10, %s3990_s5  ;;  %3597 = vmatmul.msk.bf16.vlgmr.msrb.gmra.mxu0 %vm323_vm1, %v3596_v18 }
 0x111   : > { %3600 = vmatmul.msk.bf16.vlgmr.msrb.gmra.mxu2 %vm323_vm1, %v3599_v20  ;;  %1745 = vrot.lane.b32.xlu1 %v4114_v4, %s3990_s5  ;;  %s4006_s5 = smov 82  }
 0x112   : > { %v1072_v21 = vpop.permute.xlu0 %1071  ;;  %3601 = vmatmul.msk.bf16.vlgmr.msrb.gmra.mxu3 %vm323_vm1, %v3599_v20  ;;  %1789 = vrot.lane.b32.xlu2 %v4119_v11, %s3991_s10 }
 0x113   : > { %v1076_v22 = vsel %vm1075_vm3, %v4316_v50, %v1072_v21  ;;  %v1074_v23 = vpop.permute.xlu1 %1073 }
 0x114   : > { %v1082_v24 = vsel %vm327_vm0, %v1076_v22, 0  ;;  %v1077_v25 = vsel %vm1075_vm3, %v1072_v21, %v1074_v23  ;;  %v4371_v26 = vpop.permute.xlu2 %1261  ;;  %vm1747_vm3 = vcmask 801792  }
 0x115   : > { %v1085_v27 = vsel %vm327_vm0, %v1077_v25, 0  ;;  %1094 = vmatpush.bf16.msra.mxu0 %v1082_v24  ;;  %v3614_v24 = vld [vmem:[%s4960_s2 + $0x28] sm:$0x3] }
 0x116   : > { %1107 = vmatpush.bf16.msra.mxu1 %v1085_v27  ;;  %v3617_v27 = vld [vmem:[%s4960_s2 + $0x2a] sm:$0x3] }
 0x118   : > { %1791 = vrot.lane.b32.xlu0 %v4117_v10, %s3991_s10  ;;  %3598 = vmatmul.msk.bf16.vlgmr.msrb.gmra.mxu1 %vm323_vm1, %v3596_v18 }
 0x119   : > { %1793 = vrot.lane.b32.xlu1 %v4114_v4, %s3991_s10  ;;  %s4007_s10 = smov 81  }
 0x11a   : > { %v1120_v28 = vpop.permute.xlu0 %1119  ;;  %1837 = vrot.lane.b32.xlu2 %v4119_v11, %s3992_s11 }
 0x11b   : > { %v1124_v29 = vsel %vm1123_vm4, %v4325_v57, %v1120_v28  ;;  %v1122_v30 = vpop.permute.xlu1 %1121 }
 0x11c   : > { %v1130_v31 = vsel %vm327_vm0, %v1124_v29, 0  ;;  %v1125_v32 = vsel %vm1123_vm4, %v1120_v28, %v1122_v30  ;;  %v4380_v33 = vpop.permute.xlu2 %1309  ;;  %vm1795_vm4 = vcmask 793600  }
 0x11d   : > { %v343_v34 = vpop.f32.mrf.mxu0  ;;  %v1133_v35 = vsel %vm327_vm0, %v1125_v32, 0  ;;  %1142 = vmatpush.bf16.msra.mxu2 %v1130_v31 }
 0x11e   : > { %1155 = vmatpush.bf16.msra.mxu3 %v1133_v35  ;;  %v379_v38 = vadd.f32 %v378_v6, %v343_v34 }
 0x120   : > { %1839 = vrot.lane.b32.xlu0 %v4117_v10, %s3992_s11  ;;  %3603 = vmatmul.msk.bf16.vlgmr.msra.gmra.mxu0 %vm323_vm1, %v3602_v36 }
 0x121   : > { %3606 = vmatmul.msk.bf16.vlgmr.msra.gmra.mxu2 %vm323_vm1, %v3605_v37  ;;  %1841 = vrot.lane.b32.xlu1 %v4114_v4, %s3992_s11  ;;  %s4008_s11 = smov 80  }
 0x122   : > { %v1168_v39 = vpop.permute.xlu0 %1167  ;;  %3607 = vmatmul.msk.bf16.vlgmr.msra.gmra.mxu3 %vm323_vm1, %v3605_v37  ;;  %1885 = vrot.lane.b32.xlu2 %v4119_v11, %s3993_s22 }
 0x123   : > { %v1172_v40 = vsel %vm1171_vm5, %v4342_v2, %v1168_v39  ;;  %v1170_v41 = vpop.permute.xlu1 %1169 }
 0x124   : > { %v1178_v42 = vsel %vm327_vm0, %v1172_v40, 0  ;;  %v1173_v43 = vsel %vm1171_vm5, %v1168_v39, %v1170_v41  ;;  %v4397_v44 = vpop.permute.xlu2 %1357  ;;  %vm1843_vm5 = vcmask 785408  }
 0x125   : > { %v345_v45 = vpop.f32.mrf.mxu0  ;;  %v356_v46 = vpop.f32.mrf.mxu1  ;;  %v1181_v47 = vsel %vm327_vm0, %v1173_v43, 0  ;;  %1190 = vmatpush.bf16.msrb.mxu0 %v1178_v42 }
 0x126   : > { %v392_v48 = vadd.f32 %v4346_v7, %v356_v46  ;;  %1203 = vmatpush.bf16.msrb.mxu1 %v1181_v47 }
 0x128   : > { %1887 = vrot.lane.b32.xlu0 %v4117_v10, %s3993_s22  ;;  %3604 = vmatmul.msk.bf16.vlgmr.msra.gmra.mxu1 %vm323_vm1, %v3602_v36 }
 0x129   : > { %1889 = vrot.lane.b32.xlu1 %v4114_v4, %s3993_s22  ;;  %s4009_s22 = smov 79  }
 0x12a   : > { %v1216_v49 = vpop.permute.xlu0 %1215  ;;  %1933 = vrot.lane.b32.xlu2 %v4119_v11, %s3994_s24 }
 0x12b   : > { %v1220_v50 = vsel %vm1219_vm6, %v4355_v16, %v1216_v49  ;;  %v1218_v51 = vpop.permute.xlu1 %1217 }
 0x12c   : > { %v1226_v52 = vsel %vm327_vm0, %v1220_v50, 0  ;;  %v1221_v53 = vsel %vm1219_vm6, %v1216_v49, %v1218_v51  ;;  %v4407_v54 = vpop.permute.xlu2 %1405  ;;  %vm1891_vm6 = vcmask 777216  }
 0x12d   : > { %v358_v55 = vpop.f32.mrf.mxu1  ;;  %v424_v56 = vpop.f32.mrf.mxu0  ;;  %v1229_v57 = vsel %vm327_vm0, %v1221_v53, 0  ;;  %1238 = vmatpush.bf16.msrb.mxu2 %v1226_v52  ;;  %v3620_v52 = vld [vmem:[%s4960_s2 + $0x2c] sm:$0x3] }
 0x12e   : > { %v441_v59 = vadd.f32 %v424_v56, %v379_v38  ;;  %1251 = vmatpush.bf16.msrb.mxu3 %v1229_v57 }
 0x130   : > { %1935 = vrot.lane.b32.xlu0 %v4117_v10, %s3994_s24  ;;  %3609 = vmatmul.msk.bf16.vlgmr.msrb.gmra.mxu0 %vm323_vm1, %v3608_v58 }
 0x131   : > { %3612 = vmatmul.msk.bf16.vlgmr.msrb.gmra.mxu2 %vm323_vm1, %v3611_v60  ;;  %1937 = vrot.lane.b32.xlu1 %v4114_v4, %s3994_s24  ;;  %s4010_s24 = smov 78  }
 0x132   : > { %v1264_v61 = vpop.permute.xlu0 %1263  ;;  %3613 = vmatmul.msk.bf16.vlgmr.msrb.gmra.mxu3 %vm323_vm1, %v3611_v60  ;;  %1981 = vrot.lane.b32.xlu2 %v4119_v11, %s3995_s6 }
 0x133   : > { %v1268_v62 = vsel %vm1267_vm7, %v4371_v26, %v1264_v61  ;;  %v1266_v63 = vpop.permute.xlu1 %1265 }
 0x134   : > { %v1274_v0 = vsel %vm327_vm0, %v1268_v62, 0  ;;  %v472_v1 = vpop.f32.mrf.mxu2  ;;  %v1269_v2 = vsel %vm1267_vm7, %v1264_v61, %v1266_v63  ;;  %v4424_v3 = vpop.permute.xlu2 %1453  ;;  %vm1939_vm7 = vcmask 769024  }
 0x135   : > { %v489_v5 = vadd.f32 %v472_v1, %v441_v59  ;;  %v426_v6 = vpop.f32.mrf.mxu0  ;;  %v437_v7 = vpop.f32.mrf.mxu1  ;;  %v1277_v8 = vsel %vm327_vm0, %v1269_v2, 0  ;;  %1286 = vmatpush.bf16.msra.mxu0 %v1274_v0 }
 0x136   : > { %v442_v9 = vadd.f32 %v437_v7, %v392_v48  ;;  %v485_v12 = vpop.f32.mrf.mxu3  ;;  %1299 = vmatpush.bf16.msra.mxu1 %v1277_v8 }
 0x138   : > { %v490_v13 = vadd.f32 %v485_v12, %v442_v9  ;;  %1983 = vrot.lane.b32.xlu0 %v4117_v10, %s3995_s6  ;;  %3610 = vmatmul.msk.bf16.vlgmr.msrb.gmra.mxu1 %vm323_vm1, %v3608_v58 }
 0x139   : > { %1985 = vrot.lane.b32.xlu1 %v4114_v4, %s3995_s6  ;;  %s4011_s6 = smov 77  }
 0x13a   : > { %v1312_v14 = vpop.permute.xlu0 %1311  ;;  %2029 = vrot.lane.b32.xlu2 %v4119_v11, %s3996_s7 }
 0x13b   : > { %v1316_v15 = vsel %vm1315_vm8, %v4380_v33, %v1312_v14  ;;  %v1314_v16 = vpop.permute.xlu1 %1313 }
 0x13c   : > { %v1322_v17 = vsel %vm327_vm0, %v1316_v15, 0  ;;  %v474_v18 = vpop.f32.mrf.mxu2  ;;  %v1317_v19 = vsel %vm1315_vm8, %v1312_v14, %v1314_v16  ;;  %v4433_v20 = vpop.permute.xlu2 %1501  ;;  %vm1987_vm8 = vcmask 760832  }
 0x13d   : > { %v439_v21 = vpop.f32.mrf.mxu1  ;;  %v520_v22 = vpop.f32.mrf.mxu0  ;;  %v1325_v23 = vsel %vm327_vm0, %v1317_v19, 0  ;;  %1334 = vmatpush.bf16.msra.mxu2 %v1322_v17  ;;  %v3626_v19 = vld [vmem:[%s4960_s2 + $0x30] sm:$0x3] }
 0x13e   : > { %v537_v25 = vadd.f32 %v520_v22, %v489_v5  ;;  %v487_v26 = vpop.f32.mrf.mxu3  ;;  %1347 = vmatpush.bf16.msra.mxu3 %v1325_v23 }
 0x140   : > { %2031 = vrot.lane.b32.xlu0 %v4117_v10, %s3996_s7  ;;  %3615 = vmatmul.msk.bf16.vlgmr.msra.gmra.mxu0 %vm323_vm1, %v3614_v24 }
 0x141   : > { %3618 = vmatmul.msk.bf16.vlgmr.msra.gmra.mxu2 %vm323_vm1, %v3617_v27  ;;  %2033 = vrot.lane.b32.xlu1 %v4114_v4, %s3996_s7  ;;  %s4012_s7 = smov 76  }
 0x142   : > { %v1360_v28 = vpop.permute.xlu0 %1359  ;;  %3619 = vmatmul.msk.bf16.vlgmr.msra.gmra.mxu3 %vm323_vm1, %v3617_v27  ;;  %2077 = vrot.lane.b32.xlu2 %v4119_v11, %s3997_s12 }
 0x143   : > { %v1364_v29 = vsel %vm1363_vm9, %v4397_v44, %v1360_v28  ;;  %v1362_v30 = vpop.permute.xlu1 %1361 }
 0x144   : > { %v1370_v31 = vsel %vm327_vm0, %v1364_v29, 0  ;;  %v568_v32 = vpop.f32.mrf.mxu2  ;;  %v1365_v33 = vsel %vm1363_vm9, %v1360_v28, %v1362_v30  ;;  %v4450_v34 = vpop.permute.xlu2 %1549  ;;  %vm2035_vm9 = vcmask 752640  }
 0x145   : > { %v585_v35 = vadd.f32 %v568_v32, %v537_v25  ;;  %v522_v36 = vpop.f32.mrf.mxu0  ;;  %v533_v37 = vpop.f32.mrf.mxu1  ;;  %v1373_v38 = vsel %vm327_vm0, %v1365_v33, 0  ;;  %1382 = vmatpush.bf16.msrb.mxu0 %v1370_v31 }
 0x146   : > { %v538_v39 = vadd.f32 %v533_v37, %v490_v13  ;;  %v581_v40 = vpop.f32.mrf.mxu3  ;;  %1395 = vmatpush.bf16.msrb.mxu1 %v1373_v38 }
 0x148   : > { %v586_v41 = vadd.f32 %v581_v40, %v538_v39  ;;  %2079 = vrot.lane.b32.xlu0 %v4117_v10, %s3997_s12  ;;  %3616 = vmatmul.msk.bf16.vlgmr.msra.gmra.mxu1 %vm323_vm1, %v3614_v24 }
 0x149   : > { %2081 = vrot.lane.b32.xlu1 %v4114_v4, %s3997_s12  ;;  %s4013_s12 = smov 75  }
 0x14a   : > { %v1408_v42 = vpop.permute.xlu0 %1407  ;;  %2125 = vrot.lane.b32.xlu2 %v4119_v11, %s3998_s13 }
 0x14b   : > { %v1412_v43 = vsel %vm1411_vm10, %v4407_v54, %v1408_v42  ;;  %v1410_v44 = vpop.permute.xlu1 %1409  ;;  %v3623_v54 = vld [vmem:[%s4960_s2 + $0x2e] sm:$0x3] }
 0x14c   : > { %v1418_v45 = vsel %vm327_vm0, %v1412_v43, 0  ;;  %v570_v46 = vpop.f32.mrf.mxu2  ;;  %v1413_v47 = vsel %vm1411_vm10, %v1408_v42, %v1410_v44  ;;  %v4459_v48 = vpop.permute.xlu2 %1597  ;;  %vm2083_vm10 = vcmask 744448  }
 0x14d   : > { %v535_v49 = vpop.f32.mrf.mxu1  ;;  %v616_v50 = vpop.f32.mrf.mxu0  ;;  %v1421_v51 = vsel %vm327_vm0, %v1413_v47, 0  ;;  %1430 = vmatpush.bf16.msrb.mxu2 %v1418_v45  ;;  %v3632_v47 = vld [vmem:[%s4960_s2 + $0x34] sm:$0x3] }
 0x14e   : > { %v633_v53 = vadd.f32 %v616_v50, %v585_v35  ;;  %v583_v55 = vpop.f32.mrf.mxu3  ;;  %1443 = vmatpush.bf16.msrb.mxu3 %v1421_v51 }
 0x150   : > { %2127 = vrot.lane.b32.xlu0 %v4117_v10, %s3998_s13  ;;  %3621 = vmatmul.msk.bf16.vlgmr.msrb.gmra.mxu0 %vm323_vm1, %v3620_v52 }
 0x151   : > { %3624 = vmatmul.msk.bf16.vlgmr.msrb.gmra.mxu2 %vm323_vm1, %v3623_v54  ;;  %2129 = vrot.lane.b32.xlu1 %v4114_v4, %s3998_s13  ;;  %s4014_s13 = smov 74  }
 0x152   : > { %v1456_v56 = vpop.permute.xlu0 %1455  ;;  %3625 = vmatmul.msk.bf16.vlgmr.msrb.gmra.mxu3 %vm323_vm1, %v3623_v54  ;;  %2173 = vrot.lane.b32.xlu2 %v4119_v11, %s3999_s26 }
 0x153   : > { %v1460_v57 = vsel %vm1459_vm11, %v4424_v3, %v1456_v56  ;;  %v1458_v58 = vpop.permute.xlu1 %1457 }
 0x154   : > { %v1466_v59 = vsel %vm327_vm0, %v1460_v57, 0  ;;  %v664_v60 = vpop.f32.mrf.mxu2  ;;  %v1461_v61 = vsel %vm1459_vm11, %v1456_v56, %v1458_v58  ;;  %v4476_v62 = vpop.permute.xlu2 %1645  ;;  %vm2131_vm11 = vcmask 736256  }
 0x155   : > { %v681_v63 = vadd.f32 %v664_v60, %v633_v53  ;;  %v618_v0 = vpop.f32.mrf.mxu0  ;;  %v629_v1 = vpop.f32.mrf.mxu1  ;;  %v1469_v2 = vsel %vm327_vm0, %v1461_v61, 0  ;;  %1478 = vmatpush.bf16.msra.mxu0 %v1466_v59 }
 0x156   : > { %v634_v5 = vadd.f32 %v629_v1, %v586_v41  ;;  %v677_v6 = vpop.f32.mrf.mxu3  ;;  %1491 = vmatpush.bf16.msra.mxu1 %v1469_v2 }
 0x158   : > { %v682_v7 = vadd.f32 %v677_v6, %v634_v5  ;;  %2175 = vrot.lane.b32.xlu0 %v4117_v10, %s3999_s26  ;;  %3622 = vmatmul.msk.bf16.vlgmr.msrb.gmra.mxu1 %vm323_vm1, %v3620_v52 }
 0x159   : > { %2177 = vrot.lane.b32.xlu1 %v4114_v4, %s3999_s26  ;;  %s4015_s26 = smov 73  }
 0x15a   : > { %v1504_v3 = vpop.permute.xlu0 %1503  ;;  %2221 = vrot.lane.b32.xlu2 %v4119_v11, %s4000_s29 }
 0x15b   : > { %v1508_v8 = vsel %vm1507_vm12, %v4433_v20, %v1504_v3  ;;  %v1506_v9 = vpop.permute.xlu1 %1505  ;;  %v3629_v20 = vld [vmem:[%s4960_s2 + $0x32] sm:$0x3] }
 0x15c   : > { %v1514_v12 = vsel %vm327_vm0, %v1508_v8, 0  ;;  %v666_v13 = vpop.f32.mrf.mxu2  ;;  %v1509_v14 = vsel %vm1507_vm12, %v1504_v3, %v1506_v9  ;;  %v4485_v15 = vpop.permute.xlu2 %1693  ;;  %vm2179_vm12 = vcmask 728064  }
 0x15d   : > { %v631_v16 = vpop.f32.mrf.mxu1  ;;  %v712_v17 = vpop.f32.mrf.mxu0  ;;  %v1517_v18 = vsel %vm327_vm0, %v1509_v14, 0  ;;  %1526 = vmatpush.bf16.msra.mxu2 %v1514_v12  ;;  %v3638_v14 = vld [vmem:[%s4960_s2 + $0x38] sm:$0x3] }
 0x15e   : > { %v729_v21 = vadd.f32 %v712_v17, %v681_v63  ;;  %v679_v22 = vpop.f32.mrf.mxu3  ;;  %1539 = vmatpush.bf16.msra.mxu3 %v1517_v18 }
 0x160   : > { %2223 = vrot.lane.b32.xlu0 %v4117_v10, %s4000_s29  ;;  %3627 = vmatmul.msk.bf16.vlgmr.msra.gmra.mxu0 %vm323_vm1, %v3626_v19 }
 0x161   : > { %3630 = vmatmul.msk.bf16.vlgmr.msra.gmra.mxu2 %vm323_vm1, %v3629_v20  ;;  %2225 = vrot.lane.b32.xlu1 %v4114_v4, %s4000_s29  ;;  %s4016_s29 = smov 72  }
 0x162   : > { %v1552_v23 = vpop.permute.xlu0 %1551  ;;  %3631 = vmatmul.msk.bf16.vlgmr.msra.gmra.mxu3 %vm323_vm1, %v3629_v20  ;;  %2269 = vrot.lane.b32.xlu2 %v4119_v11, %s4001_s8 }
 0x163   : > { %v1556_v24 = vsel %vm1555_vm13, %v4450_v34, %v1552_v23  ;;  %v1554_v25 = vpop.permute.xlu1 %1553 }
 0x164   : > { %v1562_v26 = vsel %vm327_vm0, %v1556_v24, 0  ;;  %v760_v27 = vpop.f32.mrf.mxu2  ;;  %v1557_v28 = vsel %vm1555_vm13, %v1552_v23, %v1554_v25  ;;  %v4502_v29 = vpop.permute.xlu2 %1741  ;;  %vm2227_vm13 = vcmask 719872  }
 0x165   : > { %v777_v30 = vadd.f32 %v760_v27, %v729_v21  ;;  %v714_v31 = vpop.f32.mrf.mxu0  ;;  %v725_v32 = vpop.f32.mrf.mxu1  ;;  %v1565_v33 = vsel %vm327_vm0, %v1557_v28, 0  ;;  %1574 = vmatpush.bf16.msrb.mxu0 %v1562_v26 }
 0x166   : > { %v730_v35 = vadd.f32 %v725_v32, %v682_v7  ;;  %v773_v36 = vpop.f32.mrf.mxu3  ;;  %1587 = vmatpush.bf16.msrb.mxu1 %v1565_v33 }
 0x168   : > { %v778_v37 = vadd.f32 %v773_v36, %v730_v35  ;;  %2271 = vrot.lane.b32.xlu0 %v4117_v10, %s4001_s8  ;;  %3628 = vmatmul.msk.bf16.vlgmr.msra.gmra.mxu1 %vm323_vm1, %v3626_v19 }
 0x169   : > { %2273 = vrot.lane.b32.xlu1 %v4114_v4, %s4001_s8  ;;  %s4017_s8 = smov 71  }
 0x16a   : > { %v1600_v34 = vpop.permute.xlu0 %1599  ;;  %2317 = vrot.lane.b32.xlu2 %v4119_v11, %s4002_s9 }
 0x16b   : > { %v1604_v38 = vsel %vm1603_vm14, %v4459_v48, %v1600_v34  ;;  %v1602_v39 = vpop.permute.xlu1 %1601  ;;  %v3635_v48 = vld [vmem:[%s4960_s2 + $0x36] sm:$0x3] }
 0x16c   : > { %v1610_v40 = vsel %vm327_vm0, %v1604_v38, 0  ;;  %v762_v41 = vpop.f32.mrf.mxu2  ;;  %v1605_v42 = vsel %vm1603_vm14, %v1600_v34, %v1602_v39  ;;  %v4511_v43 = vpop.permute.xlu2 %1789  ;;  %vm2275_vm14 = vcmask 711680  }
 0x16d   : > { %v727_v44 = vpop.f32.mrf.mxu1  ;;  %v808_v45 = vpop.f32.mrf.mxu0  ;;  %v1613_v46 = vsel %vm327_vm0, %v1605_v42, 0  ;;  %1622 = vmatpush.bf16.msrb.mxu2 %v1610_v40  ;;  %v3644_v42 = vld [vmem:[%s4960_s2 + $0x3c] sm:$0x3] }
 0x16e   : > { %v825_v49 = vadd.f32 %v808_v45, %v777_v30  ;;  %v775_v50 = vpop.f32.mrf.mxu3  ;;  %1635 = vmatpush.bf16.msrb.mxu3 %v1613_v46 }
 0x170   : > { %2319 = vrot.lane.b32.xlu0 %v4117_v10, %s4002_s9  ;;  %3633 = vmatmul.msk.bf16.vlgmr.msrb.gmra.mxu0 %vm323_vm1, %v3632_v47 }
 0x171   : > { %3636 = vmatmul.msk.bf16.vlgmr.msrb.gmra.mxu2 %vm323_vm1, %v3635_v48  ;;  %2321 = vrot.lane.b32.xlu1 %v4114_v4, %s4002_s9  ;;  %s4018_s9 = smov 70  }
 0x172   : > { %v1648_v51 = vpop.permute.xlu0 %1647  ;;  %3637 = vmatmul.msk.bf16.vlgmr.msrb.gmra.mxu3 %vm323_vm1, %v3635_v48  ;;  %2365 = vrot.lane.b32.xlu2 %v4119_v11, %s4003_s14 }
 0x173   : > { %v1652_v52 = vsel %vm1651_vm15, %v4476_v62, %v1648_v51  ;;  %v1650_v53 = vpop.permute.xlu1 %1649 }
 0x174   : > { %v1658_v55 = vsel %vm327_vm0, %v1652_v52, 0  ;;  %v856_v54 = vpop.f32.mrf.mxu2  ;;  %v1653_v56 = vsel %vm1651_vm15, %v1648_v51, %v1650_v53  ;;  %v4528_v57 = vpop.permute.xlu2 %1837  ;;  %vm2323_vm15 = vcmask 703488  }
 0x175   : > { %v873_v58 = vadd.f32 %v856_v54, %v825_v49  ;;  %v810_v59 = vpop.f32.mrf.mxu0  ;;  %v821_v60 = vpop.f32.mrf.mxu1  ;;  %v1661_v61 = vsel %vm327_vm0, %v1653_v56, 0  ;;  %1670 = vmatpush.bf16.msra.mxu0 %v1658_v55 }
 0x176   : > { %v826_v63 = vadd.f32 %v821_v60, %v778_v37  ;;  %v869_v0 = vpop.f32.mrf.mxu3  ;;  %1683 = vmatpush.bf16.msra.mxu1 %v1661_v61 }
 0x178   : > { %v874_v1 = vadd.f32 %v869_v0, %v826_v63  ;;  %2367 = vrot.lane.b32.xlu0 %v4117_v10, %s4003_s14  ;;  %3634 = vmatmul.msk.bf16.vlgmr.msrb.gmra.mxu1 %vm323_vm1, %v3632_v47 }
 0x179   : > { %2369 = vrot.lane.b32.xlu1 %v4114_v4, %s4003_s14  ;;  %s4019_s14 = smov 69  }
 0x17a   : > { %v1696_v62 = vpop.permute.xlu0 %1695  ;;  %2413 = vrot.lane.b32.xlu2 %v4119_v11, %s4004_s21 }
 0x17b   : > { %v1700_v2 = vsel %vm1699_vm2, %v4485_v15, %v1696_v62  ;;  %v1698_v5 = vpop.permute.xlu1 %1697  ;;  %v3641_v15 = vld [vmem:[%s4960_s2 + $0x3a] sm:$0x3] }
 0x17c   : > { %v1706_v6 = vsel %vm327_vm0, %v1700_v2, 0  ;;  %v858_v7 = vpop.f32.mrf.mxu2  ;;  %v1701_v3 = vsel %vm1699_vm2, %v1696_v62, %v1698_v5  ;;  %v4537_v8 = vpop.permute.xlu2 %1885  ;;  %vm2371_vm2 = vcmask 695296  }
 0x17d   : > { %v823_v9 = vpop.f32.mrf.mxu1  ;;  %v904_v12 = vpop.f32.mrf.mxu0  ;;  %v1709_v13 = vsel %vm327_vm0, %v1701_v3, 0  ;;  %1718 = vmatpush.bf16.msra.mxu2 %v1706_v6  ;;  %v3650_v3 = vld [vmem:[%s4960_s2 + $0x40] sm:$0x3] }
 0x17e   : > { %v921_v16 = vadd.f32 %v904_v12, %v873_v58  ;;  %v871_v17 = vpop.f32.mrf.mxu3  ;;  %1731 = vmatpush.bf16.msra.mxu3 %v1709_v13 }
 0x180   : > { %2415 = vrot.lane.b32.xlu0 %v4117_v10, %s4004_s21  ;;  %3639 = vmatmul.msk.bf16.vlgmr.msra.gmra.mxu0 %vm323_vm1, %v3638_v14 }
 0x181   : > { %3642 = vmatmul.msk.bf16.vlgmr.msra.gmra.mxu2 %vm323_vm1, %v3641_v15  ;;  %2417 = vrot.lane.b32.xlu1 %v4114_v4, %s4004_s21  ;;  %s4020_s21 = smov 68  }
 0x182   : > { %v1744_v18 = vpop.permute.xlu0 %1743  ;;  %3643 = vmatmul.msk.bf16.vlgmr.msra.gmra.mxu3 %vm323_vm1, %v3641_v15  ;;  %2461 = vrot.lane.b32.xlu2 %v4119_v11, %s4005_s30 }
 0x183   : > { %v1748_v19 = vsel %vm1747_vm3, %v4502_v29, %v1744_v18  ;;  %v1746_v21 = vpop.permute.xlu1 %1745 }
 0x184   : > { %v1754_v22 = vsel %vm327_vm0, %v1748_v19, 0  ;;  %v952_v20 = vpop.f32.mrf.mxu2  ;;  %v1749_v23 = vsel %vm1747_vm3, %v1744_v18, %v1746_v21  ;;  %v4554_v24 = vpop.permute.xlu2 %1933  ;;  %vm2419_vm3 = vcmask 687104  }
 0x185   : > { %v969_v25 = vadd.f32 %v952_v20, %v921_v16  ;;  %v906_v26 = vpop.f32.mrf.mxu0  ;;  %v917_v27 = vpop.f32.mrf.mxu1  ;;  %v1757_v28 = vsel %vm327_vm0, %v1749_v23, 0  ;;  %1766 = vmatpush.bf16.msrb.mxu0 %v1754_v22 }
 0x186   : > { %v922_v30 = vadd.f32 %v917_v27, %v874_v1  ;;  %v965_v31 = vpop.f32.mrf.mxu3  ;;  %1779 = vmatpush.bf16.msrb.mxu1 %v1757_v28 }
 0x188   : > { %v970_v32 = vadd.f32 %v965_v31, %v922_v30  ;;  %2463 = vrot.lane.b32.xlu0 %v4117_v10, %s4005_s30  ;;  %3640 = vmatmul.msk.bf16.vlgmr.msra.gmra.mxu1 %vm323_vm1, %v3638_v14 }
 0x189   : > { %2465 = vrot.lane.b32.xlu1 %v4114_v4, %s4005_s30  ;;  %s4021_s30 = smov 67  }
 0x18a   : > { %v1792_v29 = vpop.permute.xlu0 %1791  ;;  %2509 = vrot.lane.b32.xlu2 %v4119_v11, %s4006_s5 }
 0x18b   : > { %v1796_v33 = vsel %vm1795_vm4, %v4511_v43, %v1792_v29  ;;  %v1794_v35 = vpop.permute.xlu1 %1793  ;;  %v3647_v43 = vld [vmem:[%s4960_s2 + $0x3e] sm:$0x3] }
 0x18c   : > { %v1802_v36 = vsel %vm327_vm0, %v1796_v33, 0  ;;  %v954_v37 = vpop.f32.mrf.mxu2  ;;  %v1797_v34 = vsel %vm1795_vm4, %v1792_v29, %v1794_v35  ;;  %v4563_v38 = vpop.permute.xlu2 %1981  ;;  %vm2467_vm4 = vcmask 678912  }
 0x18d   : > { %v919_v39 = vpop.f32.mrf.mxu1  ;;  %v1000_v40 = vpop.f32.mrf.mxu0  ;;  %v1805_v41 = vsel %vm327_vm0, %v1797_v34, 0  ;;  %1814 = vmatpush.bf16.msrb.mxu2 %v1802_v36  ;;  %v3656_v34 = vld [vmem:[%s4960_s2 + $0x44] sm:$0x3] }
 0x18e   : > { %v1017_v44 = vadd.f32 %v1000_v40, %v969_v25  ;;  %v967_v45 = vpop.f32.mrf.mxu3  ;;  %1827 = vmatpush.bf16.msrb.mxu3 %v1805_v41 }
 0x190   : > { %2511 = vrot.lane.b32.xlu0 %v4117_v10, %s4006_s5  ;;  %3645 = vmatmul.msk.bf16.vlgmr.msrb.gmra.mxu0 %vm323_vm1, %v3644_v42 }
 0x191   : > { %3648 = vmatmul.msk.bf16.vlgmr.msrb.gmra.mxu2 %vm323_vm1, %v3647_v43  ;;  %2513 = vrot.lane.b32.xlu1 %v4114_v4, %s4006_s5  ;;  %s4022_s5 = smov 66  }
 0x192   : > { %v1840_v46 = vpop.permute.xlu0 %1839  ;;  %3649 = vmatmul.msk.bf16.vlgmr.msrb.gmra.mxu3 %vm323_vm1, %v3647_v43  ;;  %2557 = vrot.lane.b32.xlu2 %v4119_v11, %s4007_s10 }
 0x193   : > { %v1844_v47 = vsel %vm1843_vm5, %v4528_v57, %v1840_v46  ;;  %v1842_v49 = vpop.permute.xlu1 %1841 }
 0x194   : > { %v1850_v50 = vsel %vm327_vm0, %v1844_v47, 0  ;;  %v1048_v48 = vpop.f32.mrf.mxu2  ;;  %v1845_v51 = vsel %vm1843_vm5, %v1840_v46, %v1842_v49  ;;  %v4580_v52 = vpop.permute.xlu2 %2029  ;;  %vm2515_vm5 = vcmask 670720  }
 0x195   : > { %v1065_v53 = vadd.f32 %v1048_v48, %v1017_v44  ;;  %v1002_v55 = vpop.f32.mrf.mxu0  ;;  %v1013_v54 = vpop.f32.mrf.mxu1  ;;  %v1853_v56 = vsel %vm327_vm0, %v1845_v51, 0  ;;  %1862 = vmatpush.bf16.msra.mxu0 %v1850_v50 }
 0x196   : > { %v1018_v58 = vadd.f32 %v1013_v54, %v970_v32  ;;  %v1061_v59 = vpop.f32.mrf.mxu3  ;;  %1875 = vmatpush.bf16.msra.mxu1 %v1853_v56 }
 0x198   : > { %v1066_v60 = vadd.f32 %v1061_v59, %v1018_v58  ;;  %2559 = vrot.lane.b32.xlu0 %v4117_v10, %s4007_s10  ;;  %3646 = vmatmul.msk.bf16.vlgmr.msrb.gmra.mxu1 %vm323_vm1, %v3644_v42 }
 0x199   : > { %2561 = vrot.lane.b32.xlu1 %v4114_v4, %s4007_s10  ;;  %s4023_s10 = smov 65  }
 0x19a   : > { %v1888_v57 = vpop.permute.xlu0 %1887  ;;  %2605 = vrot.lane.b32.xlu2 %v4119_v11, %s4008_s11 }
 0x19b   : > { %v1892_v61 = vsel %vm1891_vm6, %v4537_v8, %v1888_v57  ;;  %v1890_v63 = vpop.permute.xlu1 %1889  ;;  %v3653_v8 = vld [vmem:[%s4960_s2 + $0x42] sm:$0x3] }
 0x19c   : > { %v1898_v0 = vsel %vm327_vm0, %v1892_v61, 0  ;;  %v1050_v1 = vpop.f32.mrf.mxu2  ;;  %v1893_v62 = vsel %vm1891_vm6, %v1888_v57, %v1890_v63  ;;  %v4589_v2 = vpop.permute.xlu2 %2077  ;;  %vm2563_vm6 = vcmask 662528  }
 0x19d   : > { %v1015_v5 = vpop.f32.mrf.mxu1  ;;  %v1096_v6 = vpop.f32.mrf.mxu0  ;;  %v1901_v7 = vsel %vm327_vm0, %v1893_v62, 0  ;;  %1910 = vmatpush.bf16.msra.mxu2 %v1898_v0  ;;  %v3662_v62 = vld [vmem:[%s4960_s2 + $0x48] sm:$0x3] }
 0x19e   : > { %v1113_v9 = vadd.f32 %v1096_v6, %v1065_v53  ;;  %v1063_v12 = vpop.f32.mrf.mxu3  ;;  %1923 = vmatpush.bf16.msra.mxu3 %v1901_v7 }
 0x1a0   : > { %2607 = vrot.lane.b32.xlu0 %v4117_v10, %s4008_s11  ;;  %3651 = vmatmul.msk.bf16.vlgmr.msra.gmra.mxu0 %vm323_vm1, %v3650_v3 }
 0x1a1   : > { %3654 = vmatmul.msk.bf16.vlgmr.msra.gmra.mxu2 %vm323_vm1, %v3653_v8  ;;  %2609 = vrot.lane.b32.xlu1 %v4114_v4, %s4008_s11  ;;  %s4024_s11 = smov 64  }
 0x1a2   : > { %v1936_v13 = vpop.permute.xlu0 %1935  ;;  %3655 = vmatmul.msk.bf16.vlgmr.msra.gmra.mxu3 %vm323_vm1, %v3653_v8  ;;  %2653 = vrot.lane.b32.xlu2 %v4119_v11, %s4009_s22 }
 0x1a3   : > { %v1940_v14 = vsel %vm1939_vm7, %v4554_v24, %v1936_v13  ;;  %v1938_v16 = vpop.permute.xlu1 %1937 }
 0x1a4   : > { %v1946_v17 = vsel %vm327_vm0, %v1940_v14, 0  ;;  %v1144_v15 = vpop.f32.mrf.mxu2  ;;  %v1941_v18 = vsel %vm1939_vm7, %v1936_v13, %v1938_v16  ;;  %v4606_v19 = vpop.permute.xlu2 %2125  ;;  %vm2611_vm7 = vcmask 654336  }
 0x1a5   : > { %v1161_v21 = vadd.f32 %v1144_v15, %v1113_v9  ;;  %v1098_v22 = vpop.f32.mrf.mxu0  ;;  %v1109_v20 = vpop.f32.mrf.mxu1  ;;  %v1949_v23 = vsel %vm327_vm0, %v1941_v18, 0  ;;  %1958 = vmatpush.bf16.msrb.mxu0 %v1946_v17 }
 0x1a6   : > { %v1114_v25 = vadd.f32 %v1109_v20, %v1066_v60  ;;  %v1157_v26 = vpop.f32.mrf.mxu3  ;;  %1971 = vmatpush.bf16.msrb.mxu1 %v1949_v23 }
 0x1a8   : > { %v1162_v27 = vadd.f32 %v1157_v26, %v1114_v25  ;;  %2655 = vrot.lane.b32.xlu0 %v4117_v10, %s4009_s22  ;;  %3652 = vmatmul.msk.bf16.vlgmr.msra.gmra.mxu1 %vm323_vm1, %v3650_v3 }
 0x1a9   : > { %2657 = vrot.lane.b32.xlu1 %v4114_v4, %s4009_s22  ;;  %s258_s22 = sand.u32 1, %s3943_s16  }
 0x1aa   : > { %v1984_v24 = vpop.permute.xlu0 %1983  ;;  %2701 = vrot.lane.b32.xlu2 %v4119_v11, %s4010_s24 }
 0x1ab   : > { %v1988_v28 = vsel %vm1987_vm8, %v4563_v38, %v1984_v24  ;;  %v1986_v30 = vpop.permute.xlu1 %1985  ;;  %v3659_v38 = vld [vmem:[%s4960_s2 + $0x46] sm:$0x3] }
 0x1ac   : > { %v1994_v31 = vsel %vm327_vm0, %v1988_v28, 0  ;;  %v1146_v32 = vpop.f32.mrf.mxu2  ;;  %v1989_v29 = vsel %vm1987_vm8, %v1984_v24, %v1986_v30  ;;  %v4615_v33 = vpop.permute.xlu2 %2173  ;;  %vm2659_vm8 = vcmask 646144  }
 0x1ad   : > { %v1111_v35 = vpop.f32.mrf.mxu1  ;;  %v1192_v36 = vpop.f32.mrf.mxu0  ;;  %v1997_v37 = vsel %vm327_vm0, %v1989_v29, 0  ;;  %2006 = vmatpush.bf16.msrb.mxu2 %v1994_v31  ;;  %v3668_v29 = vld [vmem:[%s4960_s2 + $0x4c] sm:$0x3] }
 0x1ae   : > { %v1209_v39 = vadd.f32 %v1192_v36, %v1161_v21  ;;  %v1159_v40 = vpop.f32.mrf.mxu3  ;;  %2019 = vmatpush.bf16.msrb.mxu3 %v1997_v37 }
 0x1b0   : > { %2703 = vrot.lane.b32.xlu0 %v4117_v10, %s4010_s24  ;;  %3657 = vmatmul.msk.bf16.vlgmr.msrb.gmra.mxu0 %vm323_vm1, %v3656_v34 }
 0x1b1   : > { %3660 = vmatmul.msk.bf16.vlgmr.msrb.gmra.mxu2 %vm323_vm1, %v3659_v38  ;;  %2705 = vrot.lane.b32.xlu1 %v4114_v4, %s4010_s24  ;;  %s3552_s24 = sshll.u32 %s258_s22, 3 }
 0x1b2   : > { %v2032_v41 = vpop.permute.xlu0 %2031  ;;  %3661 = vmatmul.msk.bf16.vlgmr.msrb.gmra.mxu3 %vm323_vm1, %v3659_v38  ;;  %2749 = vrot.lane.b32.xlu2 %v4119_v11, %s4011_s6 }
 0x1b3   : > { %v2036_v42 = vsel %vm2035_vm9, %v4580_v52, %v2032_v41  ;;  %v2034_v44 = vpop.permute.xlu1 %2033 }
 0x1b4   : > { %v2042_v45 = vsel %vm327_vm0, %v2036_v42, 0  ;;  %v1240_v43 = vpop.f32.mrf.mxu2  ;;  %v2037_v46 = vsel %vm2035_vm9, %v2032_v41, %v2034_v44  ;;  %v4632_v47 = vpop.permute.xlu2 %2221  ;;  %vm2707_vm9 = vcmask 637952  }
 0x1b5   : > { %v1257_v49 = vadd.f32 %v1240_v43, %v1209_v39  ;;  %v1194_v50 = vpop.f32.mrf.mxu0  ;;  %v1205_v48 = vpop.f32.mrf.mxu1  ;;  %v2045_v51 = vsel %vm327_vm0, %v2037_v46, 0  ;;  %2054 = vmatpush.bf16.msra.mxu0 %v2042_v45 }
 0x1b6   : > { %v1210_v53 = vadd.f32 %v1205_v48, %v1162_v27  ;;  %v1253_v55 = vpop.f32.mrf.mxu3  ;;  %2067 = vmatpush.bf16.msra.mxu1 %v2045_v51 }
 0x1b8   : > { %v1258_v54 = vadd.f32 %v1253_v55, %v1210_v53  ;;  %2751 = vrot.lane.b32.xlu0 %v4117_v10, %s4011_s6  ;;  %3658 = vmatmul.msk.bf16.vlgmr.msrb.gmra.mxu1 %vm323_vm1, %v3656_v34 }
 0x1b9   : > { %2753 = vrot.lane.b32.xlu1 %v4114_v4, %s4011_s6  ;;  %s260_s6 = scalar_lea.vmem [#allocation2], %s3552_s24 }
 0x1ba   : > { %v2080_v52 = vpop.permute.xlu0 %2079  ;;  %2797 = vrot.lane.b32.xlu2 %v4119_v11, %s4012_s7 }
 0x1bb   : > { %v2084_v56 = vsel %vm2083_vm10, %v4589_v2, %v2080_v52  ;;  %v2082_v58 = vpop.permute.xlu1 %2081  ;;  %v3665_v2 = vld [vmem:[%s4960_s2 + $0x4a] sm:$0x3] }
 0x1bc   : > { %v2090_v59 = vsel %vm327_vm0, %v2084_v56, 0  ;;  %v1242_v60 = vpop.f32.mrf.mxu2  ;;  %v2085_v57 = vsel %vm2083_vm10, %v2080_v52, %v2082_v58  ;;  %v4641_v61 = vpop.permute.xlu2 %2269  ;;  %vm2755_vm10 = vcmask 629760  }
 0x1bd   : > { %v1207_v63 = vpop.f32.mrf.mxu1  ;;  %v1288_v0 = vpop.f32.mrf.mxu0  ;;  %v2093_v1 = vsel %vm327_vm0, %v2085_v57, 0  ;;  %2102 = vmatpush.bf16.msra.mxu2 %v2090_v59  ;;  %v3674_v57 = vld [vmem:[%s4960_s2 + $0x50] sm:$0x3] }
 0x1be   : > { %v1305_v5 = vadd.f32 %v1288_v0, %v1257_v49  ;;  %v1255_v6 = vpop.f32.mrf.mxu3  ;;  %2115 = vmatpush.bf16.msra.mxu3 %v2093_v1 }
 0x1c0   : > { %2799 = vrot.lane.b32.xlu0 %v4117_v10, %s4012_s7  ;;  %3663 = vmatmul.msk.bf16.vlgmr.msra.gmra.mxu0 %vm323_vm1, %v3662_v62 }
 0x1c1   : > { %3666 = vmatmul.msk.bf16.vlgmr.msra.gmra.mxu2 %vm323_vm1, %v3665_v2  ;;  %2801 = vrot.lane.b32.xlu1 %v4114_v4, %s4012_s7  ;;  %s3450_s7 = sshll.u32 %s260_s6, 4  ;;  %s3451_s7 = int_to_ptr.vmem [resolvable:$true] %s3450_s7 }
 0x1c2   : > { %v2128_v7 = vpop.permute.xlu0 %2127  ;;  %3667 = vmatmul.msk.bf16.vlgmr.msra.gmra.mxu3 %vm323_vm1, %v3665_v2  ;;  %2845 = vrot.lane.b32.xlu2 %v4119_v11, %s4013_s12 }
 0x1c3   : > { %v2132_v3 = vsel %vm2131_vm11, %v4606_v19, %v2128_v7  ;;  %v2130_v9 = vpop.permute.xlu1 %2129 }
 0x1c4   : > { %v2138_v12 = vsel %vm327_vm0, %v2132_v3, 0  ;;  %v1336_v8 = vpop.f32.mrf.mxu2  ;;  %v2133_v13 = vsel %vm2131_vm11, %v2128_v7, %v2130_v9  ;;  %v4658_v14 = vpop.permute.xlu2 %2317  ;;  %vm2803_vm11 = vcmask 621568  }
 0x1c5   : > { %v1353_v16 = vadd.f32 %v1336_v8, %v1305_v5  ;;  %v1290_v17 = vpop.f32.mrf.mxu0  ;;  %v1301_v15 = vpop.f32.mrf.mxu1  ;;  %v2141_v18 = vsel %vm327_vm0, %v2133_v13, 0  ;;  %2150 = vmatpush.bf16.msrb.mxu0 %v2138_v12 }
 0x1c6   : > { %v1306_v21 = vadd.f32 %v1301_v15, %v1258_v54  ;;  %v1349_v22 = vpop.f32.mrf.mxu3  ;;  %2163 = vmatpush.bf16.msrb.mxu1 %v2141_v18 }
 0x1c8   : > { %v1354_v20 = vadd.f32 %v1349_v22, %v1306_v21  ;;  %2847 = vrot.lane.b32.xlu0 %v4117_v10, %s4013_s12  ;;  %3664 = vmatmul.msk.bf16.vlgmr.msra.gmra.mxu1 %vm323_vm1, %v3662_v62 }
 0x1c9   : > { %2849 = vrot.lane.b32.xlu1 %v4114_v4, %s4013_s12 }
 0x1ca   : > { %v2176_v19 = vpop.permute.xlu0 %2175  ;;  %2893 = vrot.lane.b32.xlu2 %v4119_v11, %s4014_s13 }
 0x1cb   : > { %v2180_v23 = vsel %vm2179_vm12, %v4615_v33, %v2176_v19  ;;  %v2178_v25 = vpop.permute.xlu1 %2177  ;;  %v3671_v33 = vld [vmem:[%s4960_s2 + $0x4e] sm:$0x3] }
 0x1cc   : > { %v2186_v26 = vsel %vm327_vm0, %v2180_v23, 0  ;;  %v1338_v27 = vpop.f32.mrf.mxu2  ;;  %v2181_v24 = vsel %vm2179_vm12, %v2176_v19, %v2178_v25  ;;  %v4667_v28 = vpop.permute.xlu2 %2365  ;;  %vm2851_vm12 = vcmask 613376  }
 0x1cd   : > { %v1303_v30 = vpop.f32.mrf.mxu1  ;;  %v1384_v31 = vpop.f32.mrf.mxu0  ;;  %v2189_v32 = vsel %vm327_vm0, %v2181_v24, 0  ;;  %2198 = vmatpush.bf16.msrb.mxu2 %v2186_v26  ;;  %v3680_v24 = vld [vmem:[%s4960_s2 + $0x54] sm:$0x3] }
 0x1ce   : > { %v1401_v35 = vadd.f32 %v1384_v31, %v1353_v16  ;;  %v1351_v36 = vpop.f32.mrf.mxu3  ;;  %2211 = vmatpush.bf16.msrb.mxu3 %v2189_v32 }
 0x1d0   : > { %2895 = vrot.lane.b32.xlu0 %v4117_v10, %s4014_s13  ;;  %3669 = vmatmul.msk.bf16.vlgmr.msrb.gmra.mxu0 %vm323_vm1, %v3668_v29 }
 0x1d1   : > { %3672 = vmatmul.msk.bf16.vlgmr.msrb.gmra.mxu2 %vm323_vm1, %v3671_v33  ;;  %2897 = vrot.lane.b32.xlu1 %v4114_v4, %s4014_s13  ;;  %s3901_s13 = scalar_lea.hbm %s4962_s4, 16 }
 0x1d2   : > { %v2224_v37 = vpop.permute.xlu0 %2223  ;;  %3673 = vmatmul.msk.bf16.vlgmr.msrb.gmra.mxu3 %vm323_vm1, %v3671_v33  ;;  %2941 = vrot.lane.b32.xlu2 %v4119_v11, %s4015_s26 }
 0x1d3   : > { %v2228_v34 = vsel %vm2227_vm13, %v4632_v47, %v2224_v37  ;;  %v2226_v39 = vpop.permute.xlu1 %2225 }
 0x1d4   : > { %v2234_v40 = vsel %vm327_vm0, %v2228_v34, 0  ;;  %v1432_v38 = vpop.f32.mrf.mxu2  ;;  %v2229_v41 = vsel %vm2227_vm13, %v2224_v37, %v2226_v39  ;;  %v4684_v42 = vpop.permute.xlu2 %2413  ;;  %vm2899_vm13 = vcmask 605184  }
 0x1d5   : > { %v1449_v44 = vadd.f32 %v1432_v38, %v1401_v35  ;;  %v1386_v45 = vpop.f32.mrf.mxu0  ;;  %v1397_v43 = vpop.f32.mrf.mxu1  ;;  %v2237_v46 = vsel %vm327_vm0, %v2229_v41, 0  ;;  %2246 = vmatpush.bf16.msra.mxu0 %v2234_v40 }
 0x1d6   : > { %v1402_v49 = vadd.f32 %v1397_v43, %v1354_v20  ;;  %v1445_v50 = vpop.f32.mrf.mxu3  ;;  %2259 = vmatpush.bf16.msra.mxu1 %v2237_v46 }
 0x1d8   : > { %v1450_v48 = vadd.f32 %v1445_v50, %v1402_v49  ;;  %2943 = vrot.lane.b32.xlu0 %v4117_v10, %s4015_s26  ;;  %3670 = vmatmul.msk.bf16.vlgmr.msrb.gmra.mxu1 %vm323_vm1, %v3668_v29 }
 0x1d9   : > { %2945 = vrot.lane.b32.xlu1 %v4114_v4, %s4015_s26  ;;  %s3756_s26 = sshll.u32 %s3951_s18, 3  ;;  %s3435_s18 = scalar_lea.sflag [#allocation3], %s258_s22 }
 0x1da   : > { %v2272_v47 = vpop.permute.xlu0 %2271  ;;  %2989 = vrot.lane.b32.xlu2 %v4119_v11, %s4016_s29 }
 0x1db   : > { %v2276_v51 = vsel %vm2275_vm14, %v4641_v61, %v2272_v47  ;;  %v2274_v53 = vpop.permute.xlu1 %2273  ;;  %v3677_v61 = vld [vmem:[%s4960_s2 + $0x52] sm:$0x3] }
 0x1dc   : > { %v2282_v55 = vsel %vm327_vm0, %v2276_v51, 0  ;;  %v1434_v54 = vpop.f32.mrf.mxu2  ;;  %v2277_v52 = vsel %vm2275_vm14, %v2272_v47, %v2274_v53  ;;  %v4693_v56 = vpop.permute.xlu2 %2461  ;;  %vm2947_vm14 = vcmask 596992  }
 0x1dd   : > { %v1399_v58 = vpop.f32.mrf.mxu1  ;;  %v1480_v59 = vpop.f32.mrf.mxu0  ;;  %v2285_v60 = vsel %vm327_vm0, %v2277_v52, 0  ;;  %2294 = vmatpush.bf16.msra.mxu2 %v2282_v55  ;;  %v3686_v52 = vld [vmem:[%s4960_s2 + $0x58] sm:$0x3] }
 0x1de   : > { %v1497_v63 = vadd.f32 %v1480_v59, %v1449_v44  ;;  %v1447_v0 = vpop.f32.mrf.mxu3  ;;  %2307 = vmatpush.bf16.msra.mxu3 %v2285_v60 }
 0x1e0   : > { %2991 = vrot.lane.b32.xlu0 %v4117_v10, %s4016_s29  ;;  %3675 = vmatmul.msk.bf16.vlgmr.msra.gmra.mxu0 %vm323_vm1, %v3674_v57 }
 0x1e1   : > { %3678 = vmatmul.msk.bf16.vlgmr.msra.gmra.mxu2 %vm323_vm1, %v3677_v61  ;;  %2993 = vrot.lane.b32.xlu1 %v4114_v4, %s4016_s29 }
 0x1e2   : > { %v2320_v1 = vpop.permute.xlu0 %2319  ;;  %3679 = vmatmul.msk.bf16.vlgmr.msra.gmra.mxu3 %vm323_vm1, %v3677_v61  ;;  %3037 = vrot.lane.b32.xlu2 %v4119_v11, %s4017_s8 }
 0x1e3   : > { %v2324_v62 = vsel %vm2323_vm15, %v4658_v14, %v2320_v1  ;;  %v2322_v5 = vpop.permute.xlu1 %2321 }
 0x1e4   : > { %v2330_v6 = vsel %vm327_vm0, %v2324_v62, 0  ;;  %v1528_v2 = vpop.f32.mrf.mxu2  ;;  %v2325_v7 = vsel %vm2323_vm15, %v2320_v1, %v2322_v5  ;;  %v4710_v3 = vpop.permute.xlu2 %2509  ;;  %vm2995_vm15 = vcmask 588800  }
 0x1e5   : > { %v1545_v9 = vadd.f32 %v1528_v2, %v1497_v63  ;;  %v1482_v12 = vpop.f32.mrf.mxu0  ;;  %v1493_v8 = vpop.f32.mrf.mxu1  ;;  %v2333_v13 = vsel %vm327_vm0, %v2325_v7, 0  ;;  %2342 = vmatpush.bf16.msrb.mxu0 %v2330_v6 }
 0x1e6   : > { %v1498_v16 = vadd.f32 %v1493_v8, %v1450_v48  ;;  %v1541_v17 = vpop.f32.mrf.mxu3  ;;  %2355 = vmatpush.bf16.msrb.mxu1 %v2333_v13 }
 0x1e8   : > { %v1546_v15 = vadd.f32 %v1541_v17, %v1498_v16  ;;  %3039 = vrot.lane.b32.xlu0 %v4117_v10, %s4017_s8  ;;  %3676 = vmatmul.msk.bf16.vlgmr.msra.gmra.mxu1 %vm323_vm1, %v3674_v57 }
 0x1e9   : > { %3041 = vrot.lane.b32.xlu1 %v4114_v4, %s4017_s8 }
 0x1ea   : > { %v2368_v14 = vpop.permute.xlu0 %2367  ;;  %3085 = vrot.lane.b32.xlu2 %v4119_v11, %s4018_s9 }
 0x1eb   : > { %v2372_v18 = vsel %vm2371_vm2, %v4667_v28, %v2368_v14  ;;  %v2370_v21 = vpop.permute.xlu1 %2369  ;;  %v3683_v28 = vld [vmem:[%s4960_s2 + $0x56] sm:$0x3] }
 0x1ec   : > { %v2378_v22 = vsel %vm327_vm0, %v2372_v18, 0  ;;  %v1530_v20 = vpop.f32.mrf.mxu2  ;;  %v2373_v19 = vsel %vm2371_vm2, %v2368_v14, %v2370_v21  ;;  %v4719_v23 = vpop.permute.xlu2 %2557  ;;  %vm3043_vm2 = vcmask 580608  }
 0x1ed   : > { %v1495_v25 = vpop.f32.mrf.mxu1  ;;  %v1576_v26 = vpop.f32.mrf.mxu0  ;;  %v2381_v27 = vsel %vm327_vm0, %v2373_v19, 0  ;;  %2390 = vmatpush.bf16.msrb.mxu2 %v2378_v22  ;;  %v3692_v20 = vld [vmem:[%s4960_s2 + $0x5c] sm:$0x3] }
 0x1ee   : > { %v1593_v30 = vadd.f32 %v1576_v26, %v1545_v9  ;;  %v1543_v31 = vpop.f32.mrf.mxu3  ;;  %2403 = vmatpush.bf16.msrb.mxu3 %v2381_v27 }
 0x1f0   : > { %3087 = vrot.lane.b32.xlu0 %v4117_v10, %s4018_s9  ;;  %3681 = vmatmul.msk.bf16.vlgmr.msrb.gmra.mxu0 %vm323_vm1, %v3680_v24 }
 0x1f1   : > { %3684 = vmatmul.msk.bf16.vlgmr.msrb.gmra.mxu2 %vm323_vm1, %v3683_v28  ;;  %3089 = vrot.lane.b32.xlu1 %v4114_v4, %s4018_s9 }
 0x1f2   : > { %v2416_v32 = vpop.permute.xlu0 %2415  ;;  %3685 = vmatmul.msk.bf16.vlgmr.msrb.gmra.mxu3 %vm323_vm1, %v3683_v28  ;;  %3133 = vrot.lane.b32.xlu2 %v4119_v11, %s4019_s14 }
 0x1f3   : > { %v2420_v29 = vsel %vm2419_vm3, %v4684_v42, %v2416_v32  ;;  %v2418_v35 = vpop.permute.xlu1 %2417 }
 0x1f4   : > { %v2426_v36 = vsel %vm327_vm0, %v2420_v29, 0  ;;  %v1624_v33 = vpop.f32.mrf.mxu2  ;;  %v2421_v37 = vsel %vm2419_vm3, %v2416_v32, %v2418_v35  ;;  %v4736_v34 = vpop.permute.xlu2 %2605  ;;  %vm3091_vm3 = vcmask 572416  }
 0x1f5   : > { %v1641_v39 = vadd.f32 %v1624_v33, %v1593_v30  ;;  %v1578_v40 = vpop.f32.mrf.mxu0  ;;  %v1589_v38 = vpop.f32.mrf.mxu1  ;;  %v2429_v41 = vsel %vm327_vm0, %v2421_v37, 0  ;;  %2438 = vmatpush.bf16.msra.mxu0 %v2426_v36 }
 0x1f6   : > { %v1594_v44 = vadd.f32 %v1589_v38, %v1546_v15  ;;  %v1637_v45 = vpop.f32.mrf.mxu3  ;;  %2451 = vmatpush.bf16.msra.mxu1 %v2429_v41 }
 0x1f8   : > { %v1642_v43 = vadd.f32 %v1637_v45, %v1594_v44  ;;  %3135 = vrot.lane.b32.xlu0 %v4117_v10, %s4019_s14  ;;  %3682 = vmatmul.msk.bf16.vlgmr.msrb.gmra.mxu1 %vm323_vm1, %v3680_v24 }
 0x1f9   : > { %3137 = vrot.lane.b32.xlu1 %v4114_v4, %s4019_s14 }
 0x1fa   : > { %v2464_v42 = vpop.permute.xlu0 %2463  ;;  %3181 = vrot.lane.b32.xlu2 %v4119_v11, %s4020_s21 }
 0x1fb   : > { %v2468_v46 = vsel %vm2467_vm4, %v4693_v56, %v2464_v42  ;;  %v2466_v49 = vpop.permute.xlu1 %2465  ;;  %v3689_v56 = vld [vmem:[%s4960_s2 + $0x5a] sm:$0x3] }
 0x1fc   : > { %v2474_v50 = vsel %vm327_vm0, %v2468_v46, 0  ;;  %v1626_v48 = vpop.f32.mrf.mxu2  ;;  %v2469_v47 = vsel %vm2467_vm4, %v2464_v42, %v2466_v49  ;;  %v4745_v51 = vpop.permute.xlu2 %2653  ;;  %vm3139_vm4 = vcmask 564224  }
 0x1fd   : > { %v1591_v53 = vpop.f32.mrf.mxu1  ;;  %v1672_v55 = vpop.f32.mrf.mxu0  ;;  %v2477_v54 = vsel %vm327_vm0, %v2469_v47, 0  ;;  %2486 = vmatpush.bf16.msra.mxu2 %v2474_v50  ;;  %v3698_v48 = vld [vmem:[%s4960_s2 + $0x60] sm:$0x3] }
 0x1fe   : > { %v1689_v58 = vadd.f32 %v1672_v55, %v1641_v39  ;;  %v1639_v59 = vpop.f32.mrf.mxu3  ;;  %2499 = vmatpush.bf16.msra.mxu3 %v2477_v54 }
 0x200   : > { %3183 = vrot.lane.b32.xlu0 %v4117_v10, %s4020_s21  ;;  %3687 = vmatmul.msk.bf16.vlgmr.msra.gmra.mxu0 %vm323_vm1, %v3686_v52 }
 0x201   : > { %3690 = vmatmul.msk.bf16.vlgmr.msra.gmra.mxu2 %vm323_vm1, %v3689_v56  ;;  %3185 = vrot.lane.b32.xlu1 %v4114_v4, %s4020_s21 }
 0x202   : > { %v2512_v60 = vpop.permute.xlu0 %2511  ;;  %3691 = vmatmul.msk.bf16.vlgmr.msra.gmra.mxu3 %vm323_vm1, %v3689_v56  ;;  %3229 = vrot.lane.b32.xlu2 %v4119_v11, %s4021_s30 }
 0x203   : > { %v2516_v57 = vsel %vm2515_vm5, %v4710_v3, %v2512_v60  ;;  %v2514_v63 = vpop.permute.xlu1 %2513 }
 0x204   : > { %v2522_v0 = vsel %vm327_vm0, %v2516_v57, 0  ;;  %v1720_v61 = vpop.f32.mrf.mxu2  ;;  %v2517_v1 = vsel %vm2515_vm5, %v2512_v60, %v2514_v63  ;;  %v4763_v12 = vpop.permute.xlu2 %2701  ;;  %vm3187_vm5 = vcmask 556032  }
 0x205   : > { %v1737_v62 = vadd.f32 %v1720_v61, %v1689_v58  ;;  %v1674_v5 = vpop.f32.mrf.mxu0  ;;  %v1685_v6 = vpop.f32.mrf.mxu1  ;;  %v2525_v2 = vsel %vm327_vm0, %v2517_v1, 0  ;;  %2534 = vmatpush.bf16.msrb.mxu0 %v2522_v0 }
 0x206   : > { %v1690_v7 = vadd.f32 %v1685_v6, %v1642_v43  ;;  %v1733_v9 = vpop.f32.mrf.mxu3  ;;  %2547 = vmatpush.bf16.msrb.mxu1 %v2525_v2 }
 0x208   : > { %v1738_v8 = vadd.f32 %v1733_v9, %v1690_v7  ;;  %3231 = vrot.lane.b32.xlu0 %v4117_v10, %s4021_s30  ;;  %3688 = vmatmul.msk.bf16.vlgmr.msra.gmra.mxu1 %vm323_vm1, %v3686_v52 }
 0x209   : > { %3233 = vrot.lane.b32.xlu1 %v4114_v4, %s4021_s30 }
 0x20a   : > { %v2560_v3 = vpop.permute.xlu0 %2559  ;;  %3277 = vrot.lane.b32.xlu2 %v4119_v11, %s4022_s5 }
 0x20b   : > { %v2564_v13 = vsel %vm2563_vm6, %v4719_v23, %v2560_v3  ;;  %v2562_v16 = vpop.permute.xlu1 %2561  ;;  %v3695_v23 = vld [vmem:[%s4960_s2 + $0x5e] sm:$0x3] }
 0x20c   : > { %v2570_v17 = vsel %vm327_vm0, %v2564_v13, 0  ;;  %v1722_v15 = vpop.f32.mrf.mxu2  ;;  %v2565_v14 = vsel %vm2563_vm6, %v2560_v3, %v2562_v16  ;;  %v4780_v26 = vpop.permute.xlu2 %2749  ;;  %v3704_v3 = vld [vmem:[%s4960_s2 + $0x64] sm:$0x3]  ;;  %vm3235_vm6 = vcmask 547840  }
 0x20d   : > { %v1687_v18 = vpop.f32.mrf.mxu1  ;;  %v1768_v21 = vpop.f32.mrf.mxu0  ;;  %v2573_v22 = vsel %vm327_vm0, %v2565_v14, 0  ;;  %2582 = vmatpush.bf16.msrb.mxu2 %v2570_v17  ;;  %v3707_v17 = vld [vmem:[%s4960_s2 + $0x66] sm:$0x3] }
 0x20e   : > { %v1785_v19 = vadd.f32 %v1768_v21, %v1737_v62  ;;  %v1735_v25 = vpop.f32.mrf.mxu3  ;;  %2595 = vmatpush.bf16.msrb.mxu3 %v2573_v22 }
 0x210   : > { %3279 = vrot.lane.b32.xlu0 %v4117_v10, %s4022_s5  ;;  %3693 = vmatmul.msk.bf16.vlgmr.msrb.gmra.mxu0 %vm323_vm1, %v3692_v20 }
 0x211   : > { %3696 = vmatmul.msk.bf16.vlgmr.msrb.gmra.mxu2 %vm323_vm1, %v3695_v23  ;;  %3281 = vrot.lane.b32.xlu1 %v4114_v4, %s4022_s5  ;;  %s3448_s5 = scalar_lea.hbm %s4962_s4, %s3756_s26 }
 0x212   : > { %v2608_v27 = vpop.permute.xlu0 %2607  ;;  %3697 = vmatmul.msk.bf16.vlgmr.msrb.gmra.mxu3 %vm323_vm1, %v3695_v23  ;;  %3325 = vrot.lane.b32.xlu2 %v4119_v11, %s4023_s10  ;;  %s3452_s8 = sshll.u32 %s3448_s5, 4  ;;  %s3453_s8 = int_to_ptr.hbm [resolvable:$true] %s3452_s8 }
 0x213   : > { %v2612_v24 = vsel %vm2611_vm7, %v4736_v34, %v2608_v27  ;;  %v2610_v30 = vpop.permute.xlu1 %2609  ;;  %s3895_s9 = sshra.s32 %s3453_s8, 4  ;;  %s3896_s9 = int_to_ptr.hbm [resolvable:$true] %s3895_s9 }
 0x214   : > { %v2618_v31 = vsel %vm327_vm0, %v2612_v24, 0  ;;  %v1816_v28 = vpop.f32.mrf.mxu2  ;;  %v2613_v32 = vsel %vm2611_vm7, %v2608_v27, %v2610_v30  ;;  %v4792_v38 = vpop.permute.xlu2 %2797  ;;  %vm3283_vm7 = vcmask 539648   ;;  %p3902_p1 = scmp.lt.s32.totalorder %s3896_s9, %s4962_s4 }
 0x215   : > { %v1833_v29 = vadd.f32 %v1816_v28, %v1785_v19  ;;  %v1770_v35 = vpop.f32.mrf.mxu0  ;;  %v1781_v36 = vpop.f32.mrf.mxu1  ;;  %v2621_v33 = vsel %vm327_vm0, %v2613_v32, 0  ;;  %2630 = vmatpush.bf16.msra.mxu0 %v2618_v31 }
 0x216   : > { %v1786_v37 = vadd.f32 %v1781_v36, %v1738_v8  ;;  %v1829_v39 = vpop.f32.mrf.mxu3  ;;  %2643 = vmatpush.bf16.msra.mxu1 %v2621_v33 }
 0x218   : > { %v1834_v40 = vadd.f32 %v1829_v39, %v1786_v37  ;;  %3327 = vrot.lane.b32.xlu0 %v4117_v10, %s4023_s10  ;;  %3694 = vmatmul.msk.bf16.vlgmr.msrb.gmra.mxu1 %vm323_vm1, %v3692_v20 }
 0x219   : > { %3329 = vrot.lane.b32.xlu1 %v4114_v4, %s4023_s10  ;;  %s3897_s10 = scalar_lea.hbm %s3896_s9, 8 }
 0x21a   : > { %v2656_v34 = vpop.permute.xlu0 %2655  ;;  %3373 = vrot.lane.b32.xlu2 %v4119_v11, %s4024_s11  ;;  %v3701_v11 = vld [vmem:[%s4960_s2 + $0x62] sm:$0x3]  ;;  %p3898_p12 = scmp.ne.s32.totalorder %s3896_s9, %s3897_s10  ;;  %p3903_p2 = scmp.lt.s32.totalorder %s3901_s13, %s3897_s10 }
 0x21b   : > { %v2660_v41 = vsel %vm2659_vm8, %v4745_v51, %v2656_v34  ;;  %v2658_v44 = vpop.permute.xlu1 %2657 }
 0x21c   : > { %v2666_v45 = vsel %vm327_vm0, %v2660_v41, 0  ;;  %v1818_v43 = vpop.f32.mrf.mxu2  ;;  %v2661_v42 = vsel %vm2659_vm8, %v2656_v34, %v2658_v44  ;;  %v2846_v56 = vpop.permute.xlu2 %2845  ;;  %vm3331_vm8 = vcmask 531456   ;;  %p3899_p13 = pnand %p3898_p12, %p4091_p4  ;;  %p3904_p3 = por %p3903_p2, %p3902_p1 }
 0x21d   : > { %v1783_v46 = vpop.f32.mrf.mxu1  ;;  %v1864_v49 = vpop.f32.mrf.mxu0  ;;  %v2669_v50 = vsel %vm327_vm0, %v2661_v42, 0  ;;  %2678 = vmatpush.bf16.msra.mxu2 %v2666_v45  ;;  %v3713_v45 = vld [vmem:[%s4960_s2 + $0x6a] sm:$0x3] }
 0x21e   : > { %v1881_v47 = vadd.f32 %v1864_v49, %v1833_v29  ;;  %v1831_v53 = vpop.f32.mrf.mxu3  ;;  %2691 = vmatpush.bf16.msra.mxu3 %v2669_v50  ;;  %p3900_p0 = pneg %p3899_p13 }
 0x220   : > { %3699 = vmatmul.msk.bf16.vlgmr.msra.gmra.mxu0 %vm323_vm1, %v3698_v48  ;;  %3375 = vrot.lane.b32.xlu0 %v4117_v10, %s4024_s11  ;;  %p3905_p5 = pnand %p3904_p3, %p3900_p0 }
 0x221   : > { %3702 = vmatmul.msk.bf16.vlgmr.msra.gmra.mxu2 %vm323_vm1, %v3701_v11  ;;  %3377 = vrot.lane.b32.xlu1 %v4114_v4, %s4024_s11 }
 0x222   : > { %v2704_v51 = vpop.permute.xlu0 %2703  ;;  %3703 = vmatmul.msk.bf16.vlgmr.msra.gmra.mxu3 %vm323_vm1, %v3701_v11 }
 0x223   : > { %v2708_v55 = vsel %vm2707_vm9, %v4763_v12, %v2704_v51  ;;  %v2706_v54 = vpop.permute.xlu1 %2705 }
 0x224   : > { %v2714_v52 = vsel %vm327_vm0, %v2708_v55, 0  ;;  %v1912_v58 = vpop.f32.mrf.mxu2  ;;  %v2709_v59 = vsel %vm2707_vm9, %v2704_v51, %v2706_v54  ;;  %v2894_v15 = vpop.permute.xlu2 %2893  ;;  %vm3379_vm9 = vcmask 523264  }
 0x225   : > { %v1929_v60 = vadd.f32 %v1912_v58, %v1881_v47  ;;  %v1866_v57 = vpop.f32.mrf.mxu0  ;;  %v1877_v63 = vpop.f32.mrf.mxu1  ;;  %v2717_v10 = vsel %vm327_vm0, %v2709_v59, 0  ;;  %2726 = vmatpush.bf16.msrb.mxu0 %v2714_v52 }
 0x226   : > { %v1882_v0 = vadd.f32 %v1877_v63, %v1834_v40  ;;  %v1925_v61 = vpop.f32.mrf.mxu3  ;;  %2739 = vmatpush.bf16.msrb.mxu1 %v2717_v10 }
 0x228   : > { %v1930_v4 = vadd.f32 %v1925_v61, %v1882_v0  ;;  %3700 = vmatmul.msk.bf16.vlgmr.msra.gmra.mxu1 %vm323_vm1, %v3698_v48 }
 0x22a   : > { %v2752_v1 = vpop.permute.xlu0 %2751 }
 0x22b   : > { %v2756_v62 = vsel %vm2755_vm10, %v4780_v26, %v2752_v1  ;;  %v2754_v5 = vpop.permute.xlu1 %2753 }
 0x22c   : > { %v2762_v6 = vsel %vm327_vm0, %v2756_v62, 0  ;;  %v1914_v2 = vpop.f32.mrf.mxu2  ;;  %v2757_v7 = vsel %vm2755_vm10, %v2752_v1, %v2754_v5  ;;  %v2942_v28 = vpop.permute.xlu2 %2941  ;;  %v3716_v62 = vld [vmem:[%s4960_s2 + $0x6c] sm:$0x3] }
 0x22d   : > { %v1879_v9 = vpop.f32.mrf.mxu1  ;;  %v1960_v12 = vpop.f32.mrf.mxu0  ;;  %v2765_v8 = vsel %vm327_vm0, %v2757_v7, 0  ;;  %2774 = vmatpush.bf16.msrb.mxu2 %v2762_v6  ;;  %v3719_v2 = vld [vmem:[%s4960_s2 + $0x6e] sm:$0x3] }
 0x22e   : > { %v1977_v13 = vadd.f32 %v1960_v12, %v1929_v60  ;;  %v1927_v16 = vpop.f32.mrf.mxu3  ;;  %2787 = vmatpush.bf16.msrb.mxu3 %v2765_v8 }
 0x230   : > { %3705 = vmatmul.msk.bf16.vlgmr.msrb.gmra.mxu0 %vm323_vm1, %v3704_v3 }
 0x231   : > { %3708 = vmatmul.msk.bf16.vlgmr.msrb.gmra.mxu2 %vm323_vm1, %v3707_v17 }
 0x232   : > { %v2800_v14 = vpop.permute.xlu0 %2799  ;;  %3709 = vmatmul.msk.bf16.vlgmr.msrb.gmra.mxu3 %vm323_vm1, %v3707_v17 }
 0x233   : > { %v2804_v18 = vsel %vm2803_vm11, %v4792_v38, %v2800_v14  ;;  %v2802_v21 = vpop.permute.xlu1 %2801  ;;  %v3710_v38 = vld [vmem:[%s4960_s2 + $0x68] sm:$0x3] }
 0x234   : > { %v2810_v22 = vsel %vm327_vm0, %v2804_v18, 0  ;;  %v2008_v20 = vpop.f32.mrf.mxu2  ;;  %v2805_v19 = vsel %vm2803_vm11, %v2800_v14, %v2802_v21  ;;  %v2990_v42 = vpop.permute.xlu2 %2989 }
 0x235   : > { %v2025_v25 = vadd.f32 %v2008_v20, %v1977_v13  ;;  %v1962_v23 = vpop.f32.mrf.mxu0  ;;  %v1973_v26 = vpop.f32.mrf.mxu1  ;;  %v2813_v27 = vsel %vm327_vm0, %v2805_v19, 0  ;;  %2822 = vmatpush.bf16.msra.mxu0 %v2810_v22 }
 0x236   : > { %v1978_v24 = vadd.f32 %v1973_v26, %v1930_v4  ;;  %v2021_v30 = vpop.f32.mrf.mxu3  ;;  %2835 = vmatpush.bf16.msra.mxu1 %v2813_v27 }
 0x238   : > { %v2026_v31 = vadd.f32 %v2021_v30, %v1978_v24  ;;  %3706 = vmatmul.msk.bf16.vlgmr.msrb.gmra.mxu1 %vm323_vm1, %v3704_v3 }
 0x23a   : > { %v2848_v32 = vpop.permute.xlu0 %2847 }
 0x23b   : > { %v2852_v29 = vsel %vm2851_vm12, %v2846_v56, %v2848_v32  ;;  %v2850_v35 = vpop.permute.xlu1 %2849 }
 0x23c   : > { %v2858_v36 = vsel %vm327_vm0, %v2852_v29, 0  ;;  %v2010_v33 = vpop.f32.mrf.mxu2  ;;  %v2853_v37 = vsel %vm2851_vm12, %v2848_v32, %v2850_v35  ;;  %v3038_v0 = vpop.permute.xlu2 %3037  ;;  %v3722_v32 = vld [vmem:[%s4960_s2 + $0x70] sm:$0x3] }
 0x23d   : > { %v1975_v39 = vpop.f32.mrf.mxu1  ;;  %v2056_v40 = vpop.f32.mrf.mxu0  ;;  %v2861_v34 = vsel %vm327_vm0, %v2853_v37, 0  ;;  %2870 = vmatpush.bf16.msra.mxu2 %v2858_v36  ;;  %v3725_v36 = vld [vmem:[%s4960_s2 + $0x72] sm:$0x3] }
 0x23e   : > { %v2073_v41 = vadd.f32 %v2056_v40, %v2025_v25  ;;  %v2023_v44 = vpop.f32.mrf.mxu3  ;;  %2883 = vmatpush.bf16.msra.mxu3 %v2861_v34 }
 0x240   : > { %3711 = vmatmul.msk.bf16.vlgmr.msra.gmra.mxu0 %vm323_vm1, %v3710_v38 }
 0x241   : > { %3714 = vmatmul.msk.bf16.vlgmr.msra.gmra.mxu2 %vm323_vm1, %v3713_v45 }
 0x242   : > { %v2896_v43 = vpop.permute.xlu0 %2895  ;;  %3715 = vmatmul.msk.bf16.vlgmr.msra.gmra.mxu3 %vm323_vm1, %v3713_v45 }
 0x243   : > { %v2900_v46 = vsel %vm2899_vm13, %v2894_v15, %v2896_v43  ;;  %v2898_v49 = vpop.permute.xlu1 %2897 }
 0x244   : > { %v2906_v50 = vsel %vm327_vm0, %v2900_v46, 0  ;;  %v2104_v48 = vpop.f32.mrf.mxu2  ;;  %v2901_v47 = vsel %vm2899_vm13, %v2896_v43, %v2898_v49  ;;  %v3086_v22 = vpop.permute.xlu2 %3085 }
 0x245   : > { %v2121_v53 = vadd.f32 %v2104_v48, %v2073_v41  ;;  %v2058_v11 = vpop.f32.mrf.mxu0  ;;  %v2069_v51 = vpop.f32.mrf.mxu1  ;;  %v2909_v55 = vsel %vm327_vm0, %v2901_v47, 0  ;;  %2918 = vmatpush.bf16.msrb.mxu0 %v2906_v50 }
 0x246   : > { %v2074_v54 = vadd.f32 %v2069_v51, %v2026_v31  ;;  %v2117_v52 = vpop.f32.mrf.mxu3  ;;  %2931 = vmatpush.bf16.msrb.mxu1 %v2909_v55 }
 0x248   : > { %v2122_v58 = vadd.f32 %v2117_v52, %v2074_v54  ;;  %3712 = vmatmul.msk.bf16.vlgmr.msra.gmra.mxu1 %vm323_vm1, %v3710_v38 }
 0x24a   : > { %v2944_v59 = vpop.permute.xlu0 %2943 }
 0x24b   : > { %v2948_v56 = vsel %vm2947_vm14, %v2942_v28, %v2944_v59  ;;  %v2946_v60 = vpop.permute.xlu1 %2945 }
 0x24c   : > { %v2954_v57 = vsel %vm327_vm0, %v2948_v56, 0  ;;  %v2106_v63 = vpop.f32.mrf.mxu2  ;;  %v2949_v10 = vsel %vm2947_vm14, %v2944_v59, %v2946_v60  ;;  %v3134_v33 = vpop.permute.xlu2 %3133  ;;  %v3728_v56 = vld [vmem:[%s4960_s2 + $0x74] sm:$0x3] }
 0x24d   : > { %v2071_v61 = vpop.f32.mrf.mxu1  ;;  %v2152_v4 = vpop.f32.mrf.mxu0  ;;  %v2957_v1 = vsel %vm327_vm0, %v2949_v10, 0  ;;  %2966 = vmatpush.bf16.msrb.mxu2 %v2954_v57  ;;  %v3731_v63 = vld [vmem:[%s4960_s2 + $0x76] sm:$0x3] }
 0x24e   : > { %v2169_v5 = vadd.f32 %v2152_v4, %v2121_v53  ;;  %v2119_v6 = vpop.f32.mrf.mxu3  ;;  %2979 = vmatpush.bf16.msrb.mxu3 %v2957_v1 }
 0x250   : > { %3717 = vmatmul.msk.bf16.vlgmr.msrb.gmra.mxu0 %vm323_vm1, %v3716_v62 }
 0x251   : > { %3720 = vmatmul.msk.bf16.vlgmr.msrb.gmra.mxu2 %vm323_vm1, %v3719_v2 }
 0x252   : > { %v2992_v7 = vpop.permute.xlu0 %2991  ;;  %3721 = vmatmul.msk.bf16.vlgmr.msrb.gmra.mxu3 %vm323_vm1, %v3719_v2 }
 0x253   : > { %v2996_v9 = vsel %vm2995_vm15, %v2990_v42, %v2992_v7  ;;  %v2994_v12 = vpop.permute.xlu1 %2993 }
 0x254   : > { %v3002_v8 = vsel %vm327_vm0, %v2996_v9, 0  ;;  %v2200_v3 = vpop.f32.mrf.mxu2  ;;  %v2997_v13 = vsel %vm2995_vm15, %v2992_v7, %v2994_v12  ;;  %v3182_v47 = vpop.permute.xlu2 %3181 }
 0x255   : > { %v2217_v16 = vadd.f32 %v2200_v3, %v2169_v5  ;;  %v2154_v17 = vpop.f32.mrf.mxu0  ;;  %v2165_v15 = vpop.f32.mrf.mxu1  ;;  %v3005_v14 = vsel %vm327_vm0, %v2997_v13, 0  ;;  %3014 = vmatpush.bf16.msra.mxu0 %v3002_v8 }
 0x256   : > { %v2170_v18 = vadd.f32 %v2165_v15, %v2122_v58  ;;  %v2213_v21 = vpop.f32.mrf.mxu3  ;;  %3027 = vmatpush.bf16.msra.mxu1 %v3005_v14 }
 0x258   : > { %v2218_v20 = vadd.f32 %v2213_v21, %v2170_v18  ;;  %3718 = vmatmul.msk.bf16.vlgmr.msrb.gmra.mxu1 %vm323_vm1, %v3716_v62 }
 0x25a   : > { %v3040_v19 = vpop.permute.xlu0 %3039 }
 0x25b   : > { %v3044_v25 = vsel %vm3043_vm2, %v3038_v0, %v3040_v19  ;;  %v3042_v23 = vpop.permute.xlu1 %3041 }
 0x25c   : > { %v3050_v26 = vsel %vm327_vm0, %v3044_v25, 0  ;;  %v2202_v27 = vpop.f32.mrf.mxu2  ;;  %v3045_v24 = vsel %vm3043_vm2, %v3040_v19, %v3042_v23  ;;  %v3230_v5 = vpop.permute.xlu2 %3229  ;;  %v3734_v19 = vld [vmem:[%s4960_s2 + $0x78] sm:$0x3] }
 0x25d   : > { %v2167_v30 = vpop.f32.mrf.mxu1  ;;  %v2248_v31 = vpop.f32.mrf.mxu0  ;;  %v3053_v28 = vsel %vm327_vm0, %v3045_v24, 0  ;;  %3062 = vmatpush.bf16.msra.mxu2 %v3050_v26  ;;  %v3737_v26 = vld [vmem:[%s4960_s2 + $0x7a] sm:$0x3] }
 0x25e   : > { %v2265_v29 = vadd.f32 %v2248_v31, %v2217_v16  ;;  %v2215_v35 = vpop.f32.mrf.mxu3  ;;  %3075 = vmatpush.bf16.msra.mxu3 %v3053_v28 }
 0x260   : > { %3723 = vmatmul.msk.bf16.vlgmr.msra.gmra.mxu0 %vm323_vm1, %v3722_v32 }
 0x261   : > { %3726 = vmatmul.msk.bf16.vlgmr.msra.gmra.mxu2 %vm323_vm1, %v3725_v36 }
 0x262   : > { %v3088_v37 = vpop.permute.xlu0 %3087  ;;  %3727 = vmatmul.msk.bf16.vlgmr.msra.gmra.mxu3 %vm323_vm1, %v3725_v36 }
 0x263   : > { %v3092_v39 = vsel %vm3091_vm3, %v3086_v22, %v3088_v37  ;;  %v3090_v40 = vpop.permute.xlu1 %3089 }
 0x264   : > { %v3098_v34 = vsel %vm327_vm0, %v3092_v39, 0  ;;  %v2296_v38 = vpop.f32.mrf.mxu2  ;;  %v3093_v41 = vsel %vm3091_vm3, %v3088_v37, %v3090_v40  ;;  %v3278_v27 = vpop.permute.xlu2 %3277 }
 0x265   : > { %v2313_v44 = vadd.f32 %v2296_v38, %v2265_v29  ;;  %v2250_v45 = vpop.f32.mrf.mxu0  ;;  %v2261_v43 = vpop.f32.mrf.mxu1  ;;  %v3101_v42 = vsel %vm327_vm0, %v3093_v41, 0  ;;  %3110 = vmatpush.bf16.msrb.mxu0 %v3098_v34 }
 0x266   : > { %v2266_v46 = vadd.f32 %v2261_v43, %v2218_v20  ;;  %v2309_v49 = vpop.f32.mrf.mxu3  ;;  %3123 = vmatpush.bf16.msrb.mxu1 %v3101_v42 }
 0x268   : > { %v2314_v50 = vadd.f32 %v2309_v49, %v2266_v46  ;;  %3724 = vmatmul.msk.bf16.vlgmr.msra.gmra.mxu1 %vm323_vm1, %v3722_v32  ;;  %v3419_v49 = vld [vmem:[%s4961_s3] sm:$0xf] }
 0x26a   : > { %v3136_v48 = vpop.permute.xlu0 %3135 }
 0x26b   : > { %v3140_v53 = vsel %vm3139_vm4, %v3134_v33, %v3136_v48  ;;  %v3138_v11 = vpop.permute.xlu1 %3137 }
 0x26c   : > { %v3146_v51 = vsel %vm327_vm0, %v3140_v53, 0  ;;  %v2298_v55 = vpop.f32.mrf.mxu2  ;;  %v3141_v54 = vsel %vm3139_vm4, %v3136_v48, %v3138_v11  ;;  %v3326_v38 = vpop.permute.xlu2 %3325  ;;  %v3740_v53 = vld [vmem:[%s4960_s2 + $0x7c] sm:$0x3]  ;;  %v4025_v11 = vmov 0  }
 0x26d   : > { %v2263_v52 = vpop.f32.mrf.mxu1  ;;  %v2344_v58 = vpop.f32.mrf.mxu0  ;;  %v3149_v59 = vsel %vm327_vm0, %v3141_v54, 0  ;;  %3158 = vmatpush.bf16.msrb.mxu2 %v3146_v51  ;;  %3880 = vset.pattern.permute.xlu0 %v4025_v11  ;;  %v3743_v54 = vld [vmem:[%s4960_s2 + $0x7e] sm:$0x3] }
 0x26e   : > { %v2361_v60 = vadd.f32 %v2344_v58, %v2313_v44  ;;  %v2311_v57 = vpop.f32.mrf.mxu3  ;;  %3171 = vmatpush.bf16.msrb.mxu3 %v3149_v59  ;;  %3422 = vperm.xlu0 %3880, %v3419_v49  }
 0x270   : > { %3729 = vmatmul.msk.bf16.vlgmr.msrb.gmra.mxu0 %vm323_vm1, %v3728_v56 }
 0x271   : > { %3732 = vmatmul.msk.bf16.vlgmr.msrb.gmra.mxu2 %vm323_vm1, %v3731_v63 }
 0x272   : > { %v3184_v10 = vpop.permute.xlu0 %3183  ;;  %3733 = vmatmul.msk.bf16.vlgmr.msrb.gmra.mxu3 %vm323_vm1, %v3731_v63 }
 0x273   : > { %v3188_v0 = vsel %vm3187_vm5, %v3182_v47, %v3184_v10  ;;  %v3186_v61 = vpop.permute.xlu1 %3185 }
 0x274   : > { %v3194_v4 = vsel %vm327_vm0, %v3188_v0, 0  ;;  %v2392_v1 = vpop.f32.mrf.mxu2  ;;  %v3189_v62 = vsel %vm3187_vm5, %v3184_v10, %v3186_v61  ;;  %v3374_v52 = vpop.permute.xlu2 %3373 }
 0x275   : > { %v2409_v6 = vadd.f32 %v2392_v1, %v2361_v60  ;;  %v2346_v2 = vpop.f32.mrf.mxu0  ;;  %v2357_v7 = vpop.f32.mrf.mxu1  ;;  %v3197_v9 = vsel %vm327_vm0, %v3189_v62, 0  ;;  %3206 = vmatpush.bf16.msra.mxu0 %v3194_v4 }
 0x276   : > { %v2362_v12 = vadd.f32 %v2357_v7, %v2314_v50  ;;  %v2405_v8 = vpop.f32.mrf.mxu3  ;;  %3219 = vmatpush.bf16.msra.mxu1 %v3197_v9  ;;  %v3746_v9 = vld [vmem:[%s4960_s2 + $0x80] sm:$0x3] }
 0x278   : > { %v2410_v3 = vadd.f32 %v2405_v8, %v2362_v12  ;;  %3730 = vmatmul.msk.bf16.vlgmr.msrb.gmra.mxu1 %vm323_vm1, %v3728_v56 }
 0x27a   : > { %v3232_v13 = vpop.permute.xlu0 %3231 }
 0x27b   : > { %v3236_v16 = vsel %vm3235_vm6, %v3230_v5, %v3232_v13  ;;  %v3234_v17 = vpop.permute.xlu1 %3233 }
 0x27c   : > { %v3242_v15 = vsel %vm327_vm0, %v3236_v16, 0  ;;  %v2394_v14 = vpop.f32.mrf.mxu2  ;;  %v3237_v18 = vsel %vm3235_vm6, %v3232_v13, %v3234_v17 }
 0x27d   : > { %v2359_v21 = vpop.f32.mrf.mxu1  ;;  %v2440_v22 = vpop.f32.mrf.mxu0  ;;  %v3245_v20 = vsel %vm327_vm0, %v3237_v18, 0  ;;  %3254 = vmatpush.bf16.msra.mxu2 %v3242_v15 }
 0x27e   : > { %v2457_v25 = vadd.f32 %v2440_v22, %v2409_v6  ;;  %v2407_v23 = vpop.f32.mrf.mxu3  ;;  %3267 = vmatpush.bf16.msra.mxu3 %v3245_v20 }
 0x280   : > { %3735 = vmatmul.msk.bf16.vlgmr.msra.gmra.mxu0 %vm323_vm1, %v3734_v19 }
 0x281   : > { %3738 = vmatmul.msk.bf16.vlgmr.msra.gmra.mxu2 %vm323_vm1, %v3737_v26 }
 0x282   : > { %v3280_v24 = vpop.permute.xlu0 %3279  ;;  %3739 = vmatmul.msk.bf16.vlgmr.msra.gmra.mxu3 %vm323_vm1, %v3737_v26 }
 0x283   : > { %v3284_v30 = vsel %vm3283_vm7, %v3278_v27, %v3280_v24  ;;  %v3282_v31 = vpop.permute.xlu1 %3281 }
 0x284   : > { %v3290_v28 = vsel %vm327_vm0, %v3284_v30, 0  ;;  %v2488_v32 = vpop.f32.mrf.mxu2  ;;  %v3285_v29 = vsel %vm3283_vm7, %v3280_v24, %v3282_v31 }
 0x285   : > { %v2505_v35 = vadd.f32 %v2488_v32, %v2457_v25  ;;  %v2442_v36 = vpop.f32.mrf.mxu0  ;;  %v2453_v33 = vpop.f32.mrf.mxu1  ;;  %v3293_v37 = vsel %vm327_vm0, %v3285_v29, 0  ;;  %3302 = vmatpush.bf16.msrb.mxu0 %v3290_v28 }
 0x286   : > { %v2458_v39 = vadd.f32 %v2453_v33, %v2410_v3  ;;  %v2501_v40 = vpop.f32.mrf.mxu3  ;;  %3315 = vmatpush.bf16.msrb.mxu1 %v3293_v37 }
 0x288   : > { %v2506_v34 = vadd.f32 %v2501_v40, %v2458_v39  ;;  %3736 = vmatmul.msk.bf16.vlgmr.msra.gmra.mxu1 %vm323_vm1, %v3734_v19 }
 0x28a   : > { %v3328_v41 = vpop.permute.xlu0 %3327 }
 0x28b   : > { %v3332_v44 = vsel %vm3331_vm8, %v3326_v38, %v3328_v41  ;;  %v3330_v45 = vpop.permute.xlu1 %3329 }
 0x28c   : > { %v3338_v43 = vsel %vm327_vm0, %v3332_v44, 0  ;;  %v2490_v42 = vpop.f32.mrf.mxu2  ;;  %v3333_v46 = vsel %vm3331_vm8, %v3328_v41, %v3330_v45 }
 0x28d   : > { %v2455_v50 = vpop.f32.mrf.mxu1  ;;  %v2536_v48 = vpop.f32.mrf.mxu0  ;;  %v3341_v47 = vsel %vm327_vm0, %v3333_v46, 0  ;;  %3350 = vmatpush.bf16.msrb.mxu2 %v3338_v43 }
 0x28e   : > { %v2553_v51 = vadd.f32 %v2536_v48, %v2505_v35  ;;  %v2503_v55 = vpop.f32.mrf.mxu3  ;;  %3363 = vmatpush.bf16.msrb.mxu3 %v3341_v47 }
 0x290   : > { %3741 = vmatmul.msk.bf16.vlgmr.msrb.gmra.mxu0 %vm323_vm1, %v3740_v53 }
 0x291   : > { %3744 = vmatmul.msk.bf16.vlgmr.msrb.gmra.mxu2 %vm323_vm1, %v3743_v54 }
 0x292   : > { %3745 = vmatmul.msk.bf16.vlgmr.msrb.gmra.mxu3 %vm323_vm1, %v3743_v54  ;;  %v3376_v58 = vpop.permute.xlu0 %3375 }
 0x293   : > { %v3380_v59 = vsel %vm3379_vm9, %v3374_v52, %v3376_v58  ;;  %v3378_v56 = vpop.permute.xlu1 %3377 }
 0x294   : > { %v2584_v60 = vpop.f32.mrf.mxu2  ;;  %v3386_v57 = vsel %vm327_vm0, %v3380_v59, 0  ;;  %v3381_v63 = vsel %vm3379_vm9, %v3376_v58, %v3378_v56 }
 0x295   : > { %v2601_v10 = vadd.f32 %v2584_v60, %v2553_v51  ;;  %v2538_v0 = vpop.f32.mrf.mxu0  ;;  %v2549_v61 = vpop.f32.mrf.mxu1  ;;  %v3389_v4 = vsel %vm327_vm0, %v3381_v63, 0  ;;  %3398 = vmatpush.bf16.msra.mxu0 %v3386_v57  ;;  %vm3430_vm0 = vcmask 1043456  }
 0x296   : > { %v2554_v1 = vadd.f32 %v2549_v61, %v2506_v34  ;;  %v2597_v62 = vpop.f32.mrf.mxu3  ;;  %3411 = vmatpush.bf16.msra.mxu1 %v3389_v4 }
 0x298   : > { %v2602_v5 = vadd.f32 %v2597_v62, %v2554_v1  ;;  %3742 = vmatmul.msk.bf16.vlgmr.msrb.gmra.mxu1 %vm323_vm1, %v3740_v53 }
 0x29c   : > { %v2586_v6 = vpop.f32.mrf.mxu2 }
 0x29d   : > { %v2551_v2 = vpop.f32.mrf.mxu1  ;;  %v2632_v7 = vpop.f32.mrf.mxu0 }
 0x29e   : > { %v2649_v12 = vadd.f32 %v2632_v7, %v2601_v10  ;;  %v2599_v8 = vpop.f32.mrf.mxu3 }
 0x2a0   : > { %3747 = vmatmul.msk.bf16.vlgmr.msra.gmra.mxu0 %vm323_vm1, %v3746_v9 }
 0x2a4   : > { %v2680_v3 = vpop.f32.mrf.mxu2 }
 0x2a5   : > { %v2697_v13 = vadd.f32 %v2680_v3, %v2649_v12  ;;  %v2634_v16 = vpop.f32.mrf.mxu0  ;;  %v2645_v17 = vpop.f32.mrf.mxu1 }
 0x2a6   : > { %v2650_v15 = vadd.f32 %v2645_v17, %v2602_v5  ;;  %v2693_v14 = vpop.f32.mrf.mxu3 }
 0x2a8   : > { %v2698_v18 = vadd.f32 %v2693_v14, %v2650_v15  ;;  %3748 = vmatmul.msk.bf16.vlgmr.msra.gmra.mxu1 %vm323_vm1, %v3746_v9 }
 0x2ac   : > { %v2682_v21 = vpop.f32.mrf.mxu2 }
 0x2ad   : > { %v2647_v22 = vpop.f32.mrf.mxu1  ;;  %v2728_v20 = vpop.f32.mrf.mxu0 }
 0x2ae   : > { %v2745_v19 = vadd.f32 %v2728_v20, %v2697_v13  ;;  %v2695_v25 = vpop.f32.mrf.mxu3 }
 0x2b4   : > { %v2776_v23 = vpop.f32.mrf.mxu2 }
 0x2b5   : > { %v2793_v26 = vadd.f32 %v2776_v23, %v2745_v19  ;;  %v2730_v27 = vpop.f32.mrf.mxu0  ;;  %v2741_v24 = vpop.f32.mrf.mxu1 }
 0x2b6   : > { %v2746_v30 = vadd.f32 %v2741_v24, %v2698_v18  ;;  %v2789_v31 = vpop.f32.mrf.mxu3 }
 0x2b8   : > { %v2794_v28 = vadd.f32 %v2789_v31, %v2746_v30 }
 0x2bc   : > { %v2778_v32 = vpop.f32.mrf.mxu2 }
 0x2bd   : > { %v2743_v29 = vpop.f32.mrf.mxu1  ;;  %v2824_v35 = vpop.f32.mrf.mxu0 }
 0x2be   : > { %v2841_v36 = vadd.f32 %v2824_v35, %v2793_v26  ;;  %v2791_v33 = vpop.f32.mrf.mxu3 }
 0x2c4   : > { %v2872_v37 = vpop.f32.mrf.mxu2 }
 0x2c5   : > { %v2889_v39 = vadd.f32 %v2872_v37, %v2841_v36  ;;  %v2826_v40 = vpop.f32.mrf.mxu0  ;;  %v2837_v34 = vpop.f32.mrf.mxu1 }
 0x2c6   : > { %v2842_v38 = vadd.f32 %v2837_v34, %v2794_v28  ;;  %v2885_v41 = vpop.f32.mrf.mxu3 }
 0x2c8   : > { %v2890_v44 = vadd.f32 %v2885_v41, %v2842_v38 }
 0x2cc   : > { %v2874_v45 = vpop.f32.mrf.mxu2 }
 0x2cd   : > { %v2839_v43 = vpop.f32.mrf.mxu1  ;;  %v2920_v42 = vpop.f32.mrf.mxu0 }
 0x2ce   : > { %v2937_v46 = vadd.f32 %v2920_v42, %v2889_v39  ;;  %v2887_v49 = vpop.f32.mrf.mxu3 }
 0x2d4   : > { %v2968_v50 = vpop.f32.mrf.mxu2 }
 0x2d5   : > { %v2985_v48 = vadd.f32 %v2968_v50, %v2937_v46  ;;  %v2922_v47 = vpop.f32.mrf.mxu0  ;;  %v2933_v53 = vpop.f32.mrf.mxu1 }
 0x2d6   : > { %v2981_v11 = vpop.f32.mrf.mxu3  ;;  %v2938_v13 = vadd.f32 %v2933_v53, %v2890_v44 }
 0x2d8   : > { %v2986_v16 = vadd.f32 %v2981_v11, %v2938_v13 }
 0x2dc   : > { %v2970_v51 = vpop.f32.mrf.mxu2 }
 0x2dd   : > { %v2935_v55 = vpop.f32.mrf.mxu1  ;;  %v3016_v54 = vpop.f32.mrf.mxu0 }
 0x2de   : > { %v2983_v52 = vpop.f32.mrf.mxu3  ;;  %v3033_v26 = vadd.f32 %v3016_v54, %v2985_v48 }
 0x2e0   : > { %v3423_v49 = vpop.permute.xlu0 %3422 }
 0x2e4   : > { %v3064_v58 = vpop.f32.mrf.mxu2 }
 0x2e5   : > { %v3018_v59 = vpop.f32.mrf.mxu0  ;;  %v3029_v56 = vpop.f32.mrf.mxu1  ;;  %v3081_v24 = vadd.f32 %v3064_v58, %v3033_v26 }
 0x2e6   : > { %v3077_v60 = vpop.f32.mrf.mxu3  ;;  %v3034_v18 = vadd.f32 %v3029_v56, %v2986_v16 }
 0x2e8   : > { %v3082_v22 = vadd.f32 %v3077_v60, %v3034_v18 }
 0x2ec   : > { %v3066_v57 = vpop.f32.mrf.mxu2 }
 0x2ed   : > { %v3031_v63 = vpop.f32.mrf.mxu1  ;;  %v3112_v10 = vpop.f32.mrf.mxu0 }
 0x2ee   : > { %v3079_v0 = vpop.f32.mrf.mxu3  ;;  %v3129_v31 = vadd.f32 %v3112_v10, %v3081_v24 }
 0x2f4   : > { %v3160_v61 = vpop.f32.mrf.mxu2 }
 0x2f5   : > { %v3114_v4 = vpop.f32.mrf.mxu0  ;;  %v3125_v1 = vpop.f32.mrf.mxu1  ;;  %v3177_v32 = vadd.f32 %v3160_v61, %v3129_v31 }
 0x2f6   : > { %v3173_v62 = vpop.f32.mrf.mxu3  ;;  %v3130_v20 = vadd.f32 %v3125_v1, %v3082_v22 }
 0x2f8   : > { %v3178_v30 = vadd.f32 %v3173_v62, %v3130_v20 }
 0x2fc   : > { %v3162_v5 = vpop.f32.mrf.mxu2 }
 0x2fd   : > { %v3127_v6 = vpop.f32.mrf.mxu1  ;;  %v3208_v2 = vpop.f32.mrf.mxu0 }
 0x2fe   : > { %v3175_v7 = vpop.f32.mrf.mxu3  ;;  %v3225_v33 = vadd.f32 %v3208_v2, %v3177_v32 }
 0x304   : > { %v3256_v9 = vpop.f32.mrf.mxu2 }
 0x305   : > { %v3210_v12 = vpop.f32.mrf.mxu0  ;;  %v3221_v8 = vpop.f32.mrf.mxu1  ;;  %v3273_v40 = vadd.f32 %v3256_v9, %v3225_v33 }
 0x306   : > { %v3269_v3 = vpop.f32.mrf.mxu3  ;;  %v3226_v28 = vadd.f32 %v3221_v8, %v3178_v30 }
 0x308   : > { %v3274_v37 = vadd.f32 %v3269_v3, %v3226_v28 }
 0x30c   : > { %v3258_v17 = vpop.f32.mrf.mxu2 }
 0x30d   : > { %v3223_v15 = vpop.f32.mrf.mxu1  ;;  %v3304_v14 = vpop.f32.mrf.mxu0 }
 0x30e   : > { %v3271_v21 = vpop.f32.mrf.mxu3  ;;  %v3321_v38 = vadd.f32 %v3304_v14, %v3273_v40 }
 0x314   : > { %v3352_v19 = vpop.f32.mrf.mxu2 }
 0x315   : > { %v3306_v25 = vpop.f32.mrf.mxu0  ;;  %v3317_v23 = vpop.f32.mrf.mxu1  ;;  %v3369_v41 = vadd.f32 %v3352_v19, %v3321_v38 }
 0x316   : > { %v3365_v27 = vpop.f32.mrf.mxu3  ;;  %v3322_v34 = vadd.f32 %v3317_v23, %v3274_v37 }
 0x318   : > { %v3370_v44 = vadd.f32 %v3365_v27, %v3322_v34 }
 0x31c   : > { %v3354_v29 = vpop.f32.mrf.mxu2 }
 0x31d   : > { %v3319_v35 = vpop.f32.mrf.mxu1  ;;  %v3400_v36 = vpop.f32.mrf.mxu0 }
 0x31e   : > { %v3367_v39 = vpop.f32.mrf.mxu3  ;;  %v3417_v42 = vadd.f32 %v3400_v36, %v3369_v41 }
 0x320   : > { %v3425_v48 = vadd.f32 %v3423_v49, %v3417_v42 }
 0x325   : > { %v3413_v45 = vpop.f32.mrf.mxu1  ;;  %v3402_v43 = vpop.f32.mrf.mxu0 }
 0x326   : > { %v3418_v46 = vadd.f32 %v3413_v45, %v3370_v44 }
 0x328   : > { %v3426_v50 = vadd.f32 %v3423_v49, %v3418_v46 }
 0x32a   : > { %v3429_v47 = vrot.slane %v3426_v50, 4 }
 0x32c   : > { %v3431_v53 = vsel %vm3430_vm0, %v3425_v48, %v3429_v47 }
 0x32d   : > { %v3415_v11 = vpop.f32.mrf.mxu1  ;;  %3433 = vst [vmem:[%s260_s6] sm:$0xff] %v3431_v53 }
 0x32e   : > { %3908 = shalt.err (!%p3905_p5)
}
 0x32f   : > { %3759 = dma.vmem_to_hbm [thread:$0]  (%p4091_p4), %s3451_s7, 128, %s3453_s8, %s3435_s18  }
 0x330 PF: > { %p3766_p6 = scmp.ge.s32.totalorder %s3959_s20, 2  ;;  %s3464_s22 = sand.u32 1, %s3939_s15  }
 0x331   : > { %s3465_s24 = scalar_lea.sflag [#allocation3], %s3464_s22 }
 0x332   : > { %p3762_p7 = pnand %p3766_p6, %p4098_p8 }
 0x334   : > { %p3763_p9 = pneg %p3762_p7 }
 0x336   : > { %3934 = dma.done.wait (%p3763_p9), %s3465_s24, 128  }
 0x337   : > { %3936 = vsyncadd (%p3763_p9), %s3465_s24, 4294967168  ;;  %s17_s20 = sadd.s32 1, %s3959_s20   ;;  %s4965_s15 = smov %s3943_s16 }
 0x338   : > { %p14_p10 = scmp.ge.s32.totalorder %s17_s20, 4   ;;  %s4966_s16 = smov %s3947_s17 }
 0x339   : > { %s4967_s17 = smov %s4104_s28  ;;  %s4968_s18 = smov %s3955_s19 }
 0x33a   : > { %s4969_s19 = smov %s4971_s23  ;;  %16 = sbr.rel (!%p14_p10) target bundleno = 4 (0x4), region = 138 }
 0x33f   :  { %3471 = vsyncpa [#allocation3], 1 }
 0x340   :  { %3473 = vsyncpa [#allocation3 + $0x1], 1 }

</bundles_post_ra>
